<compile_context>
chip_gen: v5e
topology: v5e:2x2
jax: 0.10.0
libtpu: 0.0.40
codegen_flags: <defaults>
</compile_context>

<pallas_src>
import functools
import math

import jax
import jax.numpy as jnp
from jax import lax
from jax.experimental import pallas as pl
from jax.experimental.pallas import tpu as pltpu

_LANES = 128
_NEG_INF = -1e30   # finite so 0 * (-1e30) = 0 inside the one-hot gather matmuls


def _graph_attention_kernel(
    # scalar prefetch (SMEM)
    tgt_smem,
    # VMEM inputs
    tgt_col_ref, src_col_ref, tgt_row_ref,
    x_ref, wqvk_ref, bqvk_ref, wo_ref, bo_ref, headsum_ref, expand_ref,
    # VMEM output
    o_ref,
    # node / edge resident scratch (persists across the whole grid)
    qvk_nodes, m_nodes, den_nodes, num_nodes, s_cache,
    *, dim):
    f32 = jnp.float32
    tile = tgt_col_ref.shape[0]
    n_pad = m_nodes.shape[0]

    phase = pl.program_id(0)            # 0: exact per-target score max, 1: accumulate
    et = pl.program_id(1)               # edge-tile index
    base = pl.multiple_of(et * tile, tile)

    # Edge -> node one-hot selection matrices, built on the VPU from the
    # VMEM-resident index columns (used as MXU gather/scatter operands).
    node_iota = lax.broadcasted_iota(jnp.int32, (tile, n_pad), 1)
    oh_src = (node_iota == src_col_ref[...]).astype(f32)        # (tile, n_pad)
    oh_tgt = (node_iota == tgt_col_ref[...]).astype(f32)        # (tile, n_pad)

    # ---- first grid step: fused (scaled-q | v | k) projection + init --------
    @pl.when(jnp.logical_and(phase == 0, et == 0))
    def _init():
        qvk = jnp.dot(x_ref[...], wqvk_ref[...], preferred_element_type=f32)
        qvk_nodes[...] = qvk + bqvk_ref[...]
        m_nodes[...] = jnp.full(m_nodes.shape, _NEG_INF, f32)
        den_nodes[...] = jnp.zeros(den_nodes.shape, f32)
        num_nodes[...] = jnp.zeros(num_nodes.shape, f32)

    # ---- phase 0: per-edge scores (MXU) + exact per-target max --------------
    @pl.when(phase == 0)
    def _phase0():
        q_e = jnp.dot(oh_src, qvk_nodes[:, :dim],
                      preferred_element_type=f32)               # (tile, dim), pre-scaled
        k_e = jnp.dot(oh_tgt, qvk_nodes[:, 2 * dim:],
                      preferred_element_type=f32)               # (tile, dim)
        # Per-head score reduce on the MXU -> head-compact (tile, 128) layout.
        sc = jnp.dot(q_e * k_e, headsum_ref[...], preferred_element_type=f32)
        s_cache[pl.ds(base, tile), :] = sc                      # reused in phase 1

        # Per-target running max: the only remaining scalar loop.  Narrow
        # (128-lane) RMW rows, 8-wide manual unroll so SMEM index loads and the
        # row max/store can co-issue across slots.
        @pl.loop(0, tile // 8)
        def _max_scatter(i0):
            for u in range(8):
                e = base + i0 * 8 + u
                t = tgt_smem[e]
                m_nodes[pl.ds(t, 1), :] = jnp.maximum(
                    m_nodes[pl.ds(t, 1), :], s_cache[pl.ds(e, 1), :])

    # ---- phase 1: exp weights, weighted values, vectorized scatter-add ------
    @pl.when(phase == 1)
    def _phase1():
        v_e = jnp.dot(oh_src, qvk_nodes[:, dim:2 * dim],
                      preferred_element_type=f32)               # (tile, dim)
        m_e = jnp.dot(oh_tgt, m_nodes[...],
                      preferred_element_type=f32)               # (tile, 128)
        sc = s_cache[pl.ds(base, tile), :]                      # cached scores
        ex = jnp.exp(sc - m_e)                                  # (tile, 128), <= 1
        ex_full = jnp.dot(ex, expand_ref[...],
                          preferred_element_type=f32)           # (tile, dim)

        # Scatter-add via a transposed one-hot matmul: no per-edge RMW chain.
        n_iota_rows = lax.broadcasted_iota(jnp.int32, (n_pad, tile), 0)
        oh_tgt_t = (n_iota_rows == tgt_row_ref[...]).astype(f32)  # (n_pad, tile)
        den_nodes[...] = den_nodes[...] + jnp.dot(
            oh_tgt_t, ex, preferred_element_type=f32)
        num_nodes[...] = num_nodes[...] + jnp.dot(
            oh_tgt_t, v_e * ex_full, preferred_element_type=f32)

        # ---- last step: normalize and apply the output linear ----------------
        @pl.when(et == pl.num_programs(1) - 1)
        def _finalize():
            den = jnp.dot(den_nodes[...], expand_ref[...],
                          preferred_element_type=f32)           # (n_pad, dim)
            # 1e-16 eps matches torch_geometric softmax; zero-in-degree nodes -> 0.
            agg = num_nodes[...] * pl.reciprocal(den + 1e-16, approx=False)
            out = jnp.dot(agg, wo_ref[...], preferred_element_type=f32) + bo_ref[...]
            o_ref[...] = out.astype(o_ref.dtype)


def _round_up(a, b):
    return (a + b - 1) // b * b


def transformer_attention_forward(x, edge_index, params, num_heads, *,
                                  edge_tile=256):
    """x: [N, dim] float32, edge_index: [2, E] int32. Returns [N, dim]."""
    N, dim = x.shape
    E = int(edge_index.shape[1])
    if dim % num_heads != 0:
        raise ValueError("dim must be divisible by num_heads")
    if num_heads > _LANES:
        raise ValueError("num_heads must be <= 128")
    head_dim = dim // num_heads
    scale = 1.0 / math.sqrt(head_dim)
    out_dtype = x.dtype
    f32 = jnp.float32

    wq, bq, wk, bk, wv, bv, wo, bo = params

    # Fused projection, column order [q | v | k]; scale folded into the q slice.
    wqvk = jnp.concatenate(
        [wq.T.astype(f32) * scale, wv.T.astype(f32), wk.T.astype(f32)], axis=1)
    bqvk = jnp.concatenate(
        [bq.astype(f32) * scale, bv.astype(f32), bk.astype(f32)]
    ).reshape(1, 3 * dim)
    wo_t = wo.T.astype(f32)
    bo_2d = bo.astype(f32).reshape(1, dim)

    # Head-compact reduce / expand matrices (precomputed once; avoids the
    # per-step iota/mask rebuild and moves the per-head reduce onto the MXU).
    d_idx = jnp.arange(dim, dtype=jnp.int32)
    h_idx = jnp.arange(_LANES, dtype=jnp.int32)
    headsum = (d_idx[:, None] // head_dim == h_idx[None, :]).astype(f32)  # (dim, 128)
    expand = headsum.T                                                    # (128, dim)

    # Node padding: at least one spare row (index N) absorbs the padded-edge
    # sentinel target, so padded edges only ever touch discarded rows.
    n_pad = (N // 8 + 1) * 8
    x_pad = jnp.pad(x.astype(f32), ((0, n_pad - N), (0, 0)))

    # Edge tiling: tiles are multiples of 128 (lane-dense row-index blocks).
    tile = max(128, min(_round_up(int(edge_tile), 128), _round_up(E, 128)))
    n_tiles = pl.cdiv(E, tile)
    e_pad = n_tiles * tile
    tgt = jnp.pad(edge_index[0].astype(jnp.int32), (0, e_pad - E),
                  constant_values=N)
    src = jnp.pad(edge_index[1].astype(jnp.int32), (0, e_pad - E),
                  constant_values=N)

    # Derive the VMEM budget from the actual buffer sizes (double-buffered
    # inputs + resident scratch + output) instead of a hard-coded constant.
    scratch_bytes = 4 * (n_pad * 3 * dim + 2 * n_pad * _LANES + n_pad * dim
                         + e_pad * _LANES)
    const_bytes = 4 * (n_pad * dim + dim * 3 * dim + 3 * dim + dim * dim + dim
                       + 2 * dim * _LANES)
    idx_bytes = 4 * (2 * tile * _LANES + tile)     # lane-padded (tile,1) blocks
    out_bytes = 4 * n_pad * dim
    vmem_limit = int(min(100 * 2**20,
                         max(16 * 2**20,
                             2 * (const_bytes + idx_bytes + out_bytes)
                             + scratch_bytes + (4 << 20))))
    # TODO(synk): single-buffer the constant inputs (pl.Buffered(1)) and add a
    #             node-partitioned parallel grid axis for v7x's second TensorCore.

    grid_spec = pltpu.PrefetchScalarGridSpec(
        num_scalar_prefetch=1,                       # tgt indices -> SMEM
        grid=(2, n_tiles),                           # (phase, edge tile)
        in_specs=[
            pl.BlockSpec((tile, 1), lambda ph, et, tgt: (et, 0)),    # tgt column
            pl.BlockSpec((tile, 1), lambda ph, et, tgt: (et, 0)),    # src column
            pl.BlockSpec((1, tile), lambda ph, et, tgt: (0, et)),    # tgt row
            pl.BlockSpec((n_pad, dim), lambda ph, et, tgt: (0, 0)),  # x (padded)
            pl.BlockSpec((dim, 3 * dim), lambda ph, et, tgt: (0, 0)),  # fused W
            pl.BlockSpec((1, 3 * dim), lambda ph, et, tgt: (0, 0)),  # fused bias
            pl.BlockSpec((dim, dim), lambda ph, et, tgt: (0, 0)),    # W_out^T
            pl.BlockSpec((1, dim), lambda ph, et, tgt: (0, 0)),      # b_out
            pl.BlockSpec((dim, _LANES), lambda ph, et, tgt: (0, 0)),  # head-sum
            pl.BlockSpec((_LANES, dim), lambda ph, et, tgt: (0, 0)),  # head-expand
        ],
        out_specs=pl.BlockSpec((n_pad, dim), lambda ph, et, tgt: (0, 0)),
        scratch_shapes=[
            pltpu.VMEM((n_pad, 3 * dim), f32),     # qvk_nodes  [q*scale | v | k]
            pltpu.VMEM((n_pad, _LANES), f32),      # m_nodes    per-target max (compact)
            pltpu.VMEM((n_pad, _LANES), f32),      # den_nodes  softmax denominators
            pltpu.VMEM((n_pad, dim), f32),         # num_nodes  softmax numerators
            pltpu.VMEM((e_pad, _LANES), f32),      # s_cache    cached per-edge scores
        ],
    )

    kernel = functools.partial(_graph_attention_kernel, dim=dim)

    out = pl.pallas_call(
        kernel,
        grid_spec=grid_spec,
        out_shape=jax.ShapeDtypeStruct((n_pad, dim), out_dtype),
        compiler_params=pltpu.CompilerParams(
            dimension_semantics=("arbitrary", "arbitrary"),
            vmem_limit_bytes=vmem_limit,
        ),
    )(tgt, tgt.reshape(e_pad, 1), src.reshape(e_pad, 1), tgt.reshape(1, e_pad),
      x_pad, wqvk, bqvk, wo_t, bo_2d, headsum, expand)
    return out[:N]


def reference_forward(x, edge_index, params, num_heads):
    """Pure-JAX reference matching the PyTorch forward (eval mode)."""
    N, dim = x.shape
    head_dim = dim // num_heads
    wq, bq, wk, bk, wv, bv, wo, bo = params
    hi = jax.lax.Precision.HIGHEST
    q = (jnp.dot(x, wq.T, precision=hi) + bq).reshape(N, num_heads, head_dim)
    k = (jnp.dot(x, wk.T, precision=hi) + bk).reshape(N, num_heads, head_dim)
    v = (jnp.dot(x, wv.T, precision=hi) + bv).reshape(N, num_heads, head_dim)
    tgt, src = edge_index[0], edge_index[1]
    qe = q[src]                           # queries from edge_index[1] (module spec)
    ke = k[tgt]                           # keys from edge_index[0]
    scores = (qe * ke).sum(-1) / math.sqrt(head_dim)            # [E, H]
    mx = jax.ops.segment_max(scores, tgt, num_segments=N)       # [N, H]
    ex = jnp.exp(scores - mx[tgt])
    den = jax.ops.segment_sum(ex, tgt, num_segments=N) + 1e-16
    probs = ex / den[tgt]
    agg = jax.ops.segment_sum(v[src] * probs[..., None], tgt, num_segments=N)
    out = jnp.dot(agg.reshape(N, dim), wo.T, precision=hi) + bo
    return out


if __name__ == "__main__":
    N, dim, num_heads, E = 64, 128, 4, 250

    key = jax.random.PRNGKey(0)
    ks = jax.random.split(key, 11)

    x = jax.random.normal(ks[0], (N, dim), dtype=jnp.float32)
    edge_index = jnp.stack([
        jax.random.randint(ks[1], (E,), 0, N),
        jax.random.randint(ks[2], (E,), 0, N),
    ]).astype(jnp.int32)

    # PyTorch nn.Linear layout: W [out, in], b [out]
    params = (
        jax.random.normal(ks[3], (dim, dim), jnp.float32) * 0.1,
        jax.random.normal(ks[4], (dim,), jnp.float32) * 0.1,
        jax.random.normal(ks[5], (dim, dim), jnp.float32) * 0.1,
        jax.random.normal(ks[6], (dim,), jnp.float32) * 0.1,
        jax.random.normal(ks[7], (dim, dim), jnp.float32) * 0.1,
        jax.random.normal(ks[8], (dim,), jnp.float32) * 0.1,
        jax.random.normal(ks[9], (dim, dim), jnp.float32) * 0.1,
        jax.random.normal(ks[10], (dim,), jnp.float32) * 0.1,
    )

    out = transformer_attention_forward(x, edge_index, params, num_heads)
    out = jax.block_until_ready(out)

    ref = reference_forward(x, edge_index, params, num_heads)
    assert out.shape == (N, dim)
    assert jnp.allclose(out, ref, atol=2e-3, rtol=2e-3), (
        "kernel/reference mismatch, max abs err = "
        f"{float(jnp.max(jnp.abs(out - ref)))}")

    print("KERNEL_OK")
</pallas_src>

<mosaic_0001>
module attributes {stable_mosaic.version = 11 : i64} {
  func.func @_graph_attention_kernel(%arg0: i32, %arg1: i32, %arg2: memref<256xi32, #tpu.memory_space<smem>>, %arg3: memref<256x1xi32, #tpu.memory_space<vmem>>, %arg4: memref<256x1xi32, #tpu.memory_space<vmem>>, %arg5: memref<1x256xi32, #tpu.memory_space<vmem>>, %arg6: memref<72x128xf32, #tpu.memory_space<vmem>>, %arg7: memref<128x384xf32, #tpu.memory_space<vmem>>, %arg8: memref<1x384xf32, #tpu.memory_space<vmem>>, %arg9: memref<128x128xf32, #tpu.memory_space<vmem>>, %arg10: memref<1x128xf32, #tpu.memory_space<vmem>>, %arg11: memref<128x128xf32, #tpu.memory_space<vmem>>, %arg12: memref<128x128xf32, #tpu.memory_space<vmem>>, %arg13: memref<72x128xf32, #tpu.memory_space<vmem>>, %arg14: memref<72x384xf32, #tpu.memory_space<vmem>>, %arg15: memref<72x128xf32, #tpu.memory_space<vmem>>, %arg16: memref<72x128xf32, #tpu.memory_space<vmem>>, %arg17: memref<72x128xf32, #tpu.memory_space<vmem>>, %arg18: memref<256x128xf32, #tpu.memory_space<vmem>>) attributes {dimension_semantics = [#tpu.dimension_semantics<arbitrary>, #tpu.dimension_semantics<arbitrary>], iteration_bounds = array<i64: 2, 1>, scalar_prefetch = 1 : i64, scratch_operands = 5 : i64, tpu.core_type = #tpu.core_type<tc>, window_params = [{transform_indices = @transform_0, window_bounds = array<i64: 256, 1>}, {transform_indices = @transform_1, window_bounds = array<i64: 256, 1>}, {transform_indices = @transform_2, window_bounds = array<i64: 1, 256>}, {pipeline_mode = #tpu.pipeline_mode<synchronous>, transform_indices = @transform_3, window_bounds = array<i64: 72, 128>}, {pipeline_mode = #tpu.pipeline_mode<synchronous>, transform_indices = @transform_4, window_bounds = array<i64: 128, 384>}, {pipeline_mode = #tpu.pipeline_mode<synchronous>, transform_indices = @transform_5, window_bounds = array<i64: 1, 384>}, {pipeline_mode = #tpu.pipeline_mode<synchronous>, transform_indices = @transform_6, window_bounds = array<i64: 128, 128>}, {pipeline_mode = #tpu.pipeline_mode<synchronous>, transform_indices = @transform_7, window_bounds = array<i64: 1, 128>}, {pipeline_mode = #tpu.pipeline_mode<synchronous>, transform_indices = @transform_8, window_bounds = array<i64: 128, 128>}, {pipeline_mode = #tpu.pipeline_mode<synchronous>, transform_indices = @transform_9, window_bounds = array<i64: 128, 128>}, {pipeline_mode = #tpu.pipeline_mode<synchronous>, transform_indices = @transform_10, window_bounds = array<i64: 72, 128>}]} {
    %c256_i32 = arith.constant 256 : i32
    %0 = arith.muli %arg1, %c256_i32 : i32
    %1 = tpu.assume_multiple %0, 256 : i32
    %2 = tpu.iota {dimensions = array<i32: 1>} : vector<256x72xi32>
    %c0 = arith.constant 0 : index
    %c0_0 = arith.constant 0 : index
    %3 = vector.load %arg4[%c0, %c0_0] : memref<256x1xi32, #tpu.memory_space<vmem>>, vector<256x1xi32>
    %4 = vector.broadcast %3 : vector<256x1xi32> to vector<256x72xi32>
    %5 = arith.cmpi eq, %2, %4 : vector<256x72xi32>
    %6 = arith.extui %5 : vector<256x72xi1> to vector<256x72xi32>
    %7 = arith.sitofp %6 : vector<256x72xi32> to vector<256x72xf32>
    %c0_1 = arith.constant 0 : index
    %c0_2 = arith.constant 0 : index
    %8 = vector.load %arg3[%c0_1, %c0_2] : memref<256x1xi32, #tpu.memory_space<vmem>>, vector<256x1xi32>
    %9 = vector.broadcast %8 : vector<256x1xi32> to vector<256x72xi32>
    %10 = arith.cmpi eq, %2, %9 : vector<256x72xi32>
    %11 = arith.extui %10 : vector<256x72xi1> to vector<256x72xi32>
    %12 = arith.sitofp %11 : vector<256x72xi32> to vector<256x72xf32>
    %c0_i32 = arith.constant 0 : i32
    %13 = arith.cmpi eq, %arg0, %c0_i32 : i32
    %c0_i32_3 = arith.constant 0 : i32
    %14 = arith.cmpi eq, %arg1, %c0_i32_3 : i32
    %15 = arith.andi %13, %14 : i1
    %16 = arith.extui %15 : i1 to i32
    %c0_i32_4 = arith.constant 0 : i32
    %17 = arith.cmpi ne, %16, %c0_i32_4 : i32
    scf.if %17 {
      %c0_8 = arith.constant 0 : index
      %c0_9 = arith.constant 0 : index
      %24 = vector.load %arg6[%c0_8, %c0_9] : memref<72x128xf32, #tpu.memory_space<vmem>>, vector<72x128xf32>
      %c0_10 = arith.constant 0 : index
      %c0_11 = arith.constant 0 : index
      %25 = vector.load %arg7[%c0_10, %c0_11] : memref<128x384xf32, #tpu.memory_space<vmem>>, vector<128x384xf32>
      %cst = arith.constant dense<0.000000e+00> : vector<72x384xf32>
      %26 = tpu.matmul %24, %25, %cst {dimension_numbers = #tpu.dot_dimension_numbers<[1], [0], [0], [1], [0, 0, 1, 1], [], []>} : vector<72x128xf32>, vector<128x384xf32>, vector<72x384xf32> -> vector<72x384xf32>
      %c0_12 = arith.constant 0 : index
      %c0_13 = arith.constant 0 : index
      %27 = vector.load %arg8[%c0_12, %c0_13] : memref<1x384xf32, #tpu.memory_space<vmem>>, vector<1x384xf32>
      %28 = vector.broadcast %27 : vector<1x384xf32> to vector<72x384xf32>
      %29 = arith.addf %26, %28 : vector<72x384xf32>
      %c0_14 = arith.constant 0 : index
      %c0_15 = arith.constant 0 : index
      %30 = vector.load %arg14[%c0_14, %c0_15] : memref<72x384xf32, #tpu.memory_space<vmem>>, vector<72x384xf32>
      tpu.vector_store %arg14[%c0_14, %c0_15], %29 {strides = array<i32>} : memref<72x384xf32, #tpu.memory_space<vmem>>, vector<72x384xf32>,
      %cst_16 = arith.constant -1.000000e+30 : f32
      %31 = vector.broadcast %cst_16 : f32 to vector<72x128xf32>
      %c0_17 = arith.constant 0 : index
      %c0_18 = arith.constant 0 : index
      %32 = vector.load %arg15[%c0_17, %c0_18] : memref<72x128xf32, #tpu.memory_space<vmem>>, vector<72x128xf32>
      tpu.vector_store %arg15[%c0_17, %c0_18], %31 {strides = array<i32>} : memref<72x128xf32, #tpu.memory_space<vmem>>, vector<72x128xf32>,
      %cst_19 = arith.constant 0.000000e+00 : f32
      %33 = vector.broadcast %cst_19 : f32 to vector<72x128xf32>
      %c0_20 = arith.constant 0 : index
      %c0_21 = arith.constant 0 : index
      %34 = vector.load %arg16[%c0_20, %c0_21] : memref<72x128xf32, #tpu.memory_space<vmem>>, vector<72x128xf32>
      tpu.vector_store %arg16[%c0_20, %c0_21], %33 {strides = array<i32>} : memref<72x128xf32, #tpu.memory_space<vmem>>, vector<72x128xf32>,
      %cst_22 = arith.constant 0.000000e+00 : f32
      %35 = vector.broadcast %cst_22 : f32 to vector<72x128xf32>
      %c0_23 = arith.constant 0 : index
      %c0_24 = arith.constant 0 : index
      %36 = vector.load %arg17[%c0_23, %c0_24] : memref<72x128xf32, #tpu.memory_space<vmem>>, vector<72x128xf32>
      tpu.vector_store %arg17[%c0_23, %c0_24], %35 {strides = array<i32>} : memref<72x128xf32, #tpu.memory_space<vmem>>, vector<72x128xf32>,
    } else {
    }
    %c0_i32_5 = arith.constant 0 : i32
    %18 = arith.cmpi eq, %arg0, %c0_i32_5 : i32
    %19 = arith.extui %18 : i1 to i32
    %c0_i32_6 = arith.constant 0 : i32
    %20 = arith.cmpi ne, %19, %c0_i32_6 : i32
    scf.if %20 {
      %c0_8 = arith.constant 0 : index
      %c0_9 = arith.constant 0 : index
      %24 = vector.load %arg14[%c0_8, %c0_9] : memref<72x384xf32, #tpu.memory_space<vmem>>, vector<72x128xf32>
      %cst = arith.constant dense<0.000000e+00> : vector<256x128xf32>
      %25 = tpu.matmul %7, %24, %cst {dimension_numbers = #tpu.dot_dimension_numbers<[1], [0], [0], [1], [0, 0, 1, 1], [], []>} : vector<256x72xf32>, vector<72x128xf32>, vector<256x128xf32> -> vector<256x128xf32>
      %c0_10 = arith.constant 0 : index
      %c256 = arith.constant 256 : index
      %26 = vector.load %arg14[%c0_10, %c256] : memref<72x384xf32, #tpu.memory_space<vmem>>, vector<72x128xf32>
      %cst_11 = arith.constant dense<0.000000e+00> : vector<256x128xf32>
      %27 = tpu.matmul %12, %26, %cst_11 {dimension_numbers = #tpu.dot_dimension_numbers<[1], [0], [0], [1], [0, 0, 1, 1], [], []>} : vector<256x72xf32>, vector<72x128xf32>, vector<256x128xf32> -> vector<256x128xf32>
      %28 = arith.mulf %25, %27 : vector<256x128xf32>
      %c0_12 = arith.constant 0 : index
      %c0_13 = arith.constant 0 : index
      %29 = vector.load %arg11[%c0_12, %c0_13] : memref<128x128xf32, #tpu.memory_space<vmem>>, vector<128x128xf32>
      %cst_14 = arith.constant dense<0.000000e+00> : vector<256x128xf32>
      %30 = tpu.matmul %28, %29, %cst_14 {dimension_numbers = #tpu.dot_dimension_numbers<[1], [0], [0], [1], [0, 0, 1, 1], [], []>} : vector<256x128xf32>, vector<128x128xf32>, vector<256x128xf32> -> vector<256x128xf32>
      %31 = arith.index_cast %1 : i32 to index
      %c0_15 = arith.constant 0 : index
      %32 = vector.load %arg18[%31, %c0_15] : memref<256x128xf32, #tpu.memory_space<vmem>>, vector<256x128xf32>
      tpu.vector_store %arg18[%31, %c0_15], %30 {strides = array<i32>} : memref<256x128xf32, #tpu.memory_space<vmem>>, vector<256x128xf32>,
      %c0_i32_16 = arith.constant 0 : i32
      %c32_i32 = arith.constant 32 : i32
      %33 = arith.addi %c0_i32_16, %c32_i32 : i32
      %c1_i32_17 = arith.constant 1 : i32
      scf.for %arg19 = %c0_i32_16 to %33 step %c1_i32_17  : i32 {
        %c1_i32_19 = arith.constant 1 : i32
        %34 = arith.muli %arg19, %c1_i32_19 : i32
        %c0_i32_20 = arith.constant 0 : i32
        %35 = arith.addi %c0_i32_20, %34 : i32
        %c8_i32 = arith.constant 8 : i32
        %36 = arith.muli %35, %c8_i32 : i32
        %37 = arith.addi %1, %36 : i32
        %c0_i32_21 = arith.constant 0 : i32
        %38 = arith.addi %37, %c0_i32_21 : i32
        %39 = arith.index_cast %38 : i32 to index
        %40 = memref.load %arg2[%39] : memref<256xi32, #tpu.memory_space<smem>>
        %41 = arith.index_cast %40 : i32 to index
        %c0_22 = arith.constant 0 : index
        %42 = vector.load %arg15[%41, %c0_22] : memref<72x128xf32, #tpu.memory_space<vmem>>, vector<1x128xf32>
        %43 = arith.index_cast %38 : i32 to index
        %c0_23 = arith.constant 0 : index
        %44 = vector.load %arg18[%43, %c0_23] : memref<256x128xf32, #tpu.memory_space<vmem>>, vector<1x128xf32>
        %45 = arith.maximumf %42, %44 : vector<1x128xf32>
        %46 = arith.index_cast %40 : i32 to index
        %c0_24 = arith.constant 0 : index
        %47 = vector.load %arg15[%46, %c0_24] : memref<72x128xf32, #tpu.memory_space<vmem>>, vector<1x128xf32>
        tpu.vector_store %arg15[%46, %c0_24], %45 {strides = array<i32>} : memref<72x128xf32, #tpu.memory_space<vmem>>, vector<1x128xf32>,
        %c8_i32_25 = arith.constant 8 : i32
        %48 = arith.muli %35, %c8_i32_25 : i32
        %49 = arith.addi %1, %48 : i32
        %c1_i32_26 = arith.constant 1 : i32
        %50 = arith.addi %49, %c1_i32_26 : i32
        %51 = arith.index_cast %50 : i32 to index
        %52 = memref.load %arg2[%51] : memref<256xi32, #tpu.memory_space<smem>>
        %53 = arith.index_cast %52 : i32 to index
        %c0_27 = arith.constant 0 : index
        %54 = vector.load %arg15[%53, %c0_27] : memref<72x128xf32, #tpu.memory_space<vmem>>, vector<1x128xf32>
        %55 = arith.index_cast %50 : i32 to index
        %c0_28 = arith.constant 0 : index
        %56 = vector.load %arg18[%55, %c0_28] : memref<256x128xf32, #tpu.memory_space<vmem>>, vector<1x128xf32>
        %57 = arith.maximumf %54, %56 : vector<1x128xf32>
        %58 = arith.index_cast %52 : i32 to index
        %c0_29 = arith.constant 0 : index
        %59 = vector.load %arg15[%58, %c0_29] : memref<72x128xf32, #tpu.memory_space<vmem>>, vector<1x128xf32>
        tpu.vector_store %arg15[%58, %c0_29], %57 {strides = array<i32>} : memref<72x128xf32, #tpu.memory_space<vmem>>, vector<1x128xf32>,
        %c8_i32_30 = arith.constant 8 : i32
        %60 = arith.muli %35, %c8_i32_30 : i32
        %61 = arith.addi %1, %60 : i32
        %c2_i32 = arith.constant 2 : i32
        %62 = arith.addi %61, %c2_i32 : i32
        %63 = arith.index_cast %62 : i32 to index
        %64 = memref.load %arg2[%63] : memref<256xi32, #tpu.memory_space<smem>>
        %65 = arith.index_cast %64 : i32 to index
        %c0_31 = arith.constant 0 : index
        %66 = vector.load %arg15[%65, %c0_31] : memref<72x128xf32, #tpu.memory_space<vmem>>, vector<1x128xf32>
        %67 = arith.index_cast %62 : i32 to index
        %c0_32 = arith.constant 0 : index
        %68 = vector.load %arg18[%67, %c0_32] : memref<256x128xf32, #tpu.memory_space<vmem>>, vector<1x128xf32>
        %69 = arith.maximumf %66, %68 : vector<1x128xf32>
        %70 = arith.index_cast %64 : i32 to index
        %c0_33 = arith.constant 0 : index
        %71 = vector.load %arg15[%70, %c0_33] : memref<72x128xf32, #tpu.memory_space<vmem>>, vector<1x128xf32>
        tpu.vector_store %arg15[%70, %c0_33], %69 {strides = array<i32>} : memref<72x128xf32, #tpu.memory_space<vmem>>, vector<1x128xf32>,
        %c8_i32_34 = arith.constant 8 : i32
        %72 = arith.muli %35, %c8_i32_34 : i32
        %73 = arith.addi %1, %72 : i32
        %c3_i32 = arith.constant 3 : i32
        %74 = arith.addi %73, %c3_i32 : i32
        %75 = arith.index_cast %74 : i32 to index
        %76 = memref.load %arg2[%75] : memref<256xi32, #tpu.memory_space<smem>>
        %77 = arith.index_cast %76 : i32 to index
        %c0_35 = arith.constant 0 : index
        %78 = vector.load %arg15[%77, %c0_35] : memref<72x128xf32, #tpu.memory_space<vmem>>, vector<1x128xf32>
        %79 = arith.index_cast %74 : i32 to index
        %c0_36 = arith.constant 0 : index
        %80 = vector.load %arg18[%79, %c0_36] : memref<256x128xf32, #tpu.memory_space<vmem>>, vector<1x128xf32>
        %81 = arith.maximumf %78, %80 : vector<1x128xf32>
        %82 = arith.index_cast %76 : i32 to index
        %c0_37 = arith.constant 0 : index
        %83 = vector.load %arg15[%82, %c0_37] : memref<72x128xf32, #tpu.memory_space<vmem>>, vector<1x128xf32>
        tpu.vector_store %arg15[%82, %c0_37], %81 {strides = array<i32>} : memref<72x128xf32, #tpu.memory_space<vmem>>, vector<1x128xf32>,
        %c8_i32_38 = arith.constant 8 : i32
        %84 = arith.muli %35, %c8_i32_38 : i32
        %85 = arith.addi %1, %84 : i32
        %c4_i32 = arith.constant 4 : i32
        %86 = arith.addi %85, %c4_i32 : i32
        %87 = arith.index_cast %86 : i32 to index
        %88 = memref.load %arg2[%87] : memref<256xi32, #tpu.memory_space<smem>>
        %89 = arith.index_cast %88 : i32 to index
        %c0_39 = arith.constant 0 : index
        %90 = vector.load %arg15[%89, %c0_39] : memref<72x128xf32, #tpu.memory_space<vmem>>, vector<1x128xf32>
        %91 = arith.index_cast %86 : i32 to index
        %c0_40 = arith.constant 0 : index
        %92 = vector.load %arg18[%91, %c0_40] : memref<256x128xf32, #tpu.memory_space<vmem>>, vector<1x128xf32>
        %93 = arith.maximumf %90, %92 : vector<1x128xf32>
        %94 = arith.index_cast %88 : i32 to index
        %c0_41 = arith.constant 0 : index
        %95 = vector.load %arg15[%94, %c0_41] : memref<72x128xf32, #tpu.memory_space<vmem>>, vector<1x128xf32>
        tpu.vector_store %arg15[%94, %c0_41], %93 {strides = array<i32>} : memref<72x128xf32, #tpu.memory_space<vmem>>, vector<1x128xf32>,
        %c8_i32_42 = arith.constant 8 : i32
        %96 = arith.muli %35, %c8_i32_42 : i32
        %97 = arith.addi %1, %96 : i32
        %c5_i32 = arith.constant 5 : i32
        %98 = arith.addi %97, %c5_i32 : i32
        %99 = arith.index_cast %98 : i32 to index
        %100 = memref.load %arg2[%99] : memref<256xi32, #tpu.memory_space<smem>>
        %101 = arith.index_cast %100 : i32 to index
        %c0_43 = arith.constant 0 : index
        %102 = vector.load %arg15[%101, %c0_43] : memref<72x128xf32, #tpu.memory_space<vmem>>, vector<1x128xf32>
        %103 = arith.index_cast %98 : i32 to index
        %c0_44 = arith.constant 0 : index
        %104 = vector.load %arg18[%103, %c0_44] : memref<256x128xf32, #tpu.memory_space<vmem>>, vector<1x128xf32>
        %105 = arith.maximumf %102, %104 : vector<1x128xf32>
        %106 = arith.index_cast %100 : i32 to index
        %c0_45 = arith.constant 0 : index
        %107 = vector.load %arg15[%106, %c0_45] : memref<72x128xf32, #tpu.memory_space<vmem>>, vector<1x128xf32>
        tpu.vector_store %arg15[%106, %c0_45], %105 {strides = array<i32>} : memref<72x128xf32, #tpu.memory_space<vmem>>, vector<1x128xf32>,
        %c8_i32_46 = arith.constant 8 : i32
        %108 = arith.muli %35, %c8_i32_46 : i32
        %109 = arith.addi %1, %108 : i32
        %c6_i32 = arith.constant 6 : i32
        %110 = arith.addi %109, %c6_i32 : i32
        %111 = arith.index_cast %110 : i32 to index
        %112 = memref.load %arg2[%111] : memref<256xi32, #tpu.memory_space<smem>>
        %113 = arith.index_cast %112 : i32 to index
        %c0_47 = arith.constant 0 : index
        %114 = vector.load %arg15[%113, %c0_47] : memref<72x128xf32, #tpu.memory_space<vmem>>, vector<1x128xf32>
        %115 = arith.index_cast %110 : i32 to index
        %c0_48 = arith.constant 0 : index
        %116 = vector.load %arg18[%115, %c0_48] : memref<256x128xf32, #tpu.memory_space<vmem>>, vector<1x128xf32>
        %117 = arith.maximumf %114, %116 : vector<1x128xf32>
        %118 = arith.index_cast %112 : i32 to index
        %c0_49 = arith.constant 0 : index
        %119 = vector.load %arg15[%118, %c0_49] : memref<72x128xf32, #tpu.memory_space<vmem>>, vector<1x128xf32>
        tpu.vector_store %arg15[%118, %c0_49], %117 {strides = array<i32>} : memref<72x128xf32, #tpu.memory_space<vmem>>, vector<1x128xf32>,
        %c8_i32_50 = arith.constant 8 : i32
        %120 = arith.muli %35, %c8_i32_50 : i32
        %121 = arith.addi %1, %120 : i32
        %c7_i32 = arith.constant 7 : i32
        %122 = arith.addi %121, %c7_i32 : i32
        %123 = arith.index_cast %122 : i32 to index
        %124 = memref.load %arg2[%123] : memref<256xi32, #tpu.memory_space<smem>>
        %125 = arith.index_cast %124 : i32 to index
        %c0_51 = arith.constant 0 : index
        %126 = vector.load %arg15[%125, %c0_51] : memref<72x128xf32, #tpu.memory_space<vmem>>, vector<1x128xf32>
        %127 = arith.index_cast %122 : i32 to index
        %c0_52 = arith.constant 0 : index
        %128 = vector.load %arg18[%127, %c0_52] : memref<256x128xf32, #tpu.memory_space<vmem>>, vector<1x128xf32>
        %129 = arith.maximumf %126, %128 : vector<1x128xf32>
        %130 = arith.index_cast %124 : i32 to index
        %c0_53 = arith.constant 0 : index
        %131 = vector.load %arg15[%130, %c0_53] : memref<72x128xf32, #tpu.memory_space<vmem>>, vector<1x128xf32>
        tpu.vector_store %arg15[%130, %c0_53], %129 {strides = array<i32>} : memref<72x128xf32, #tpu.memory_space<vmem>>, vector<1x128xf32>,
      }
      %c32_i32_18 = arith.constant 32 : i32
    } else {
    }
    %c1_i32 = arith.constant 1 : i32
    %21 = arith.cmpi eq, %arg0, %c1_i32 : i32
    %22 = arith.extui %21 : i1 to i32
    %c0_i32_7 = arith.constant 0 : i32
    %23 = arith.cmpi ne, %22, %c0_i32_7 : i32
    scf.if %23 {
      %c0_8 = arith.constant 0 : index
      %c128 = arith.constant 128 : index
      %24 = vector.load %arg14[%c0_8, %c128] : memref<72x384xf32, #tpu.memory_space<vmem>>, vector<72x128xf32>
      %cst = arith.constant dense<0.000000e+00> : vector<256x128xf32>
      %25 = tpu.matmul %7, %24, %cst {dimension_numbers = #tpu.dot_dimension_numbers<[1], [0], [0], [1], [0, 0, 1, 1], [], []>} : vector<256x72xf32>, vector<72x128xf32>, vector<256x128xf32> -> vector<256x128xf32>
      %c0_9 = arith.constant 0 : index
      %c0_10 = arith.constant 0 : index
      %26 = vector.load %arg15[%c0_9, %c0_10] : memref<72x128xf32, #tpu.memory_space<vmem>>, vector<72x128xf32>
      %cst_11 = arith.constant dense<0.000000e+00> : vector<256x128xf32>
      %27 = tpu.matmul %12, %26, %cst_11 {dimension_numbers = #tpu.dot_dimension_numbers<[1], [0], [0], [1], [0, 0, 1, 1], [], []>} : vector<256x72xf32>, vector<72x128xf32>, vector<256x128xf32> -> vector<256x128xf32>
      %28 = arith.index_cast %1 : i32 to index
      %c0_12 = arith.constant 0 : index
      %29 = vector.load %arg18[%28, %c0_12] : memref<256x128xf32, #tpu.memory_space<vmem>>, vector<256x128xf32>
      %30 = arith.subf %29, %27 : vector<256x128xf32>
      %31 = math.exp %30 : vector<256x128xf32>
      %c0_13 = arith.constant 0 : index
      %c0_14 = arith.constant 0 : index
      %32 = vector.load %arg12[%c0_13, %c0_14] : memref<128x128xf32, #tpu.memory_space<vmem>>, vector<128x128xf32>
      %cst_15 = arith.constant dense<0.000000e+00> : vector<256x128xf32>
      %33 = tpu.matmul %31, %32, %cst_15 {dimension_numbers = #tpu.dot_dimension_numbers<[1], [0], [0], [1], [0, 0, 1, 1], [], []>} : vector<256x128xf32>, vector<128x128xf32>, vector<256x128xf32> -> vector<256x128xf32>
      %34 = tpu.iota {dimensions = array<i32: 0>} : vector<72x256xi32>
      %c0_16 = arith.constant 0 : index
      %c0_17 = arith.constant 0 : index
      %35 = vector.load %arg5[%c0_16, %c0_17] : memref<1x256xi32, #tpu.memory_space<vmem>>, vector<1x256xi32>
      %36 = vector.broadcast %35 : vector<1x256xi32> to vector<72x256xi32>
      %37 = arith.cmpi eq, %34, %36 : vector<72x256xi32>
      %38 = arith.extui %37 : vector<72x256xi1> to vector<72x256xi32>
      %39 = arith.sitofp %38 : vector<72x256xi32> to vector<72x256xf32>
      %c0_18 = arith.constant 0 : index
      %c0_19 = arith.constant 0 : index
      %40 = vector.load %arg16[%c0_18, %c0_19] : memref<72x128xf32, #tpu.memory_space<vmem>>, vector<72x128xf32>
      %cst_20 = arith.constant dense<0.000000e+00> : vector<72x128xf32>
      %41 = tpu.matmul %39, %31, %cst_20 {dimension_numbers = #tpu.dot_dimension_numbers<[1], [0], [0], [1], [0, 0, 1, 1], [], []>} : vector<72x256xf32>, vector<256x128xf32>, vector<72x128xf32> -> vector<72x128xf32>
      %42 = arith.addf %40, %41 : vector<72x128xf32>
      %c0_21 = arith.constant 0 : index
      %c0_22 = arith.constant 0 : index
      %43 = vector.load %arg16[%c0_21, %c0_22] : memref<72x128xf32, #tpu.memory_space<vmem>>, vector<72x128xf32>
      tpu.vector_store %arg16[%c0_21, %c0_22], %42 {strides = array<i32>} : memref<72x128xf32, #tpu.memory_space<vmem>>, vector<72x128xf32>,
      %c0_23 = arith.constant 0 : index
      %c0_24 = arith.constant 0 : index
      %44 = vector.load %arg17[%c0_23, %c0_24] : memref<72x128xf32, #tpu.memory_space<vmem>>, vector<72x128xf32>
      %45 = arith.mulf %25, %33 : vector<256x128xf32>
      %cst_25 = arith.constant dense<0.000000e+00> : vector<72x128xf32>
      %46 = tpu.matmul %39, %45, %cst_25 {dimension_numbers = #tpu.dot_dimension_numbers<[1], [0], [0], [1], [0, 0, 1, 1], [], []>} : vector<72x256xf32>, vector<256x128xf32>, vector<72x128xf32> -> vector<72x128xf32>
      %47 = arith.addf %44, %46 : vector<72x128xf32>
      %c0_26 = arith.constant 0 : index
      %c0_27 = arith.constant 0 : index
      %48 = vector.load %arg17[%c0_26, %c0_27] : memref<72x128xf32, #tpu.memory_space<vmem>>, vector<72x128xf32>
      tpu.vector_store %arg17[%c0_26, %c0_27], %47 {strides = array<i32>} : memref<72x128xf32, #tpu.memory_space<vmem>>, vector<72x128xf32>,
      %c0_i32_28 = arith.constant 0 : i32
      %49 = arith.cmpi eq, %arg1, %c0_i32_28 : i32
      %50 = arith.extui %49 : i1 to i32
      %c0_i32_29 = arith.constant 0 : i32
      %51 = arith.cmpi ne, %50, %c0_i32_29 : i32
      scf.if %51 {
        %c0_30 = arith.constant 0 : index
        %c0_31 = arith.constant 0 : index
        %52 = vector.load %arg16[%c0_30, %c0_31] : memref<72x128xf32, #tpu.memory_space<vmem>>, vector<72x128xf32>
        %c0_32 = arith.constant 0 : index
        %c0_33 = arith.constant 0 : index
        %53 = vector.load %arg12[%c0_32, %c0_33] : memref<128x128xf32, #tpu.memory_space<vmem>>, vector<128x128xf32>
        %cst_34 = arith.constant dense<0.000000e+00> : vector<72x128xf32>
        %54 = tpu.matmul %52, %53, %cst_34 {dimension_numbers = #tpu.dot_dimension_numbers<[1], [0], [0], [1], [0, 0, 1, 1], [], []>} : vector<72x128xf32>, vector<128x128xf32>, vector<72x128xf32> -> vector<72x128xf32>
        %c0_35 = arith.constant 0 : index
        %c0_36 = arith.constant 0 : index
        %55 = vector.load %arg17[%c0_35, %c0_36] : memref<72x128xf32, #tpu.memory_space<vmem>>, vector<72x128xf32>
        %cst_37 = arith.constant 1.000000e-16 : f32
        %56 = vector.broadcast %cst_37 : f32 to vector<72x128xf32>
        %57 = arith.addf %54, %56 : vector<72x128xf32>
        %58 = tpu.reciprocal %57 : vector<72x128xf32> -> vector<72x128xf32>
        %59 = arith.mulf %55, %58 : vector<72x128xf32>
        %c0_38 = arith.constant 0 : index
        %c0_39 = arith.constant 0 : index
        %60 = vector.load %arg9[%c0_38, %c0_39] : memref<128x128xf32, #tpu.memory_space<vmem>>, vector<128x128xf32>
        %cst_40 = arith.constant dense<0.000000e+00> : vector<72x128xf32>
        %61 = tpu.matmul %59, %60, %cst_40 {dimension_numbers = #tpu.dot_dimension_numbers<[1], [0], [0], [1], [0, 0, 1, 1], [], []>} : vector<72x128xf32>, vector<128x128xf32>, vector<72x128xf32> -> vector<72x128xf32>
        %c0_41 = arith.constant 0 : index
        %c0_42 = arith.constant 0 : index
        %62 = vector.load %arg10[%c0_41, %c0_42] : memref<1x128xf32, #tpu.memory_space<vmem>>, vector<1x128xf32>
        %63 = vector.broadcast %62 : vector<1x128xf32> to vector<72x128xf32>
        %64 = arith.addf %61, %63 : vector<72x128xf32>
        %c0_43 = arith.constant 0 : index
        %c0_44 = arith.constant 0 : index
        %65 = vector.load %arg13[%c0_43, %c0_44] : memref<72x128xf32, #tpu.memory_space<vmem>>, vector<72x128xf32>
        tpu.vector_store %arg13[%c0_43, %c0_44], %64 {strides = array<i32>} : memref<72x128xf32, #tpu.memory_space<vmem>>, vector<72x128xf32>,
      } else {
      }
    } else {
    }
    return
  }
  func.func @transform_0(%arg0: i32, %arg1: i32, %arg2: memref<256xi32, #tpu.memory_space<smem>>) -> (i32, i32) {
    %c0_i32 = arith.constant 0 : i32
    %c0_i32_0 = arith.constant 0 : i32
    return %arg1, %c0_i32 : i32, i32
  }
  func.func @transform_1(%arg0: i32, %arg1: i32, %arg2: memref<256xi32, #tpu.memory_space<smem>>) -> (i32, i32) {
    %c0_i32 = arith.constant 0 : i32
    %c0_i32_0 = arith.constant 0 : i32
    return %arg1, %c0_i32 : i32, i32
  }
  func.func @transform_2(%arg0: i32, %arg1: i32, %arg2: memref<256xi32, #tpu.memory_space<smem>>) -> (i32, i32) {
    %c0_i32 = arith.constant 0 : i32
    %c0_i32_0 = arith.constant 0 : i32
    return %c0_i32, %arg1 : i32, i32
  }
  func.func @transform_3(%arg0: i32, %arg1: i32, %arg2: memref<256xi32, #tpu.memory_space<smem>>) -> (i32, i32) {
    %c0_i32 = arith.constant 0 : i32
    %c0_i32_0 = arith.constant 0 : i32
    %c0_i32_1 = arith.constant 0 : i32
    return %c0_i32, %c0_i32_0 : i32, i32
  }
  func.func @transform_4(%arg0: i32, %arg1: i32, %arg2: memref<256xi32, #tpu.memory_space<smem>>) -> (i32, i32) {
    %c0_i32 = arith.constant 0 : i32
    %c0_i32_0 = arith.constant 0 : i32
    %c0_i32_1 = arith.constant 0 : i32
    return %c0_i32, %c0_i32_0 : i32, i32
  }
  func.func @transform_5(%arg0: i32, %arg1: i32, %arg2: memref<256xi32, #tpu.memory_space<smem>>) -> (i32, i32) {
    %c0_i32 = arith.constant 0 : i32
    %c0_i32_0 = arith.constant 0 : i32
    %c0_i32_1 = arith.constant 0 : i32
    return %c0_i32, %c0_i32_0 : i32, i32
  }
  func.func @transform_6(%arg0: i32, %arg1: i32, %arg2: memref<256xi32, #tpu.memory_space<smem>>) -> (i32, i32) {
    %c0_i32 = arith.constant 0 : i32
    %c0_i32_0 = arith.constant 0 : i32
    %c0_i32_1 = arith.constant 0 : i32
    return %c0_i32, %c0_i32_0 : i32, i32
  }
  func.func @transform_7(%arg0: i32, %arg1: i32, %arg2: memref<256xi32, #tpu.memory_space<smem>>) -> (i32, i32) {
    %c0_i32 = arith.constant 0 : i32
    %c0_i32_0 = arith.constant 0 : i32
    %c0_i32_1 = arith.constant 0 : i32
    return %c0_i32, %c0_i32_0 : i32, i32
  }
  func.func @transform_8(%arg0: i32, %arg1: i32, %arg2: memref<256xi32, #tpu.memory_space<smem>>) -> (i32, i32) {
    %c0_i32 = arith.constant 0 : i32
    %c0_i32_0 = arith.constant 0 : i32
    %c0_i32_1 = arith.constant 0 : i32
    return %c0_i32, %c0_i32_0 : i32, i32
  }
  func.func @transform_9(%arg0: i32, %arg1: i32, %arg2: memref<256xi32, #tpu.memory_space<smem>>) -> (i32, i32) {
    %c0_i32 = arith.constant 0 : i32
    %c0_i32_0 = arith.constant 0 : i32
    %c0_i32_1 = arith.constant 0 : i32
    return %c0_i32, %c0_i32_0 : i32, i32
  }
  func.func @transform_10(%arg0: i32, %arg1: i32, %arg2: memref<256xi32, #tpu.memory_space<smem>>) -> (i32, i32) {
    %c0_i32 = arith.constant 0 : i32
    %c0_i32_0 = arith.constant 0 : i32
    %c0_i32_1 = arith.constant 0 : i32
    return %c0_i32, %c0_i32_0 : i32, i32
  }
}

</mosaic_0001>

<bundles_post_ra>
// kernel: tpu_custom_call.1
= control target key start
LH: loop header
LB: loop body
LE: loop exit
PB: predicated region body
PF: predicated region fallthrough
CT: control target
= control target key end

     0   :  { %s4152_s20 = smov [#allocation8]   ;;  %s5828_s0 = inlined_call_operand.vmem [shape: s32[256], index: 0, kind: input, shape index: {}]   ;;  %s5829_s1 = inlined_call_operand.vmem [shape: s32[256,1], index: 1, kind: input, shape index: {}]   ;;  %s5830_s2 = inlined_call_operand.vmem [shape: s32[256,1], index: 2, kind: input, shape index: {}]   ;;  %s5831_s3 = inlined_call_operand.hbm [shape: s32[1,256], index: 3, kind: input, shape index: {}]   ;;  %s5832_s4 = inlined_call_operand.hbm [shape: f32[72,128], index: 4, kind: input, shape index: {}]   ;;  %s5833_s5 = inlined_call_operand.vmem [shape: f32[128,384], index: 5, kind: input, shape index: {}]   ;;  %s5834_s6 = inlined_call_operand.vmem [shape: f32[1,384], index: 6, kind: input, shape index: {}]   ;;  %s5835_s7 = inlined_call_operand.vmem [shape: f32[128,128], index: 7, kind: input, shape index: {}]   ;;  %s5836_s8 = inlined_call_operand.vmem [shape: f32[1,128], index: 8, kind: input, shape index: {}]   ;;  %s5837_s9 = inlined_call_operand.hbm [shape: f32[128,128], index: 9, kind: input, shape index: {}]   ;;  %s5838_s10 = inlined_call_operand.hbm [shape: f32[128,128], index: 10, kind: input, shape index: {}]   ;;  %s5839_s11 = inlined_call_operand.hbm [shape: f32[72,128], index: 11, kind: output, shape index: {}]  }
   0x1   :  { %5844 = sst [smem:[#allocation47_spill]] %s5832_s4  ;;  %s17_s19 = sshll.u32 %s5828_s0, 4  ;;  %s18_s19 = int_to_ptr.vmem [resolvable:$true] %s17_s19 }
   0x2   :  { %20 = dma.vmem_to_smem %s18_s19, 32, %s4152_s20, [#allocation7] }
   0x3   :  { %4118 = dma.done.wait [#allocation7], 32 }
   0x4   :  { %4119 = vsyncadd [#allocation7], 4294967264 }
   0x5   :  { %23 = sfence }
   0x6   :  { %24 = vsyncpa [#allocation10], 0 }
   0x7   :  { %25 = vsyncpa [#allocation13], 0 }
   0x8   :  { %26 = vsyncpa [#allocation16], 0 }
   0x9   :  { %27 = vsyncpa [#allocation11], 0  ;;  %s4230_s21 = smov 0   ;;  %s4232_s22 = smov 0  }
   0xa   :  { %s4234_s23 = smov 0  }
   0xb LB: > { %s5845_s4 = sld [smem:[#allocation47_spill]]  ;;  %s5840_s26 = sadd.s32 4294967295, %s4146_s23   ;;  %s4146_s23 = sphi %s4234_s23, %s33_s23   ;;  %s4142_s22 = sphi %s4232_s22, %s5925_s22   ;;  %s4138_s21 = sphi %s4230_s21, %s5924_s21  }
   0xc   : > { %p3371_p0 = scmp.ge.s32.totalorder %s4146_s23, 1  ;;  %p296_p1 = scmp.lt.s32.totalorder %s4146_s23, 3 }
   0xd   : > { %p4253_p2 = scmp.eq.s32.totalorder %s5840_s26, 0  ;;  %s4153_s29 = smov [#allocation12]  }
   0xe   : > { %p4257_p3 = pnand %p3371_p0, %p296_p1  ;;  %s341_s30 = sshll.u32 %s4153_s29, 4  ;;  %s342_s30 = int_to_ptr.vmem [resolvable:$true] %s341_s30 }
   0xf   : > { %s45_s13 = sadd.s32 1, %s4142_s22  ;;  %s4154_s14 = smov 128  }
  0x10   : > { %p3786_p4 = pneg %p4257_p3  ;;  %p47_p6 = scmp.ge.s32.totalorder %s45_s13, 2 }
  0x11   : > { %s339_s25 = sshll.u32 %s5845_s4, 4  ;;  %s4155_s15 = smov 8   ;;  %s340_s25 = int_to_ptr.hbm [resolvable:$true] %s339_s25 }
  0x12   : > { %p4265_p5 = pnand %p4253_p2, %p3786_p4  ;;  %s5927_s13 = smov (%p47_p6, %s45_s13), 0 }
  0x13   : > { %5849 = sst [smem:[#allocation23_spill]] %s5927_s13  ;;  %s328_s18 = sshll.u32 %s5831_s3, 4  ;;  %s329_s18 = int_to_ptr.hbm [resolvable:$true] %s328_s18 }
  0x14   : > { %3792 = dma.hbm_to_vmem [thread:$0]  (!%p4265_p5), %s340_s25, 1152, %s342_s30, [#allocation13], %s4154_s14, %s4154_s14, %s4155_s15  }
  0x15   : > { %s4156_s19 = smov [#allocation9]   ;;  %s365_s29 = sshll.u32 %s5837_s9, 4  ;;  %s366_s29 = int_to_ptr.hbm [resolvable:$true] %s365_s29 }
  0x16   : > { %s330_s20 = sshll.u32 %s4156_s19, 4  ;;  %s4157_s26 = smov [#allocation14]   ;;  %s331_s20 = int_to_ptr.vmem [resolvable:$true] %s330_s20 }
  0x17   : > { %3789 = dma.hbm_to_vmem [thread:$0]  (!%p4265_p5), %s329_s18, 32, %s331_s20, [#allocation10]  }
  0x18   : > { %s367_s25 = sshll.u32 %s4157_s26, 4  ;;  %s379_s13 = sshll.u32 %s5838_s10, 4  ;;  %s368_s25 = int_to_ptr.vmem [resolvable:$true] %s367_s25  ;;  %s380_s13 = int_to_ptr.hbm [resolvable:$true] %s379_s13 }
  0x19   : > { %3795 = dma.hbm_to_vmem [thread:$0]  (!%p4265_p5), %s366_s29, 2048, %s368_s25, [#allocation13], %s4154_s14, %s4154_s14, %s4155_s15  }
  0x1a   : > { %s4158_s16 = smov [#allocation15]   ;;  %397 = sbr.rel (%p4257_p3) target bundleno = 2100 (0x834), region = 60 }
  0x1b   : > { %s381_s17 = sshll.u32 %s4158_s16, 4  ;;  %s382_s17 = int_to_ptr.vmem [resolvable:$true] %s381_s17 }
  0x1c   : > { %3798 = dma.hbm_to_vmem [thread:$0]  (!%p4265_p5), %s380_s13, 2048, %s382_s17, [#allocation16], %s4154_s14, %s4154_s14, %s4155_s15  }
  0x1f   : > { %4121 = dma.done.wait (%p4253_p2), [#allocation10], 32  }
  0x20   : > { %4123 = vsyncadd (%p4253_p2), [#allocation10], 4294967264 }
  0x21   : > { %4125 = dma.done.wait (%p4253_p2), [#allocation13], 3200  }
  0x22   : > { %4127 = vsyncadd (%p4253_p2), [#allocation13], 4294964096 }
  0x23   : > { %4129 = dma.done.wait (%p4253_p2), [#allocation16], 2048  }
  0x24   : > { %4131 = vsyncadd (%p4253_p2), [#allocation16], 4294965248  ;;  %v4159_v0 = vmov 0   ;;  %v471_v1 = vld [vmem:[%s5830_s2 + $0x20] sm:$0xff]  ;;  %v469_v2 = vld [vmem:[%s5830_s2 + $0x10] sm:$0xff]  ;;  %v5841_v36 = vlaneseq  ;;  %v4160_v40 = vmov 0.0  }
  0x25   : > { %3858 = vset.pattern.permute.xlu2 %v4159_v0  ;;  %3857 = vset.pattern.permute.xlu1 %v4159_v0  ;;  %v467_v3 = vld [vmem:[%s5830_s2] sm:$0xff]  ;;  %v472_v4 = vld [vmem:[%s5830_s2 + $0x28] sm:$0xff]  ;;  %v470_v5 = vld [vmem:[%s5830_s2 + $0x18] sm:$0xff]  ;;  %p915_p7 = scmp.eq.s32.totalorder %s4138_s21, 0 }
  0x26   : > { %3856 = vset.pattern.permute.xlu0 %v4159_v0  ;;  %512 = vperm.xlu2 %3858, %v471_v1   ;;  %v468_v6 = vld [vmem:[%s5830_s2 + $0x8] sm:$0xff]  ;;  %v475_v7 = vld [vmem:[%s5830_s2 + $0x40] sm:$0xff]  ;;  %v474_v8 = vld [vmem:[%s5830_s2 + $0x38] sm:$0xff]  ;;  %v4412_v38 = vand.u32 127, %v5841_v36 }
  0x27   : > { %506 = vperm.xlu1 %3857, %v469_v2   ;;  %500 = vperm.xlu0 %3856, %v467_v3   ;;  %v473_v9 = vld [vmem:[%s5830_s2 + $0x30] sm:$0xff]  ;;  %v478_v10 = vld [vmem:[%s5830_s2 + $0x58] sm:$0xff]  ;;  %v476_v12 = vld [vmem:[%s5830_s2 + $0x48] sm:$0xff] }
  0x28   : > { %v477_v11 = vld [vmem:[%s5830_s2 + $0x50] sm:$0xff]  ;;  %v480_v14 = vld [vmem:[%s5830_s2 + $0x68] sm:$0xff]  ;;  %v479_v15 = vld [vmem:[%s5830_s2 + $0x60] sm:$0xff] }
  0x29   : > { %v481_v13 = vld [vmem:[%s5830_s2 + $0x70] sm:$0xff]  ;;  %v484_v16 = vld [vmem:[%s5830_s2 + $0x88] sm:$0xff]  ;;  %v483_v17 = vld [vmem:[%s5830_s2 + $0x80] sm:$0xff] }
  0x2a   : > { %v482_v18 = vld [vmem:[%s5830_s2 + $0x78] sm:$0xff]  ;;  %v487_v19 = vld [vmem:[%s5830_s2 + $0xa0] sm:$0xff]  ;;  %v485_v21 = vld [vmem:[%s5830_s2 + $0x90] sm:$0xff] }
  0x2b   : > { %v486_v20 = vld [vmem:[%s5830_s2 + $0x98] sm:$0xff]  ;;  %v489_v23 = vld [vmem:[%s5830_s2 + $0xb0] sm:$0xff]  ;;  %v488_v24 = vld [vmem:[%s5830_s2 + $0xa8] sm:$0xff] }
  0x2c   : > { %v490_v22 = vld [vmem:[%s5830_s2 + $0xb8] sm:$0xff]  ;;  %v493_v25 = vld [vmem:[%s5830_s2 + $0xd0] sm:$0xff]  ;;  %v492_v26 = vld [vmem:[%s5830_s2 + $0xc8] sm:$0xff] }
  0x2d   : > { %v491_v27 = vld [vmem:[%s5830_s2 + $0xc0] sm:$0xff]  ;;  %v496_v28 = vld [vmem:[%s5830_s2 + $0xe8] sm:$0xff]  ;;  %v494_v30 = vld [vmem:[%s5830_s2 + $0xd8] sm:$0xff] }
  0x2e   : > { %515 = vperm.xlu2 %3858, %v472_v4   ;;  %v495_v29 = vld [vmem:[%s5830_s2 + $0xe0] sm:$0xff]  ;;  %v498_v32 = vld [vmem:[%s5830_s2 + $0xf8] sm:$0xff]  ;;  %v497_v33 = vld [vmem:[%s5830_s2 + $0xf0] sm:$0xff] }
  0x2f   : > { %509 = vperm.xlu1 %3857, %v470_v5   ;;  %503 = vperm.xlu0 %3856, %v468_v6   ;;  %v691_v31 = vld [vmem:[%s5829_s1] sm:$0xff]  ;;  %v694_v34 = vld [vmem:[%s5829_s1 + $0x18] sm:$0xff]  ;;  %v693_v35 = vld [vmem:[%s5829_s1 + $0x10] sm:$0xff] }
  0x30   : > { %v692_v37 = vld [vmem:[%s5829_s1 + $0x8] sm:$0xff]  ;;  %v697_v42 = vld [vmem:[%s5829_s1 + $0x30] sm:$0xff]  ;;  %v695_v44 = vld [vmem:[%s5829_s1 + $0x20] sm:$0xff] }
  0x31   : > { %v696_v43 = vld [vmem:[%s5829_s1 + $0x28] sm:$0xff]  ;;  %v699_v48 = vld [vmem:[%s5829_s1 + $0x40] sm:$0xff]  ;;  %v698_v49 = vld [vmem:[%s5829_s1 + $0x38] sm:$0xff] }
  0x32   : > { %v700_v47 = vld [vmem:[%s5829_s1 + $0x48] sm:$0xff]  ;;  %v703_v52 = vld [vmem:[%s5829_s1 + $0x60] sm:$0xff]  ;;  %v702_v53 = vld [vmem:[%s5829_s1 + $0x58] sm:$0xff] }
  0x33   : > { %v701_v54 = vld [vmem:[%s5829_s1 + $0x50] sm:$0xff]  ;;  %v706_v61 = vld [vmem:[%s5829_s1 + $0x78] sm:$0xff]  ;;  %v704_v63 = vld [vmem:[%s5829_s1 + $0x68] sm:$0xff] }
  0x34   : > { %v705_v62 = vld [vmem:[%s5829_s1 + $0x70] sm:$0xff] }
  0x35   : > { %v709_v6 = vld [vmem:[%s5829_s1 + $0x90] sm:$0xff] }
  0x36   : > { %524 = vperm.xlu2 %3858, %v475_v7   ;;  %v708_v7 = vld [vmem:[%s5829_s1 + $0x88] sm:$0xff] }
  0x37   : > { %521 = vperm.xlu1 %3857, %v474_v8   ;;  %518 = vperm.xlu0 %3856, %v473_v9   ;;  %v707_v8 = vld [vmem:[%s5829_s1 + $0x80] sm:$0xff] }
  0x3e   : > { %533 = vperm.xlu2 %3858, %v478_v10  }
  0x3f   : > { %530 = vperm.xlu1 %3857, %v477_v11   ;;  %527 = vperm.xlu0 %3856, %v476_v12  }
  0x46   : > { %542 = vperm.xlu2 %3858, %v481_v13  }
  0x47   : > { %539 = vperm.xlu1 %3857, %v480_v14   ;;  %536 = vperm.xlu0 %3856, %v479_v15   ;;  %v712_v15 = vld [vmem:[%s5829_s1 + $0xa8] sm:$0xff] }
  0x4e   : > { %551 = vperm.xlu2 %3858, %v484_v16   ;;  %v711_v16 = vld [vmem:[%s5829_s1 + $0xa0] sm:$0xff] }
  0x4f   : > { %548 = vperm.xlu1 %3857, %v483_v17   ;;  %545 = vperm.xlu0 %3856, %v482_v18   ;;  %v710_v17 = vld [vmem:[%s5829_s1 + $0x98] sm:$0xff] }
  0x56   : > { %560 = vperm.xlu2 %3858, %v487_v19  }
  0x57   : > { %557 = vperm.xlu1 %3857, %v486_v20   ;;  %554 = vperm.xlu0 %3856, %v485_v21  }
  0x5e   : > { %569 = vperm.xlu2 %3858, %v490_v22  }
  0x5f   : > { %566 = vperm.xlu1 %3857, %v489_v23   ;;  %563 = vperm.xlu0 %3856, %v488_v24   ;;  %v715_v24 = vld [vmem:[%s5829_s1 + $0xc0] sm:$0xff] }
  0x66   : > { %578 = vperm.xlu2 %3858, %v493_v25   ;;  %v714_v25 = vld [vmem:[%s5829_s1 + $0xb8] sm:$0xff] }
  0x67   : > { %575 = vperm.xlu1 %3857, %v492_v26   ;;  %572 = vperm.xlu0 %3856, %v491_v27   ;;  %v713_v26 = vld [vmem:[%s5829_s1 + $0xb0] sm:$0xff] }
  0x6e   : > { %587 = vperm.xlu2 %3858, %v496_v28  }
  0x6f   : > { %584 = vperm.xlu1 %3857, %v495_v29   ;;  %581 = vperm.xlu0 %3856, %v494_v30  }
  0x76   : > { %724 = vperm.xlu2 %3858, %v691_v31  }
  0x77   : > { %593 = vperm.xlu1 %3857, %v498_v32   ;;  %590 = vperm.xlu0 %3856, %v497_v33   ;;  %v718_v33 = vld [vmem:[%s5829_s1 + $0xd8] sm:$0xff] }
  0x7e   : > { %733 = vperm.xlu2 %3858, %v694_v34   ;;  %v717_v34 = vld [vmem:[%s5829_s1 + $0xd0] sm:$0xff] }
  0x7f   : > { %730 = vperm.xlu1 %3857, %v693_v35   ;;  %727 = vperm.xlu0 %3856, %v692_v37   ;;  %v716_v35 = vld [vmem:[%s5829_s1 + $0xc8] sm:$0xff] }
  0x80   : > { %v513_v39 = vpop.permute.xlu2 %512 }
  0x81   : > { %vm599_vm0 = vcmp.eq.s32.totalorder %v4412_v38, %v513_v39 }
  0x82   : > { %v4416_v41 = vsel %vm599_vm0, 1.0, %v4160_v40 }
  0x86   : > { %742 = vperm.xlu2 %3858, %v697_v42  }
  0x87   : > { %739 = vperm.xlu1 %3857, %v696_v43   ;;  %736 = vperm.xlu0 %3856, %v695_v44  }
  0x88   : > { %v516_v45 = vpop.permute.xlu2 %515 }
  0x89   : > { %vm600_vm1 = vcmp.eq.s32.totalorder %v4412_v38, %v516_v45 }
  0x8a   : > { %v4429_v46 = vsel %vm600_vm1, 1.0, %v4160_v40 }
  0x8e   : > { %751 = vperm.xlu2 %3858, %v700_v47   ;;  %v721_v47 = vld [vmem:[%s5829_s1 + $0xf0] sm:$0xff] }
  0x8f   : > { %748 = vperm.xlu1 %3857, %v699_v48   ;;  %745 = vperm.xlu0 %3856, %v698_v49   ;;  %v720_v48 = vld [vmem:[%s5829_s1 + $0xe8] sm:$0xff]  ;;  %v719_v49 = vld [vmem:[%s5829_s1 + $0xe0] sm:$0xff] }
  0x90   : > { %v525_v50 = vpop.permute.xlu2 %524 }
  0x91   : > { %vm603_vm2 = vcmp.eq.s32.totalorder %v4412_v38, %v525_v50 }
  0x92   : > { %v4442_v51 = vsel %vm603_vm2, 1.0, %v4160_v40 }
  0x96   : > { %760 = vperm.xlu2 %3858, %v703_v52  }
  0x97   : > { %757 = vperm.xlu1 %3857, %v702_v53   ;;  %754 = vperm.xlu0 %3856, %v701_v54  }
  0x98   : > { %v534_v55 = vpop.permute.xlu2 %533 }
  0x99   : > { %v507_v56 = vpop.permute.xlu1 %506  ;;  %vm606_vm3 = vcmp.eq.s32.totalorder %v4412_v38, %v534_v55  ;;  %v501_v57 = vpop.permute.xlu0 %500 }
  0x9a   : > { %vm597_vm4 = vcmp.eq.s32.totalorder %v4412_v38, %v507_v56  ;;  %v4456_v58 = vsel %vm606_vm3, 1.0, %v4160_v40  ;;  %vm595_vm5 = vcmp.eq.s32.totalorder %v4412_v38, %v501_v57  ;;  %v722_v57 = vld [vmem:[%s5829_s1 + $0xf8] sm:$0xff] }
  0x9b   : > { %v4459_v59 = vsel %vm597_vm4, 1.0, %v4160_v40  ;;  %v4463_v60 = vsel %vm595_vm5, 1.0, %v4160_v40 }
  0x9e   : > { %769 = vperm.xlu2 %3858, %v706_v61  }
  0x9f   : > { %766 = vperm.xlu1 %3857, %v705_v62   ;;  %763 = vperm.xlu0 %3856, %v704_v63  }
  0xa0   : > { %v543_v0 = vpop.permute.xlu2 %542 }
  0xa1   : > { %v510_v1 = vpop.permute.xlu1 %509  ;;  %vm609_vm6 = vcmp.eq.s32.totalorder %v4412_v38, %v543_v0  ;;  %v504_v2 = vpop.permute.xlu0 %503 }
  0xa2   : > { %vm598_vm7 = vcmp.eq.s32.totalorder %v4412_v38, %v510_v1  ;;  %v4477_v3 = vsel %vm609_vm6, 1.0, %v4160_v40  ;;  %vm596_vm8 = vcmp.eq.s32.totalorder %v4412_v38, %v504_v2 }
  0xa3   : > { %5850 = vst [vmem:[#allocation24_spill] sm:$0xff] %v4477_v3  ;;  %v4480_v4 = vsel %vm598_vm7, 1.0, %v4160_v40  ;;  %v4484_v5 = vsel %vm596_vm8, 1.0, %v4160_v40  ;;  %v921_v3 = vld [vmem:[#allocation12] sm:$0xff] (%p915_p7) }
  0xa6   : > { %778 = vperm.xlu2 %3858, %v709_v6  }
  0xa7   : > { %775 = vperm.xlu1 %3857, %v708_v7   ;;  %772 = vperm.xlu0 %3856, %v707_v8  }
  0xa8   : > { %v552_v9 = vpop.permute.xlu2 %551 }
  0xa9   : > { %v522_v10 = vpop.permute.xlu1 %521  ;;  %vm612_vm9 = vcmp.eq.s32.totalorder %v4412_v38, %v552_v9  ;;  %v519_v11 = vpop.permute.xlu0 %518 }
  0xaa   : > { %vm602_vm10 = vcmp.eq.s32.totalorder %v4412_v38, %v522_v10  ;;  %v4498_v12 = vsel %vm612_vm9, 1.0, %v4160_v40  ;;  %vm601_vm11 = vcmp.eq.s32.totalorder %v4412_v38, %v519_v11 }
  0xab   : > { %5851 = vst [vmem:[#allocation25_spill] sm:$0xff] %v4498_v12  ;;  %v4501_v13 = vsel %vm602_vm10, 1.0, %v4160_v40  ;;  %v4505_v14 = vsel %vm601_vm11, 1.0, %v4160_v40  ;;  %v4870_v12 = vld [vmem:[%s5833_s5 + $0x98] sm:$0xff] (%p915_p7) }
  0xae   : > { %787 = vperm.xlu2 %3858, %v712_v15  }
  0xaf   : > { %784 = vperm.xlu1 %3857, %v711_v16   ;;  %781 = vperm.xlu0 %3856, %v710_v17  }
  0xb0   : > { %v561_v18 = vpop.permute.xlu2 %560 }
  0xb1   : > { %v531_v19 = vpop.permute.xlu1 %530  ;;  %vm615_vm12 = vcmp.eq.s32.totalorder %v4412_v38, %v561_v18  ;;  %v528_v20 = vpop.permute.xlu0 %527 }
  0xb2   : > { %vm605_vm13 = vcmp.eq.s32.totalorder %v4412_v38, %v531_v19  ;;  %v4519_v21 = vsel %vm615_vm12, 1.0, %v4160_v40  ;;  %vm604_vm14 = vcmp.eq.s32.totalorder %v4412_v38, %v528_v20 }
  0xb3   : > { %5852 = vst [vmem:[#allocation26_spill] sm:$0xff] %v4519_v21  ;;  %v4522_v22 = vsel %vm605_vm13, 1.0, %v4160_v40  ;;  %v4526_v23 = vsel %vm604_vm14, 1.0, %v4160_v40  ;;  %v962_v21 = vld [vmem:[%s5833_s5 + $0x100] sm:$0xff] (%p915_p7) }
  0xb6   : > { %796 = vperm.xlu2 %3858, %v715_v24  }
  0xb7   : > { %793 = vperm.xlu1 %3857, %v714_v25   ;;  %790 = vperm.xlu0 %3856, %v713_v26  }
  0xb8   : > { %v570_v27 = vpop.permute.xlu2 %569 }
  0xb9   : > { %v540_v28 = vpop.permute.xlu1 %539  ;;  %vm618_vm15 = vcmp.eq.s32.totalorder %v4412_v38, %v570_v27  ;;  %v537_v29 = vpop.permute.xlu0 %536 }
  0xba   : > { %vm608_vm0 = vcmp.eq.s32.totalorder %v4412_v38, %v540_v28  ;;  %v4540_v30 = vsel %vm618_vm15, 1.0, %v4160_v40  ;;  %vm607_vm1 = vcmp.eq.s32.totalorder %v4412_v38, %v537_v29 }
  0xbb   : > { %5853 = vst [vmem:[#allocation27_spill] sm:$0xff] %v4540_v30  ;;  %v4543_v31 = vsel %vm608_vm0, 1.0, %v4160_v40  ;;  %v4547_v32 = vsel %vm607_vm1, 1.0, %v4160_v40 }
  0xbe   : > { %805 = vperm.xlu2 %3858, %v718_v33  }
  0xbf   : > { %802 = vperm.xlu1 %3857, %v717_v34   ;;  %799 = vperm.xlu0 %3856, %v716_v35  }
  0xc0   : > { %v579_v37 = vpop.permute.xlu2 %578 }
  0xc1   : > { %v549_v39 = vpop.permute.xlu1 %548  ;;  %vm621_vm2 = vcmp.eq.s32.totalorder %v4412_v38, %v579_v37  ;;  %v546_v42 = vpop.permute.xlu0 %545 }
  0xc2   : > { %vm611_vm3 = vcmp.eq.s32.totalorder %v4412_v38, %v549_v39  ;;  %v4561_v43 = vsel %vm621_vm2, 1.0, %v4160_v40  ;;  %vm610_vm4 = vcmp.eq.s32.totalorder %v4412_v38, %v546_v42 }
  0xc3   : > { %v4564_v44 = vsel %vm611_vm3, 1.0, %v4160_v40  ;;  %v4568_v45 = vsel %vm610_vm4, 1.0, %v4160_v40 }
  0xc4   : > { %5854 = vst [vmem:[#allocation28_spill] sm:$0xff] %v4564_v44  ;;  %v4894_v44 = vld [vmem:[%s5833_s5 + $0x68] sm:$0xff] (%p915_p7) }
  0xc5   : > { %5855 = vst [vmem:[#allocation29_spill] sm:$0xff] %v4568_v45  ;;  %v937_v45 = vld [vmem:[%s5833_s5 + $0x38] sm:$0xff] (%p915_p7) }
  0xc6   : > { %814 = vperm.xlu2 %3858, %v721_v47  }
  0xc7   : > { %811 = vperm.xlu1 %3857, %v720_v48   ;;  %808 = vperm.xlu0 %3856, %v719_v49  }
  0xc8   : > { %v588_v50 = vpop.permute.xlu2 %587 }
  0xc9   : > { %v558_v52 = vpop.permute.xlu1 %557  ;;  %vm624_vm5 = vcmp.eq.s32.totalorder %v4412_v38, %v588_v50  ;;  %v555_v53 = vpop.permute.xlu0 %554 }
  0xca   : > { %vm614_vm6 = vcmp.eq.s32.totalorder %v4412_v38, %v558_v52  ;;  %v4583_v54 = vsel %vm624_vm5, 1.0, %v4160_v40  ;;  %vm613_vm7 = vcmp.eq.s32.totalorder %v4412_v38, %v555_v53 }
  0xcb   : > { %v4586_v55 = vsel %vm614_vm6, 1.0, %v4160_v40  ;;  %v4590_v56 = vsel %vm613_vm7, 1.0, %v4160_v40 }
  0xcc   : > { %5856 = vst [vmem:[#allocation30_spill] sm:$0xff] %v4586_v55  ;;  %v4822_v55 = vld [vmem:[%s5833_s5 + $0xf8] sm:$0xff] (%p915_p7) }
  0xcd   : > { %5857 = vst [vmem:[#allocation31_spill] sm:$0xff] %v4590_v56  ;;  %v4846_v56 = vld [vmem:[%s5833_s5 + $0xc8] sm:$0xff] (%p915_p7) }
  0xcf   : > { %817 = vperm.xlu0 %3856, %v722_v57  }
  0xd0   : > { %v725_v61 = vpop.permute.xlu2 %724 }
  0xd1   : > { %v567_v62 = vpop.permute.xlu1 %566  ;;  %vm819_vm8 = vcmp.eq.s32.totalorder %v4412_v38, %v725_v61  ;;  %v564_v63 = vpop.permute.xlu0 %563 }
  0xd2   : > { %vm617_vm9 = vcmp.eq.s32.totalorder %v4412_v38, %v567_v62  ;;  %v4598_v0 = vsel %vm819_vm8, 1.0, %v4160_v40  ;;  %vm616_vm10 = vcmp.eq.s32.totalorder %v4412_v38, %v564_v63 }
  0xd3   : > { %v4601_v1 = vsel %vm617_vm9, 1.0, %v4160_v40  ;;  %v4605_v2 = vsel %vm616_vm10, 1.0, %v4160_v40 }
  0xd4   : > { %5858 = vst [vmem:[#allocation32_spill] sm:$0xff] %v4601_v1  ;;  %v971_v1 = vld [vmem:[%s5833_s5 + $0x148] sm:$0xff] (%p915_p7) }
  0xd5   : > { %5859 = vst [vmem:[#allocation33_spill] sm:$0xff] %v4605_v2  ;;  %v4795_v2 = vld [vmem:[%s5833_s5 + $0x128] sm:$0xff] (%p915_p7) }
  0xd8   : > { %v734_v6 = vpop.permute.xlu2 %733 }
  0xd9   : > { %v576_v7 = vpop.permute.xlu1 %575  ;;  %vm822_vm11 = vcmp.eq.s32.totalorder %v4412_v38, %v734_v6  ;;  %v573_v8 = vpop.permute.xlu0 %572 }
  0xda   : > { %vm620_vm12 = vcmp.eq.s32.totalorder %v4412_v38, %v576_v7  ;;  %v4610_v9 = vsel %vm822_vm11, 1.0, %v4160_v40  ;;  %vm619_vm13 = vcmp.eq.s32.totalorder %v4412_v38, %v573_v8 }
  0xdb   : > { %v4613_v10 = vsel %vm620_vm12, 1.0, %v4160_v40  ;;  %v4617_v11 = vsel %vm619_vm13, 1.0, %v4160_v40 }
  0xdc   : > { %5860 = vst [vmem:[#allocation34_spill] sm:$0xff] %v4617_v11 }
  0xe0   : > { %v743_v15 = vpop.permute.xlu2 %742 }
  0xe1   : > { %v585_v16 = vpop.permute.xlu1 %584  ;;  %vm825_vm14 = vcmp.eq.s32.totalorder %v4412_v38, %v743_v15  ;;  %v582_v17 = vpop.permute.xlu0 %581 }
  0xe2   : > { %vm623_vm15 = vcmp.eq.s32.totalorder %v4412_v38, %v585_v16  ;;  %v4622_v18 = vsel %vm825_vm14, 1.0, %v4160_v40  ;;  %vm622_vm0 = vcmp.eq.s32.totalorder %v4412_v38, %v582_v17 }
  0xe3   : > { %v4625_v19 = vsel %vm623_vm15, 1.0, %v4160_v40  ;;  %v4629_v20 = vsel %vm622_vm0, 1.0, %v4160_v40 }
  0xe8   : > { %v752_v24 = vpop.permute.xlu2 %751 }
  0xe9   : > { %v594_v25 = vpop.permute.xlu1 %593  ;;  %vm828_vm1 = vcmp.eq.s32.totalorder %v4412_v38, %v752_v24  ;;  %v591_v26 = vpop.permute.xlu0 %590 }
  0xea   : > { %vm626_vm2 = vcmp.eq.s32.totalorder %v4412_v38, %v594_v25  ;;  %v4634_v27 = vsel %vm828_vm1, 1.0, %v4160_v40  ;;  %vm625_vm3 = vcmp.eq.s32.totalorder %v4412_v38, %v591_v26 }
  0xeb   : > { %v4637_v28 = vsel %vm626_vm2, 1.0, %v4160_v40  ;;  %v4641_v29 = vsel %vm625_vm3, 1.0, %v4160_v40 }
  0xf0   : > { %v761_v33 = vpop.permute.xlu2 %760 }
  0xf1   : > { %v731_v34 = vpop.permute.xlu1 %730  ;;  %vm831_vm4 = vcmp.eq.s32.totalorder %v4412_v38, %v761_v33  ;;  %v728_v35 = vpop.permute.xlu0 %727 }
  0xf2   : > { %vm821_vm5 = vcmp.eq.s32.totalorder %v4412_v38, %v731_v34  ;;  %v4646_v37 = vsel %vm831_vm4, 1.0, %v4160_v40  ;;  %vm820_vm6 = vcmp.eq.s32.totalorder %v4412_v38, %v728_v35 }
  0xf3   : > { %v4649_v39 = vsel %vm821_vm5, 1.0, %v4160_v40  ;;  %v4653_v42 = vsel %vm820_vm6, 1.0, %v4160_v40 }
  0xf8   : > { %v770_v47 = vpop.permute.xlu2 %769 }
  0xf9   : > { %v740_v48 = vpop.permute.xlu1 %739  ;;  %vm834_vm7 = vcmp.eq.s32.totalorder %v4412_v38, %v770_v47  ;;  %v737_v49 = vpop.permute.xlu0 %736 }
  0xfa   : > { %vm824_vm8 = vcmp.eq.s32.totalorder %v4412_v38, %v740_v48  ;;  %v4658_v50 = vsel %vm834_vm7, 1.0, %v4160_v40  ;;  %vm823_vm9 = vcmp.eq.s32.totalorder %v4412_v38, %v737_v49 }
  0xfb   : > { %5861 = vst [vmem:[#allocation35_spill] sm:$0xff] %v4658_v50  ;;  %v4661_v52 = vsel %vm824_vm8, 1.0, %v4160_v40  ;;  %v4665_v53 = vsel %vm823_vm9, 1.0, %v4160_v40  ;;  %v4906_v50 = vld [vmem:[%s5833_s5 + $0x50] sm:$0xff] (%p915_p7) }
 0x100   : > { %v779_v57 = vpop.permute.xlu2 %778 }
 0x101   : > { %v749_v61 = vpop.permute.xlu1 %748  ;;  %vm837_vm10 = vcmp.eq.s32.totalorder %v4412_v38, %v779_v57  ;;  %v746_v62 = vpop.permute.xlu0 %745 }
 0x102   : > { %vm827_vm11 = vcmp.eq.s32.totalorder %v4412_v38, %v749_v61  ;;  %v4670_v63 = vsel %vm837_vm10, 1.0, %v4160_v40  ;;  %vm826_vm12 = vcmp.eq.s32.totalorder %v4412_v38, %v746_v62 }
 0x103   : > { %5862 = vst [vmem:[#allocation36_spill] sm:$0xff] %v4670_v63  ;;  %v4673_v6 = vsel %vm827_vm11, 1.0, %v4160_v40  ;;  %v4677_v7 = vsel %vm826_vm12, 1.0, %v4160_v40  ;;  %v4834_v63 = vld [vmem:[%s5833_s5 + $0xe0] sm:$0xff] (%p915_p7) }
 0x108   : > { %v788_v8 = vpop.permute.xlu2 %787 }
 0x109   : > { %v758_v15 = vpop.permute.xlu1 %757  ;;  %vm840_vm13 = vcmp.eq.s32.totalorder %v4412_v38, %v788_v8  ;;  %v755_v16 = vpop.permute.xlu0 %754 }
 0x10a   : > { %vm830_vm14 = vcmp.eq.s32.totalorder %v4412_v38, %v758_v15  ;;  %v4682_v17 = vsel %vm840_vm13, 1.0, %v4160_v40  ;;  %vm829_vm15 = vcmp.eq.s32.totalorder %v4412_v38, %v755_v16 }
 0x10b   : > { %5863 = vst [vmem:[#allocation37_spill] sm:$0xff] %v4682_v17  ;;  %v4685_v24 = vsel %vm830_vm14, 1.0, %v4160_v40  ;;  %v4689_v25 = vsel %vm829_vm15, 1.0, %v4160_v40  ;;  %v965_v17 = vld [vmem:[%s5833_s5 + $0x118] sm:$0xff] (%p915_p7) }
 0x110   : > { %v797_v26 = vpop.permute.xlu2 %796 }
 0x111   : > { %v767_v33 = vpop.permute.xlu1 %766  ;;  %vm843_vm0 = vcmp.eq.s32.totalorder %v4412_v38, %v797_v26  ;;  %v764_v34 = vpop.permute.xlu0 %763 }
 0x112   : > { %vm833_vm1 = vcmp.eq.s32.totalorder %v4412_v38, %v767_v33  ;;  %v4694_v35 = vsel %vm843_vm0, 1.0, %v4160_v40  ;;  %vm832_vm2 = vcmp.eq.s32.totalorder %v4412_v38, %v764_v34 }
 0x113   : > { %5864 = vst [vmem:[#allocation38_spill] sm:$0xff] %v4694_v35  ;;  %v4697_v47 = vsel %vm833_vm1, 1.0, %v4160_v40  ;;  %v4701_v48 = vsel %vm832_vm2, 1.0, %v4160_v40 }
 0x114   : > { %5865 = vst [vmem:[#allocation39_spill] sm:$0xff] %v4697_v47  ;;  %v934_v47 = vld [vmem:[%s5833_s5 + $0x20] sm:$0xff] (%p915_p7) }
 0x118   : > { %v806_v49 = vpop.permute.xlu2 %805 }
 0x119   : > { %v776_v57 = vpop.permute.xlu1 %775  ;;  %vm846_vm3 = vcmp.eq.s32.totalorder %v4412_v38, %v806_v49  ;;  %v773_v61 = vpop.permute.xlu0 %772 }
 0x11a   : > { %vm836_vm4 = vcmp.eq.s32.totalorder %v4412_v38, %v776_v57  ;;  %v4706_v62 = vsel %vm846_vm3, 1.0, %v4160_v40  ;;  %vm835_vm5 = vcmp.eq.s32.totalorder %v4412_v38, %v773_v61 }
 0x11b   : > { %v4709_v8 = vsel %vm836_vm4, 1.0, %v4160_v40  ;;  %v4713_v15 = vsel %vm835_vm5, 1.0, %v4160_v40 }
 0x11c   : > { %5866 = vst [vmem:[#allocation40_spill] sm:$0xff] %v4709_v8  ;;  %v4858_v8 = vld [vmem:[%s5833_s5 + $0xb0] sm:$0xff] (%p915_p7) }
 0x11d   : > { %5867 = vst [vmem:[#allocation41_spill] sm:$0xff] %v4713_v15  ;;  %v4882_v15 = vld [vmem:[%s5833_s5 + $0x80] sm:$0xff] (%p915_p7) }
 0x120   : > { %v815_v16 = vpop.permute.xlu2 %814 }
 0x121   : > { %v785_v26 = vpop.permute.xlu1 %784  ;;  %vm849_vm6 = vcmp.eq.s32.totalorder %v4412_v38, %v815_v16  ;;  %v782_v33 = vpop.permute.xlu0 %781 }
 0x122   : > { %vm839_vm7 = vcmp.eq.s32.totalorder %v4412_v38, %v785_v26  ;;  %v4718_v34 = vsel %vm849_vm6, 1.0, %v4160_v40  ;;  %vm838_vm8 = vcmp.eq.s32.totalorder %v4412_v38, %v782_v33 }
 0x123   : > { %v4721_v49 = vsel %vm839_vm7, 1.0, %v4160_v40  ;;  %v4725_v57 = vsel %vm838_vm8, 1.0, %v4160_v40 }
 0x124   : > { %5868 = vst [vmem:[#allocation42_spill] sm:$0xff] %v4721_v49  ;;  %v969_v49 = vld [vmem:[%s5833_s5 + $0x138] sm:$0xff] (%p915_p7) }
 0x125   : > { %5869 = vst [vmem:[#allocation43_spill] sm:$0xff] %v4725_v57  ;;  %v4810_v57 = vld [vmem:[%s5833_s5 + $0x110] sm:$0xff] (%p915_p7) }
 0x129   : > { %v794_v61 = vpop.permute.xlu1 %793  ;;  %v791_v36 = vpop.permute.xlu0 %790 }
 0x12a   : > { %vm842_vm9 = vcmp.eq.s32.totalorder %v4412_v38, %v794_v61  ;;  %vm841_vm10 = vcmp.eq.s32.totalorder %v4412_v38, %v791_v36 }
 0x12b   : > { %v4729_v16 = vsel %vm842_vm9, 1.0, %v4160_v40  ;;  %v4733_v26 = vsel %vm841_vm10, 1.0, %v4160_v40 }
 0x12c   : > { %5870 = vst [vmem:[#allocation44_spill] sm:$0xff] %v4729_v16 }
 0x12d   : > { %5871 = vst [vmem:[#allocation45_spill] sm:$0xff] %v4733_v26 }
 0x131   : > { %v803_v35 = vpop.permute.xlu1 %802  ;;  %v800_v11 = vpop.permute.xlu0 %799 }
 0x132   : > { %vm845_vm11 = vcmp.eq.s32.totalorder %v4412_v38, %v803_v35  ;;  %vm844_vm12 = vcmp.eq.s32.totalorder %v4412_v38, %v800_v11 }
 0x133   : > { %v4737_v33 = vsel %vm845_vm11, 1.0, %v4160_v40  ;;  %v4741_v61 = vsel %vm844_vm12, 1.0, %v4160_v40 }
 0x139   : > { %v812_v30 = vpop.permute.xlu1 %811  ;;  %v809_v16 = vpop.permute.xlu0 %808 }
 0x13a   : > { %vm848_vm13 = vcmp.eq.s32.totalorder %v4412_v38, %v812_v30  ;;  %vm847_vm14 = vcmp.eq.s32.totalorder %v4412_v38, %v809_v16  ;;  %v977_v30 = vld [vmem:[%s5833_s5 + $0x178] sm:$0xff] (%p915_p7)  ;;  %v974_v16 = vld [vmem:[%s5833_s5 + $0x160] sm:$0xff] (%p915_p7) }
 0x13b   : > { %v4745_v36 = vsel %vm848_vm13, 1.0, %v4160_v40  ;;  %v4749_v35 = vsel %vm847_vm14, 1.0, %v4160_v40  ;;  %1074 = vmatpush.msra.mxu2 (%p915_p7), %v977_v30  ;;  %v4783_v30 = vld [vmem:[%s5833_s5 + $0x140] sm:$0xff] (%p915_p7) }
 0x13d   : > { %1075 = vmatpush.msra.mxu2 (%p915_p7), %v974_v16  ;;  %v975_v16 = vld [vmem:[%s5833_s5 + $0x168] sm:$0xff] (%p915_p7) }
 0x13e   : > { %986 = vmatpush.msra.mxu0 (%p915_p7), %v975_v16  ;;  %3652 = vmatpush.msra.mxu3 (%p915_p7), %v975_v16  ;;  %v959_v16 = vld [vmem:[%s5833_s5 + $0xe8] sm:$0xff] (%p915_p7) }
 0x13f   : > { %1076 = vmatpush.msra.mxu2 (%p915_p7), %v971_v1  ;;  %v972_v1 = vld [vmem:[%s5833_s5 + $0x150] sm:$0xff] (%p915_p7) }
 0x140   : > { %920 = sbr.rel (!%p915_p7) target bundleno = 548 (0x224), region = 80  ;;  %987 = vmatpush.msra.mxu0 (%p915_p7), %v972_v1  ;;  %3653 = vmatpush.msra.mxu3 (%p915_p7), %v972_v1  ;;  %v956_v1 = vld [vmem:[%s5833_s5 + $0xd0] sm:$0xff] (%p915_p7) }
 0x141   : > { %v818_v26 = vpop.permute.xlu0 %817 }
 0x142   : > { %vm850_vm15 = vcmp.eq.s32.totalorder %v4412_v38, %v818_v26  ;;  %v4769_v38 = vld [vmem:[%s5833_s5 + $0x170] sm:$0xff] (%p915_p7)  ;;  %988 = vmatpush.msra.mxu0 (%p915_p7), %v969_v49  ;;  %3654 = vmatpush.msra.mxu3 (%p915_p7), %v969_v49  ;;  %v953_v49 = vld [vmem:[%s5833_s5 + $0xb8] sm:$0xff] (%p915_p7) }
 0x143   : > { %v4753_v11 = vsel %vm850_vm15, 1.0, %v4160_v40  ;;  %1030 = vmatpush.msra.mxu1 (%p915_p7), %v4769_v38  ;;  %v4775_v40 = vld [vmem:[%s5833_s5 + $0x158] sm:$0xff] (%p915_p7)  ;;  %v968_v26 = vld [vmem:[%s5833_s5 + $0x130] sm:$0xff] (%p915_p7) }
 0x144   : > { %5872 = vst [vmem:[#allocation46_spill] sm:$0xff] %v4753_v11  ;;  %1077 = vmatpush.msra.mxu2 (%p915_p7), %v968_v26  ;;  %v966_v26 = vld [vmem:[%s5833_s5 + $0x120] sm:$0xff] (%p915_p7)  ;;  %v933_v11 = vld [vmem:[%s5833_s5 + $0x18] sm:$0xff] (%p915_p7) }
 0x145   : > { %1031 = vmatpush.msra.mxu1 %v4775_v40  ;;  %989 = vmatpush.msra.mxu0 %v966_v26 }
 0x146   : > { %1078 = vmatpush.msra.mxu2 %v965_v17  ;;  %v963_v17 = vld [vmem:[%s5833_s5 + $0x108] sm:$0xff]  ;;  %3655 = vmatpush.msra.mxu3 %v966_v26  ;;  %v957_v26 = vld [vmem:[%s5833_s5 + $0xd8] sm:$0xff] }
 0x147   : > { %1032 = vmatpush.msra.mxu1 %v4783_v30  ;;  %990 = vmatpush.msra.mxu0 %v963_v17 }
 0x148   : > { %1079 = vmatpush.msra.mxu2 %v962_v21  ;;  %v960_v21 = vld [vmem:[%s5833_s5 + $0xf0] sm:$0xff]  ;;  %3656 = vmatpush.msra.mxu3 %v963_v17  ;;  %v954_v17 = vld [vmem:[%s5833_s5 + $0xc0] sm:$0xff] }
 0x149   : > { %1033 = vmatpush.msra.mxu1 %v4795_v2  ;;  %991 = vmatpush.msra.mxu0 %v960_v21 }
 0x14a   : > { %1080 = vmatpush.msra.mxu2 %v959_v16  ;;  %v950_v16 = vld [vmem:[%s5833_s5 + $0xa0] sm:$0xff]  ;;  %3657 = vmatpush.msra.mxu3 %v960_v21  ;;  %v951_v21 = vld [vmem:[%s5833_s5 + $0xa8] sm:$0xff] }
 0x14b   : > { %1034 = vmatpush.msra.mxu1 %v4810_v57  ;;  %992 = vmatpush.msra.mxu0 %v957_v26 }
 0x14c   : > { %1081 = vmatpush.msra.mxu2 %v956_v1  ;;  %v947_v1 = vld [vmem:[%s5833_s5 + $0x88] sm:$0xff]  ;;  %3658 = vmatpush.msra.mxu3 %v957_v26  ;;  %v948_v26 = vld [vmem:[%s5833_s5 + $0x90] sm:$0xff] }
 0x14d   : > { %1035 = vmatpush.msra.mxu1 %v4822_v55  ;;  %993 = vmatpush.msra.mxu0 %v954_v17 }
 0x14e   : > { %1082 = vmatpush.msra.mxu2 %v953_v49  ;;  %v944_v49 = vld [vmem:[%s5833_s5 + $0x70] sm:$0xff]  ;;  %3659 = vmatpush.msra.mxu3 %v954_v17  ;;  %v945_v17 = vld [vmem:[%s5833_s5 + $0x78] sm:$0xff] }
 0x14f   : > { %1036 = vmatpush.msra.mxu1 %v4834_v63  ;;  %994 = vmatpush.msra.mxu0 %v951_v21 }
 0x150   : > { %1083 = vmatpush.msra.mxu2 %v950_v16  ;;  %v941_v16 = vld [vmem:[%s5833_s5 + $0x58] sm:$0xff]  ;;  %3660 = vmatpush.msra.mxu3 %v951_v21  ;;  %v942_v21 = vld [vmem:[%s5833_s5 + $0x60] sm:$0xff] }
 0x151   : > { %1037 = vmatpush.msra.mxu1 %v4846_v56  ;;  %995 = vmatpush.msra.mxu0 %v948_v26 }
 0x152   : > { %1084 = vmatpush.msra.mxu2 %v947_v1  ;;  %v938_v1 = vld [vmem:[%s5833_s5 + $0x40] sm:$0xff]  ;;  %3661 = vmatpush.msra.mxu3 %v948_v26  ;;  %v939_v26 = vld [vmem:[%s5833_s5 + $0x48] sm:$0xff] }
 0x153   : > { %1038 = vmatpush.msra.mxu1 %v4858_v8  ;;  %996 = vmatpush.msra.mxu0 %v945_v17 }
 0x154   : > { %1085 = vmatpush.msra.mxu2 %v944_v49  ;;  %v935_v49 = vld [vmem:[%s5833_s5 + $0x28] sm:$0xff]  ;;  %3662 = vmatpush.msra.mxu3 %v945_v17  ;;  %v936_v17 = vld [vmem:[%s5833_s5 + $0x30] sm:$0xff] }
 0x155   : > { %1039 = vmatpush.msra.mxu1 %v4870_v12  ;;  %997 = vmatpush.msra.mxu0 %v942_v21 }
 0x156   : > { %1086 = vmatpush.msra.mxu2 %v941_v16  ;;  %v932_v16 = vld [vmem:[%s5833_s5 + $0x10] sm:$0xff]  ;;  %3663 = vmatpush.msra.mxu3 %v942_v21  ;;  %v930_v21 = vld [vmem:[%s5833_s5] sm:$0xff] }
 0x157   : > { %1040 = vmatpush.msra.mxu1 %v4882_v15  ;;  %998 = vmatpush.msra.mxu0 %v939_v26 }
 0x158   : > { %1087 = vmatpush.msra.mxu2 %v938_v1  ;;  %v931_v1 = vld [vmem:[%s5833_s5 + $0x8] sm:$0xff]  ;;  %3664 = vmatpush.msra.mxu3 %v939_v26 }
 0x159   : > { %1041 = vmatpush.msra.mxu1 %v4894_v44  ;;  %999 = vmatpush.msra.mxu0 %v936_v17  ;;  %v928_v26 = vld [vmem:[#allocation12 + $0x38] sm:$0xff] }
 0x15a   : > { %1088 = vmatpush.msra.mxu2 %v935_v49  ;;  %3665 = vmatpush.msra.mxu3 %v936_v17  ;;  %v922_v49 = vld [vmem:[#allocation12 + $0x8] sm:$0xff] }
 0x15b   : > { %1042 = vmatpush.msra.mxu1 %v4906_v50  ;;  %1000 = vmatpush.msra.mxu0 %v933_v11 }
 0x15c   : > { %1089 = vmatpush.msra.mxu2 %v932_v16  ;;  %3666 = vmatpush.msra.mxu3 %v933_v11  ;;  %v923_v16 = vld [vmem:[#allocation12 + $0x10] sm:$0xff]  ;;  %v924_v11 = vld [vmem:[#allocation12 + $0x18] sm:$0xff] }
 0x15d   : > { %1043 = vmatpush.msra.mxu1 %v937_v45  ;;  %1090 = vmatmul.f32.vlgmr.msra.gmra.mxu2 %v921_v3 }
 0x15e   : > { %1001 = vmatpush.msra.mxu0 %v930_v21  ;;  %3667 = vmatpush.msra.mxu3 %v930_v21 }
 0x15f   : > { %1044 = vmatpush.msra.mxu1 %v934_v47  ;;  %1002 = vmatmul.f32.vlgmr.msra.gmra.mxu0 %v921_v3 }
 0x160   : > { %3668 = vmatpush.msrb.mxu3 %v4769_v38 }
 0x161   : > { %1045 = vmatpush.msra.mxu1 %v931_v1  ;;  %1023 = vmatmul.f32.vlgmr.msra.gmra.mxu3 %v928_v26 }
 0x162   : > { %1046 = vmatmul.f32.vlgmr.msra.gmra.mxu1 %v921_v3  ;;  %3669 = vmatpush.msrb.mxu3 %v4775_v40  ;;  %v929_v3 = vld [vmem:[#allocation12 + $0x40] sm:$0xff] }
 0x164   : > { %3670 = vmatpush.msrb.mxu3 %v4783_v30 }
 0x165   : > { %1093 = vmatmul.f32.gmra.mxu2 %v922_v49 }
 0x166   : > { %3671 = vmatpush.msrb.mxu3 %v4795_v2 }
 0x167   : > { %1005 = vmatmul.f32.gmra.mxu0 %v922_v49 }
 0x168   : > { %3672 = vmatpush.msrb.mxu3 %v4810_v57 }
 0x169   : > { %1026 = vmatmul.f32.gmra.mxu3 %v929_v3 }
 0x16a   : > { %1049 = vmatmul.f32.gmra.mxu1 %v922_v49  ;;  %3673 = vmatpush.msrb.mxu3 %v4822_v55  ;;  %v925_v55 = vld [vmem:[#allocation12 + $0x20] sm:$0xff] }
 0x16c   : > { %3674 = vmatpush.msrb.mxu3 %v4834_v63 }
 0x16d   : > { %1096 = vmatmul.f32.gmra.mxu2 %v923_v16 }
 0x16e   : > { %3675 = vmatpush.msrb.mxu3 %v4846_v56  ;;  %v926_v56 = vld [vmem:[#allocation12 + $0x28] sm:$0xff] }
 0x16f   : > { %1008 = vmatmul.f32.gmra.mxu0 %v923_v16 }
 0x170   : > { %3676 = vmatpush.msrb.mxu3 %v4858_v8 }
 0x172   : > { %1052 = vmatmul.f32.gmra.mxu1 %v923_v16  ;;  %3677 = vmatpush.msrb.mxu3 %v4870_v12  ;;  %v927_v12 = vld [vmem:[#allocation12 + $0x30] sm:$0xff] }
 0x174   : > { %3678 = vmatpush.msrb.mxu3 %v4882_v15 }
 0x175   : > { %1099 = vmatmul.f32.gmra.mxu2 %v924_v11 }
 0x176   : > { %3679 = vmatpush.msrb.mxu3 %v4894_v44  ;;  %v978_v44 = vld [vmem:[%s5834_s6] sm:$0x7] }
 0x177   : > { %1011 = vmatmul.f32.gmra.mxu0 %v924_v11  ;;  %v4960_v63 = vperm.slane %v978_v44, 2 }
 0x178   : > { %3680 = vmatpush.msrb.mxu3 %v4906_v50  ;;  %v4958_v50 = vperm.slane %v978_v44, 0 }
 0x17a   : > { %1055 = vmatmul.f32.gmra.mxu1 %v924_v11  ;;  %3681 = vmatpush.msrb.mxu3 %v937_v45  ;;  %v4956_v45 = vperm.slane %v978_v44, 1 }
 0x17c   : > { %3682 = vmatpush.msrb.mxu3 %v934_v47 }
 0x17d   : > { %1102 = vmatmul.f32.gmra.mxu2 %v925_v55 }
 0x17e   : > { %3683 = vmatpush.msrb.mxu3 %v931_v1 }
 0x17f   : > { %1014 = vmatmul.f32.gmra.mxu0 %v925_v55  ;;  %1070 = vmatmul.f32.vlgmr.msrb.gmra.mxu3 %v929_v3 }
 0x182   : > { %1058 = vmatmul.f32.gmra.mxu1 %v925_v55 }
 0x185   : > { %1105 = vmatmul.f32.gmra.mxu2 %v926_v56 }
 0x187   : > { %1017 = vmatmul.f32.gmra.mxu0 %v926_v56 }
 0x18a   : > { %1061 = vmatmul.f32.gmra.mxu1 %v926_v56 }
 0x18d   : > { %1108 = vmatmul.f32.gmra.mxu2 %v927_v12 }
 0x18f   : > { %1020 = vmatmul.f32.gmra.mxu0 %v927_v12 }
 0x192   : > { %1064 = vmatmul.f32.gmra.mxu1 %v927_v12 }
 0x195   : > { %1111 = vmatmul.f32.gmra.mxu2 %v928_v26 }
 0x19a   : > { %1067 = vmatmul.f32.gmra.mxu1 %v928_v26 }
 0x19d   : > { %1114 = vmatmul.f32.gmra.mxu2 %v929_v3 }
 0x1dc   : > { %v1003_v8 = vpop.f32.mrf.mxu0 }
 0x1dd   : > { %v1004_v57 = vadd.f32 %v1003_v8, %v4958_v50 }
 0x1df   : > { %v1047_v2 = vpop.f32.mrf.mxu1  ;;  %1118 = vst [vmem:[#allocation2 + $0xb0] sm:$0xff] %v1004_v57 }
 0x1e0   : > { %v1048_v47 = vadd.f32 %v1047_v2, %v4956_v45  ;;  %v1091_v15 = vpop.f32.mrf.mxu2 }
 0x1e1   : > { %v1092_v38 = vadd.f32 %v1091_v15, %v4960_v63 }
 0x1e2   : > { %1119 = vst [vmem:[#allocation2] sm:$0xff] %v1048_v47 }
 0x1e3   : > { %1120 = vst [vmem:[#allocation2 + $0x10] sm:$0xff] %v1092_v38 }
 0x1e4   : > { %v1006_v17 = vpop.f32.mrf.mxu0  ;;  %v1024_v26 = vpop.f32.mrf.mxu3 }
 0x1e5   : > { %v1007_v21 = vadd.f32 %v1006_v17, %v4958_v50  ;;  %v1025_v3 = vadd.f32 %v1024_v26, %v4958_v50 }
 0x1e7   : > { %v1050_v40 = vpop.f32.mrf.mxu1  ;;  %1121 = vst [vmem:[#allocation2 + $0x48] sm:$0xff] %v1007_v21 }
 0x1e8   : > { %v1051_v30 = vadd.f32 %v1050_v40, %v4956_v45  ;;  %v1094_v1 = vpop.f32.mrf.mxu2  ;;  %1139 = vst [vmem:[#allocation2 + $0x90] sm:$0xff] %v1025_v3 }
 0x1e9   : > { %v1095_v49 = vadd.f32 %v1094_v1, %v4960_v63 }
 0x1ea   : > { %1122 = vst [vmem:[#allocation2 + $0x60] sm:$0xff] %v1051_v30 }
 0x1eb   : > { %1123 = vst [vmem:[#allocation2 + $0x28] sm:$0xff] %v1095_v49 }
 0x1ec   : > { %v1009_v55 = vpop.f32.mrf.mxu0  ;;  %v1027_v2 = vpop.f32.mrf.mxu3 }
 0x1ed   : > { %v1010_v12 = vadd.f32 %v1009_v55, %v4958_v50  ;;  %v1028_v8 = vadd.f32 %v1027_v2, %v4958_v50 }
 0x1ef   : > { %v1053_v16 = vpop.f32.mrf.mxu1  ;;  %1124 = vst [vmem:[#allocation2 + $0x40] sm:$0xff] %v1010_v12 }
 0x1f0   : > { %v1054_v11 = vadd.f32 %v1053_v16, %v4956_v45  ;;  %v1097_v56 = vpop.f32.mrf.mxu2  ;;  %1142 = vst [vmem:[#allocation2 + $0xd0] sm:$0xff] %v1028_v8 }
 0x1f1   : > { %v1098_v44 = vadd.f32 %v1097_v56, %v4960_v63 }
 0x1f2   : > { %1125 = vst [vmem:[#allocation2 + $0x78] sm:$0xff] %v1054_v11  ;;  %v4161_v11 = vmov -1e+30  }
 0x1f3   : > { %1126 = vst [vmem:[#allocation2 + $0x80] sm:$0xff] %v1098_v44 }
 0x1f4   : > { %v1012_v57 = vpop.f32.mrf.mxu0  ;;  %1145 = vst [vmem:[#allocation3] sm:$0xff] %v4161_v11 }
 0x1f5   : > { %v1013_v40 = vadd.f32 %v1012_v57, %v4958_v50  ;;  %1146 = vst [vmem:[#allocation3 + $0x8] sm:$0xff] %v4161_v11 }
 0x1f6   : > { %1147 = vst [vmem:[#allocation3 + $0x10] sm:$0xff] %v4161_v11 }
 0x1f7   : > { %v1056_v47 = vpop.f32.mrf.mxu1  ;;  %1127 = vst [vmem:[#allocation2 + $0xa8] sm:$0xff] %v1013_v40 }
 0x1f8   : > { %v1057_v15 = vadd.f32 %v1056_v47, %v4956_v45  ;;  %v1100_v38 = vpop.f32.mrf.mxu2  ;;  %1148 = vst [vmem:[#allocation3 + $0x18] sm:$0xff] %v4161_v11 }
 0x1f9   : > { %v1101_v30 = vadd.f32 %v1100_v38, %v4960_v63  ;;  %1149 = vst [vmem:[#allocation3 + $0x20] sm:$0xff] %v4161_v11 }
 0x1fa   : > { %1128 = vst [vmem:[#allocation2 + $0x50] sm:$0xff] %v1057_v15 }
 0x1fb   : > { %1129 = vst [vmem:[#allocation2 + $0x30] sm:$0xff] %v1101_v30 }
 0x1fc   : > { %v1015_v21 = vpop.f32.mrf.mxu0  ;;  %1150 = vst [vmem:[#allocation3 + $0x28] sm:$0xff] %v4161_v11 }
 0x1fd   : > { %v1016_v26 = vadd.f32 %v1015_v21, %v4958_v50  ;;  %1151 = vst [vmem:[#allocation3 + $0x30] sm:$0xff] %v4161_v11  ;;  %v4162_v21 = vmov 0.0  }
 0x1fe   : > { %1152 = vst [vmem:[#allocation3 + $0x38] sm:$0xff] %v4161_v11 }
 0x1ff   : > { %v1059_v17 = vpop.f32.mrf.mxu1  ;;  %1130 = vst [vmem:[#allocation2 + $0x88] sm:$0xff] %v1016_v26 }
 0x200   : > { %v1060_v1 = vadd.f32 %v1059_v17, %v4956_v45  ;;  %v1103_v49 = vpop.f32.mrf.mxu2  ;;  %1153 = vst [vmem:[#allocation3 + $0x40] sm:$0xff] %v4161_v11 }
 0x201   : > { %v1104_v16 = vadd.f32 %v1103_v49, %v4960_v63  ;;  %1154 = vst [vmem:[#allocation4] sm:$0xff] %v4162_v21 }
 0x202   : > { %1131 = vst [vmem:[#allocation2 + $0x70] sm:$0xff] %v1060_v1  ;;  %v1071_v56 = vpop.f32.mrf.mxu3 }
 0x203   : > { %1132 = vst [vmem:[#allocation2 + $0x8] sm:$0xff] %v1104_v16  ;;  %v1072_v12 = vadd.f32 %v1071_v56, %v4956_v45 }
 0x204   : > { %v1018_v44 = vpop.f32.mrf.mxu0  ;;  %1155 = vst [vmem:[#allocation4 + $0x40] sm:$0xff] %v4162_v21 }
 0x205   : > { %v1019_v47 = vadd.f32 %v1018_v44, %v4958_v50  ;;  %1143 = vst [vmem:[#allocation2 + $0xc0] sm:$0xff] %v1072_v12 }
 0x206   : > { %1156 = vst [vmem:[#allocation4 + $0x18] sm:$0xff] %v4162_v21 }
 0x207   : > { %v1062_v3 = vpop.f32.mrf.mxu1  ;;  %1133 = vst [vmem:[#allocation2 + $0x38] sm:$0xff] %v1019_v47 }
 0x208   : > { %v1063_v55 = vadd.f32 %v1062_v3, %v4956_v45  ;;  %v1106_v2 = vpop.f32.mrf.mxu2  ;;  %1157 = vst [vmem:[#allocation4 + $0x20] sm:$0xff] %v4162_v21 }
 0x209   : > { %v1107_v8 = vadd.f32 %v1106_v2, %v4960_v63  ;;  %1158 = vst [vmem:[#allocation4 + $0x38] sm:$0xff] %v4162_v21 }
 0x20a   : > { %1134 = vst [vmem:[#allocation2 + $0x20] sm:$0xff] %v1063_v55 }
 0x20b   : > { %1135 = vst [vmem:[#allocation2 + $0xb8] sm:$0xff] %v1107_v8 }
 0x20c   : > { %v1021_v38 = vpop.f32.mrf.mxu0  ;;  %1159 = vst [vmem:[#allocation4 + $0x28] sm:$0xff] %v4162_v21 }
 0x20d   : > { %v1022_v30 = vadd.f32 %v1021_v38, %v4958_v50  ;;  %1160 = vst [vmem:[#allocation4 + $0x8] sm:$0xff] %v4162_v21 }
 0x20e   : > { %1161 = vst [vmem:[#allocation4 + $0x30] sm:$0xff] %v4162_v21 }
 0x20f   : > { %v1065_v15 = vpop.f32.mrf.mxu1  ;;  %1136 = vst [vmem:[#allocation2 + $0x58] sm:$0xff] %v1022_v30 }
 0x210   : > { %v1066_v57 = vadd.f32 %v1065_v15, %v4956_v45  ;;  %v1109_v40 = vpop.f32.mrf.mxu2  ;;  %1162 = vst [vmem:[#allocation4 + $0x10] sm:$0xff] %v4162_v21 }
 0x211   : > { %v1110_v17 = vadd.f32 %v1109_v40, %v4960_v63  ;;  %1163 = vst [vmem:[#allocation5] sm:$0xff] %v4162_v21 }
 0x212   : > { %1137 = vst [vmem:[#allocation2 + $0xc8] sm:$0xff] %v1066_v57 }
 0x213   : > { %1138 = vst [vmem:[#allocation2 + $0xa0] sm:$0xff] %v1110_v17 }
 0x214   : > { %1164 = vst [vmem:[#allocation5 + $0x8] sm:$0xff] %v4162_v21 }
 0x215   : > { %1165 = vst [vmem:[#allocation5 + $0x28] sm:$0xff] %v4162_v21 }
 0x216   : > { %1166 = vst [vmem:[#allocation5 + $0x38] sm:$0xff] %v4162_v21 }
 0x217   : > { %v1068_v1 = vpop.f32.mrf.mxu1  ;;  %1167 = vst [vmem:[#allocation5 + $0x30] sm:$0xff] %v4162_v21 }
 0x218   : > { %v1069_v49 = vadd.f32 %v1068_v1, %v4956_v45  ;;  %v1112_v26 = vpop.f32.mrf.mxu2  ;;  %1168 = vst [vmem:[#allocation5 + $0x20] sm:$0xff] %v4162_v21 }
 0x219   : > { %v1113_v16 = vadd.f32 %v1112_v26, %v4960_v63  ;;  %1169 = vst [vmem:[#allocation5 + $0x10] sm:$0xff] %v4162_v21 }
 0x21a   : > { %1140 = vst [vmem:[#allocation2 + $0x98] sm:$0xff] %v1069_v49 }
 0x21b   : > { %1141 = vst [vmem:[#allocation2 + $0x18] sm:$0xff] %v1113_v16 }
 0x21c   : > { %1170 = vst [vmem:[#allocation5 + $0x18] sm:$0xff] %v4162_v21 }
 0x21d   : > { %1171 = vst [vmem:[#allocation5 + $0x40] sm:$0xff] %v4162_v21 }
 0x220   : > { %v1115_v50 = vpop.f32.mrf.mxu2 }
 0x221   : > { %v1116_v3 = vadd.f32 %v1115_v50, %v4960_v63 }
 0x223   : > { %1144 = vst [vmem:[#allocation2 + $0x68] sm:$0xff] %v1116_v3 }
 0x224 PF: > { %p3448_p8 = scmp.ne.s32.totalorder %s4138_s21, 0 }
 0x225   : > { %s5127_s20 = smov (!%p3448_p8), 0  }
 0x226   : > { %1174 = sbr.rel (%p3448_p8) target bundleno = 1164 (0x48c), region = 84 }
 0x22b   : > { %v1183_v45 = vld [vmem:[#allocation2 + $0xd0] sm:$0xff]  ;;  %v1402_v11 = vld [vmem:[#allocation2 + $0x68] sm:$0xff]  ;;  %v1401_v56 = vld [vmem:[#allocation2 + $0x18] sm:$0xff]  ;;  %vm1184_vm0 = vcmask 588800  }
 0x22c   : > { %v1182_v55 = vld [vmem:[#allocation2 + $0x90] sm:$0xff]  ;;  %1288 = vmatpush.msra.mxu0 %v1183_v45  ;;  %1506 = vmatpush.msra.mxu1 %v1402_v11  ;;  %v1181_v12 = vld [vmem:[#allocation2 + $0x58] sm:$0xff]  ;;  %v1400_v63 = vld [vmem:[#allocation2 + $0xa0] sm:$0xff] }
 0x22d   : > { %3684 = vmatpush.msra.mxu3 %v1183_v45  ;;  %v1180_v44 = vld [vmem:[#allocation2 + $0x38] sm:$0xff]  ;;  %v1179_v47 = vld [vmem:[#allocation2 + $0x88] sm:$0xff]  ;;  %v1397_v57 = vld [vmem:[#allocation2 + $0x30] sm:$0xff] }
 0x22e   : > { %1289 = vmatpush.msra.mxu0 %v1182_v55  ;;  %1507 = vmatpush.msra.mxu1 %v1401_v56  ;;  %v1399_v2 = vld [vmem:[#allocation2 + $0xb8] sm:$0xff]  ;;  %v1398_v8 = vld [vmem:[#allocation2 + $0x8] sm:$0xff]  ;;  %v1177_v38 = vld [vmem:[#allocation2 + $0x40] sm:$0xff] }
 0x22f   : > { %3685 = vmatpush.msra.mxu3 %v1182_v55  ;;  %v1178_v15 = vld [vmem:[#allocation2 + $0xa8] sm:$0xff]  ;;  %v1396_v40 = vld [vmem:[#allocation2 + $0x80] sm:$0xff]  ;;  %v1175_v1 = vld [vmem:[#allocation2 + $0xb0] sm:$0xff] }
 0x230   : > { %1290 = vmatpush.msra.mxu0 %v1181_v12  ;;  %1508 = vmatpush.msra.mxu1 %v1400_v63  ;;  %v1176_v30 = vld [vmem:[#allocation2 + $0x48] sm:$0xff]  ;;  %v1394_v21 = vld [vmem:[#allocation2 + $0x10] sm:$0xff]  ;;  %v1656_v50 = vld [vmem:[#allocation14 + $0x60] sm:$0xff] }
 0x231   : > { %3686 = vmatpush.msra.mxu3 %v1181_v12  ;;  %v1395_v17 = vld [vmem:[#allocation2 + $0x28] sm:$0xff]  ;;  %v1659_v49 = vld [vmem:[#allocation14 + $0x78] sm:$0xff]  ;;  %v1652_v55 = vld [vmem:[#allocation14 + $0x40] sm:$0xff] }
 0x232   : > { %1291 = vmatpush.msra.mxu0 %v1180_v44  ;;  %1509 = vmatpush.msra.mxu1 %v1399_v2  ;;  %v1658_v26 = vld [vmem:[#allocation14 + $0x70] sm:$0xff]  ;;  %v1657_v16 = vld [vmem:[#allocation14 + $0x68] sm:$0xff]  ;;  %v1655_v3 = vld [vmem:[#allocation14 + $0x58] sm:$0xff] }
 0x233   : > { %3687 = vmatpush.msra.mxu3 %v1180_v44  ;;  %1660 = vmatpush.msra.mxu2 %v1659_v49  ;;  %v1654_v45 = vld [vmem:[#allocation14 + $0x50] sm:$0xff]  ;;  %v1648_v44 = vld [vmem:[#allocation14 + $0x20] sm:$0xff] }
 0x234   : > { %1292 = vmatpush.msra.mxu0 %v1179_v47  ;;  %1510 = vmatpush.msra.mxu1 %v1398_v8  ;;  %v1650_v12 = vld [vmem:[#allocation14 + $0x30] sm:$0xff] }
 0x235   : > { %3688 = vmatpush.msra.mxu3 %v1179_v47  ;;  %1661 = vmatpush.msra.mxu2 %v1658_v26  ;;  %v1646_v47 = vld [vmem:[#allocation14 + $0x10] sm:$0xff] }
 0x236   : > { %1293 = vmatpush.msra.mxu0 %v1178_v15  ;;  %1511 = vmatpush.msra.mxu1 %v1397_v57 }
 0x237   : > { %3689 = vmatpush.msra.mxu3 %v1178_v15  ;;  %1662 = vmatpush.msra.mxu2 %v1657_v16  ;;  %v1644_v15 = vld [vmem:[#allocation14] sm:$0xff] }
 0x238   : > { %1294 = vmatpush.msra.mxu0 %v1177_v38  ;;  %1512 = vmatpush.msra.mxu1 %v1396_v40 }
 0x239   : > { %3690 = vmatpush.msra.mxu3 %v1177_v38  ;;  %1663 = vmatpush.msra.mxu2 %v1656_v50  ;;  %v5874_v38 = vld [vmem:[#allocation24_spill] sm:$0xff] }
 0x23a   : > { %1295 = vmatpush.msra.mxu0 %v1176_v30  ;;  %1513 = vmatpush.msra.mxu1 %v1395_v17 }
 0x23b   : > { %3691 = vmatpush.msra.mxu3 %v1176_v30  ;;  %1664 = vmatpush.msra.mxu2 %v1655_v3  ;;  %v5876_v30 = vld [vmem:[#allocation29_spill] sm:$0xff] }
 0x23c   : > { %1296 = vmatpush.msra.mxu0 %v1175_v1  ;;  %1514 = vmatpush.msra.mxu1 %v1394_v21 }
 0x23d   : > { %3449 = vmatmul.msk.f32.vlgmr.msra.gmra.mxu0 %vm1184_vm0, %v4463_v60  ;;  %3481 = vmatmul.msk.f32.vlgmr.msra.gmra.mxu1 %vm1184_vm0, %v4598_v0 }
 0x23e   : > { %3692 = vmatpush.msra.mxu3 %v1175_v1  ;;  %1665 = vmatpush.msra.mxu2 %v1654_v45 }
 0x23f   : > { %3474 = vmatmul.msk.f32.vlgmr.msra.gmra.mxu3 %vm1184_vm0, %v4613_v10 }
 0x240   : > { %3693 = vmatpush.msrb.mxu3 %v1402_v11  ;;  %v1653_v11 = vld [vmem:[#allocation14 + $0x48] sm:$0xff] }
 0x241   : > { %1666 = vmatpush.msra.mxu2 %v1653_v11 }
 0x242   : > { %3694 = vmatpush.msrb.mxu3 %v1401_v56  ;;  %v1651_v56 = vld [vmem:[#allocation14 + $0x38] sm:$0xff] }
 0x243   : > { %1667 = vmatpush.msra.mxu2 %v1652_v55 }
 0x244   : > { %3695 = vmatpush.msrb.mxu3 %v1400_v63  ;;  %v1649_v63 = vld [vmem:[#allocation14 + $0x28] sm:$0xff] }
 0x245   : > { %3450 = vmatmul.msk.f32.gmra.mxu0 %vm1184_vm0, %v4484_v5  ;;  %3482 = vmatmul.msk.f32.gmra.mxu1 %vm1184_vm0, %v4653_v42 }
 0x246   : > { %3696 = vmatpush.msrb.mxu3 %v1399_v2  ;;  %1668 = vmatpush.msra.mxu2 %v1651_v56  ;;  %v1647_v2 = vld [vmem:[#allocation14 + $0x18] sm:$0xff] }
 0x247   : > { %3475 = vmatmul.msk.f32.gmra.mxu3 %vm1184_vm0, %v4561_v43 }
 0x248   : > { %3697 = vmatpush.msrb.mxu3 %v1398_v8  ;;  %1669 = vmatpush.msra.mxu2 %v1650_v12  ;;  %v1645_v8 = vld [vmem:[#allocation14 + $0x8] sm:$0xff] }
 0x24a   : > { %3698 = vmatpush.msrb.mxu3 %v1397_v57  ;;  %1670 = vmatpush.msra.mxu2 %v1649_v63  ;;  %v5873_v57 = vld [vmem:[#allocation46_spill] sm:$0xff] }
 0x24c   : > { %3699 = vmatpush.msrb.mxu3 %v1396_v40  ;;  %1671 = vmatpush.msra.mxu2 %v1648_v44  ;;  %v5875_v40 = vld [vmem:[#allocation39_spill] sm:$0xff] }
 0x24d   : > { %3451 = vmatmul.msk.f32.gmra.mxu0 %vm1184_vm0, %v4459_v59  ;;  %3483 = vmatmul.msk.f32.gmra.mxu1 %vm1184_vm0, %v4649_v39 }
 0x24e   : > { %3700 = vmatpush.msrb.mxu3 %v1395_v17  ;;  %1672 = vmatpush.msra.mxu2 %v1647_v2  ;;  %v5877_v17 = vld [vmem:[#allocation35_spill] sm:$0xff] }
 0x24f   : > { %3476 = vmatmul.msk.f32.gmra.mxu3 %vm1184_vm0, %v4629_v20 }
 0x250   : > { %3701 = vmatpush.msrb.mxu3 %v1394_v21  ;;  %1673 = vmatpush.msra.mxu2 %v1646_v47 }
 0x252   : > { %3702 = vmatpush.msra.mxu3 %v1659_v49  ;;  %1674 = vmatpush.msra.mxu2 %v1645_v8 }
 0x254   : > { %3703 = vmatpush.msra.mxu3 %v1658_v26  ;;  %1675 = vmatpush.msra.mxu2 %v1644_v15  ;;  %v5878_v26 = vld [vmem:[#allocation28_spill] sm:$0xff] }
 0x255   : > { %3452 = vmatmul.msk.f32.gmra.mxu0 %vm1184_vm0, %v4480_v4  ;;  %3484 = vmatmul.msk.f32.gmra.mxu1 %vm1184_vm0, %v4610_v9 }
 0x256   : > { %3704 = vmatpush.msra.mxu3 %v1657_v16  ;;  %v5879_v16 = vld [vmem:[#allocation41_spill] sm:$0xff] }
 0x257   : > { %3477 = vmatmul.msk.f32.gmra.mxu3 %vm1184_vm0, %v4625_v19 }
 0x258   : > { %3705 = vmatpush.msra.mxu3 %v1656_v50 }
 0x25a   : > { %3706 = vmatpush.msra.mxu3 %v1655_v3 }
 0x25c   : > { %3707 = vmatpush.msra.mxu3 %v1654_v45 }
 0x25d   : > { %3453 = vmatmul.msk.f32.gmra.mxu0 %vm1184_vm0, %v4416_v41  ;;  %3485 = vmatmul.msk.f32.gmra.mxu1 %vm1184_vm0, %v4665_v53 }
 0x25e   : > { %3708 = vmatpush.msra.mxu3 %v1653_v11  ;;  %v5880_v11 = vld [vmem:[#allocation25_spill] sm:$0xff] }
 0x25f   : > { %3478 = vmatmul.msk.f32.gmra.mxu3 %vm1184_vm0, %v4583_v54 }
 0x260   : > { %3709 = vmatpush.msra.mxu3 %v1652_v55  ;;  %v5881_v55 = vld [vmem:[#allocation40_spill] sm:$0xff] }
 0x262   : > { %3710 = vmatpush.msra.mxu3 %v1651_v56 }
 0x264   : > { %3711 = vmatpush.msra.mxu3 %v1650_v12 }
 0x265   : > { %3454 = vmatmul.msk.f32.gmra.mxu0 %vm1184_vm0, %v4429_v46  ;;  %3486 = vmatmul.msk.f32.gmra.mxu1 %vm1184_vm0, %v4661_v52 }
 0x266   : > { %3712 = vmatpush.msra.mxu3 %v1649_v63 }
 0x267   : > { %3479 = vmatmul.msk.f32.gmra.mxu3 %vm1184_vm0, %v4641_v29 }
 0x268   : > { %3713 = vmatpush.msra.mxu3 %v1648_v44  ;;  %v5882_v44 = vld [vmem:[#allocation31_spill] sm:$0xff] }
 0x26a   : > { %3714 = vmatpush.msra.mxu3 %v1647_v2  ;;  %v5883_v2 = vld [vmem:[#allocation36_spill] sm:$0xff] }
 0x26c   : > { %3715 = vmatpush.msra.mxu3 %v1646_v47 }
 0x26d   : > { %3455 = vmatmul.msk.f32.gmra.mxu0 %vm1184_vm0, %v4505_v14  ;;  %3487 = vmatmul.msk.f32.gmra.mxu1 %vm1184_vm0, %v4622_v18 }
 0x26e   : > { %3716 = vmatpush.msra.mxu3 %v1645_v8 }
 0x26f   : > { %3480 = vmatmul.msk.f32.gmra.mxu3 %vm1184_vm0, %v4637_v28 }
 0x270   : > { %3717 = vmatpush.msra.mxu3 %v1644_v15 }
 0x275   : > { %3456 = vmatmul.msk.f32.gmra.mxu0 %vm1184_vm0, %v4501_v13  ;;  %3488 = vmatmul.msk.f32.gmra.mxu1 %vm1184_vm0, %v4677_v7 }
 0x277   : > { %3506 = vmatmul.msk.f32.vlgmr.msrb.gmra.mxu3 %vm1184_vm0, %v4741_v61 }
 0x27d   : > { %3457 = vmatmul.msk.f32.gmra.mxu0 %vm1184_vm0, %v4442_v51  ;;  %3489 = vmatmul.msk.f32.gmra.mxu1 %vm1184_vm0, %v4673_v6 }
 0x27f   : > { %3507 = vmatmul.msk.f32.gmra.mxu3 %vm1184_vm0, %v4737_v33 }
 0x285   : > { %3458 = vmatmul.msk.f32.gmra.mxu0 %vm1184_vm0, %v4526_v23  ;;  %3490 = vmatmul.msk.f32.gmra.mxu1 %vm1184_vm0, %v4634_v27 }
 0x287   : > { %3508 = vmatmul.msk.f32.gmra.mxu3 %vm1184_vm0, %v4706_v62 }
 0x28d   : > { %3459 = vmatmul.msk.f32.gmra.mxu0 %vm1184_vm0, %v4522_v22  ;;  %3491 = vmatmul.msk.f32.gmra.mxu1 %vm1184_vm0, %v4689_v25 }
 0x28f   : > { %3509 = vmatmul.msk.f32.gmra.mxu3 %vm1184_vm0, %v4749_v35 }
 0x295   : > { %3460 = vmatmul.msk.f32.gmra.mxu0 %vm1184_vm0, %v4456_v58  ;;  %3492 = vmatmul.msk.f32.gmra.mxu1 %vm1184_vm0, %v4685_v24 }
 0x297   : > { %3510 = vmatmul.msk.f32.gmra.mxu3 %vm1184_vm0, %v4745_v36 }
 0x29d   : > { %3461 = vmatmul.msk.f32.gmra.mxu0 %vm1184_vm0, %v4547_v32  ;;  %3493 = vmatmul.msk.f32.gmra.mxu1 %vm1184_vm0, %v4646_v37 }
 0x29f   : > { %3511 = vmatmul.msk.f32.gmra.mxu3 %vm1184_vm0, %v4718_v34 }
 0x2a5   : > { %3462 = vmatmul.msk.f32.gmra.mxu0 %vm1184_vm0, %v4543_v31  ;;  %3494 = vmatmul.msk.f32.gmra.mxu1 %vm1184_vm0, %v4701_v48 }
 0x2a7   : > { %3512 = vmatmul.msk.f32.gmra.mxu3 %vm1184_vm0, %v5873_v57  ;;  %v5884_v57 = vld [vmem:[#allocation30_spill] sm:$0xff] }
 0x2ad   : > { %3463 = vmatmul.msk.f32.gmra.mxu0 %vm1184_vm0, %v5874_v38  ;;  %3495 = vmatmul.msk.f32.gmra.mxu1 %vm1184_vm0, %v5875_v40  ;;  %v5885_v38 = vld [vmem:[#allocation43_spill] sm:$0xff] }
 0x2b5   : > { %3464 = vmatmul.msk.f32.gmra.mxu0 %vm1184_vm0, %v5876_v30  ;;  %3496 = vmatmul.msk.f32.gmra.mxu1 %vm1184_vm0, %v5877_v17 }
 0x2ba   : > { %v1298_v1 = vpop.f32.mrf.mxu0  ;;  %v1516_v21 = vpop.f32.mrf.mxu1 }
 0x2bb   : > { %v1612_v49 = vmul.f32 %v1516_v21, %v1298_v1  ;;  %v5886_v1 = vld [vmem:[#allocation26_spill] sm:$0xff] }
 0x2bc   : > { %v5887_v21 = vld [vmem:[#allocation42_spill] sm:$0xff] }
 0x2bd   : > { %3465 = vmatmul.msk.f32.gmra.mxu0 %vm1184_vm0, %v5878_v26  ;;  %3497 = vmatmul.msk.f32.gmra.mxu1 %vm1184_vm0, %v5879_v16 }
 0x2be   : > { %1676 = vmatmul.f32.vlgmr.msra.gmra.mxu2 %v1612_v49 }
 0x2c2   : > { %v1301_v50 = vpop.f32.mrf.mxu0  ;;  %v1519_v3 = vpop.f32.mrf.mxu1 }
 0x2c3   : > { %v1613_v45 = vmul.f32 %v1519_v3, %v1301_v50  ;;  %v5888_v50 = vld [vmem:[#allocation33_spill] sm:$0xff] }
 0x2c4   : > { %v5889_v3 = vld [vmem:[#allocation37_spill] sm:$0xff] }
 0x2c5   : > { %3466 = vmatmul.msk.f32.gmra.mxu0 %vm1184_vm0, %v5880_v11  ;;  %3498 = vmatmul.msk.f32.gmra.mxu1 %vm1184_vm0, %v5881_v55 }
 0x2c6   : > { %1679 = vmatmul.f32.gmra.mxu2 %v1613_v45 }
 0x2ca   : > { %v1304_v56 = vpop.f32.mrf.mxu0  ;;  %v1522_v12 = vpop.f32.mrf.mxu1 }
 0x2cb   : > { %v1614_v63 = vmul.f32 %v1522_v12, %v1304_v56  ;;  %v5890_v56 = vld [vmem:[#allocation32_spill] sm:$0xff]  ;;  %v5891_v12 = vld [vmem:[#allocation45_spill] sm:$0xff] }
 0x2cd   : > { %3467 = vmatmul.msk.f32.gmra.mxu0 %vm1184_vm0, %v5882_v44  ;;  %3499 = vmatmul.msk.f32.gmra.mxu1 %vm1184_vm0, %v5883_v2 }
 0x2ce   : > { %1682 = vmatmul.f32.gmra.mxu2 %v1614_v63 }
 0x2d2   : > { %v1307_v47 = vpop.f32.mrf.mxu0  ;;  %v1525_v8 = vpop.f32.mrf.mxu1 }
 0x2d3   : > { %v1615_v15 = vmul.f32 %v1525_v8, %v1307_v47  ;;  %v5892_v47 = vld [vmem:[#allocation27_spill] sm:$0xff]  ;;  %v5893_v8 = vld [vmem:[#allocation44_spill] sm:$0xff] }
 0x2d5   : > { %3468 = vmatmul.msk.f32.gmra.mxu0 %vm1184_vm0, %v5884_v57  ;;  %3500 = vmatmul.msk.f32.gmra.mxu1 %vm1184_vm0, %v5885_v38 }
 0x2d6   : > { %1685 = vmatmul.f32.gmra.mxu2 %v1615_v15 }
 0x2da   : > { %v1310_v40 = vpop.f32.mrf.mxu0  ;;  %v1528_v30 = vpop.f32.mrf.mxu1 }
 0x2db   : > { %v1616_v17 = vmul.f32 %v1528_v30, %v1310_v40  ;;  %v5894_v40 = vld [vmem:[#allocation34_spill] sm:$0xff] }
 0x2dc   : > { %v5895_v30 = vld [vmem:[#allocation38_spill] sm:$0xff] }
 0x2dd   : > { %3469 = vmatmul.msk.f32.gmra.mxu0 %vm1184_vm0, %v5886_v1  ;;  %3501 = vmatmul.msk.f32.gmra.mxu1 %vm1184_vm0, %v5887_v21 }
 0x2de   : > { %1688 = vmatmul.f32.gmra.mxu2 %v1616_v17 }
 0x2e2   : > { %v1313_v49 = vpop.f32.mrf.mxu0  ;;  %v1531_v26 = vpop.f32.mrf.mxu1 }
 0x2e3   : > { %v1617_v16 = vmul.f32 %v1531_v26, %v1313_v49 }
 0x2e5   : > { %3470 = vmatmul.msk.f32.gmra.mxu0 %vm1184_vm0, %v5888_v50  ;;  %3502 = vmatmul.msk.f32.gmra.mxu1 %vm1184_vm0, %v5889_v3 }
 0x2e6   : > { %1691 = vmatmul.f32.gmra.mxu2 %v1617_v16 }
 0x2ea   : > { %v1316_v45 = vpop.f32.mrf.mxu0  ;;  %v1534_v11 = vpop.f32.mrf.mxu1 }
 0x2eb   : > { %v1618_v55 = vmul.f32 %v1534_v11, %v1316_v45 }
 0x2ed   : > { %3471 = vmatmul.msk.f32.gmra.mxu0 %vm1184_vm0, %v5890_v56  ;;  %3503 = vmatmul.msk.f32.gmra.mxu1 %vm1184_vm0, %v5891_v12 }
 0x2ee   : > { %1694 = vmatmul.f32.gmra.mxu2 %v1618_v55 }
 0x2f2   : > { %v1319_v63 = vpop.f32.mrf.mxu0  ;;  %v1537_v44 = vpop.f32.mrf.mxu1 }
 0x2f3   : > { %v1619_v2 = vmul.f32 %v1537_v44, %v1319_v63 }
 0x2f5   : > { %3472 = vmatmul.msk.f32.gmra.mxu0 %vm1184_vm0, %v5892_v47  ;;  %3504 = vmatmul.msk.f32.gmra.mxu1 %vm1184_vm0, %v5893_v8 }
 0x2f6   : > { %1697 = vmatmul.f32.gmra.mxu2 %v1619_v2 }
 0x2fa   : > { %v1322_v15 = vpop.f32.mrf.mxu0  ;;  %v1540_v57 = vpop.f32.mrf.mxu1 }
 0x2fb   : > { %v1620_v38 = vmul.f32 %v1540_v57, %v1322_v15  ;;  %v5118_v15 = vpop.f32.mrf.mxu3 }
 0x2fd   : > { %3473 = vmatmul.msk.f32.gmra.mxu0 %vm1184_vm0, %v5894_v40  ;;  %3505 = vmatmul.msk.f32.gmra.mxu1 %vm1184_vm0, %v5895_v30 }
 0x2fe   : > { %1700 = vmatmul.f32.gmra.mxu2 %v1620_v38 }
 0x302   : > { %v1325_v17 = vpop.f32.mrf.mxu0  ;;  %v1543_v1 = vpop.f32.mrf.mxu1 }
 0x303   : > { %v1621_v21 = vmul.f32 %v1543_v1, %v1325_v17  ;;  %v5120_v30 = vpop.f32.mrf.mxu3 }
 0x306   : > { %1703 = vmatmul.f32.gmra.mxu2 %v1621_v21 }
 0x30a   : > { %v1328_v49 = vpop.f32.mrf.mxu0  ;;  %v1546_v26 = vpop.f32.mrf.mxu1 }
 0x30b   : > { %v1622_v16 = vmul.f32 %v1546_v26, %v1328_v49  ;;  %v5122_v49 = vpop.f32.mrf.mxu3 }
 0x30e   : > { %1706 = vmatmul.f32.gmra.mxu2 %v1622_v16 }
 0x312   : > { %v1331_v50 = vpop.f32.mrf.mxu0  ;;  %v1549_v3 = vpop.f32.mrf.mxu1 }
 0x313   : > { %v1623_v45 = vmul.f32 %v1549_v3, %v1331_v50 }
 0x316   : > { %1709 = vmatmul.f32.gmra.mxu2 %v1623_v45 }
 0x31a   : > { %v1334_v11 = vpop.f32.mrf.mxu0  ;;  %v1552_v55 = vpop.f32.mrf.mxu1 }
 0x31b   : > { %v1624_v56 = vmul.f32 %v1552_v55, %v1334_v11 }
 0x31e   : > { %1712 = vmatmul.f32.gmra.mxu2 %v1624_v56  ;;  %v1382_v56 = vpop.f32.mrf.mxu3 }
 0x322   : > { %v1337_v12 = vpop.f32.mrf.mxu0  ;;  %v1555_v63 = vpop.f32.mrf.mxu1 }
 0x323   : > { %v1625_v44 = vmul.f32 %v1555_v63, %v1337_v12 }
 0x326   : > { %1715 = vmatmul.f32.gmra.mxu2 %v1625_v44 }
 0x32a   : > { %v1340_v2 = vpop.f32.mrf.mxu0  ;;  %v1558_v47 = vpop.f32.mrf.mxu1 }
 0x32b   : > { %v1626_v8 = vmul.f32 %v1558_v47, %v1340_v2 }
 0x32e   : > { %1718 = vmatmul.f32.gmra.mxu2 %v1626_v8  ;;  %v1385_v8 = vpop.f32.mrf.mxu3 }
 0x332   : > { %v1343_v57 = vpop.f32.mrf.mxu0  ;;  %v1561_v38 = vpop.f32.mrf.mxu1 }
 0x333   : > { %v1627_v40 = vmul.f32 %v1561_v38, %v1343_v57 }
 0x336   : > { %1721 = vmatmul.f32.gmra.mxu2 %v1627_v40 }
 0x33a   : > { %v1346_v17 = vpop.f32.mrf.mxu0  ;;  %v1564_v1 = vpop.f32.mrf.mxu1 }
 0x33b   : > { %v1628_v21 = vmul.f32 %v1564_v1, %v1346_v17  ;;  %v1388_v1 = vpop.f32.mrf.mxu3 }
 0x33e   : > { %1724 = vmatmul.f32.gmra.mxu2 %v1628_v21 }
 0x341   : > { %v1677_v26 = vpop.f32.mrf.mxu2 }
 0x342   : > { %1774 = vst [vmem:[#allocation6] sm:$0xff] %v1677_v26  ;;  %v1349_v16 = vpop.f32.mrf.mxu0  ;;  %v1567_v50 = vpop.f32.mrf.mxu1 }
 0x343   : > { %v1629_v3 = vmul.f32 %v1567_v50, %v1349_v16 }
 0x346   : > { %1727 = vmatmul.f32.gmra.mxu2 %v1629_v3  ;;  %v1391_v3 = vpop.f32.mrf.mxu3 }
 0x349   : > { %v1680_v45 = vpop.f32.mrf.mxu2 }
 0x34a   : > { %1775 = vst [vmem:[#allocation6 + $0x8] sm:$0xff] %v1680_v45  ;;  %v1352_v11 = vpop.f32.mrf.mxu0  ;;  %v1570_v55 = vpop.f32.mrf.mxu1 }
 0x34b   : > { %v1630_v12 = vmul.f32 %v1570_v55, %v1352_v11 }
 0x34e   : > { %1730 = vmatmul.f32.gmra.mxu2 %v1630_v12 }
 0x351   : > { %v1683_v63 = vpop.f32.mrf.mxu2 }
 0x352   : > { %1776 = vst [vmem:[#allocation6 + $0x10] sm:$0xff] %v1683_v63  ;;  %v1355_v44 = vpop.f32.mrf.mxu0  ;;  %v1573_v2 = vpop.f32.mrf.mxu1 }
 0x353   : > { %v1631_v47 = vmul.f32 %v1573_v2, %v1355_v44 }
 0x356   : > { %1733 = vmatmul.f32.gmra.mxu2 %v1631_v47 }
 0x359   : > { %v1686_v57 = vpop.f32.mrf.mxu2 }
 0x35a   : > { %1777 = vst [vmem:[#allocation6 + $0x18] sm:$0xff] %v1686_v57  ;;  %v1358_v38 = vpop.f32.mrf.mxu0  ;;  %v1576_v40 = vpop.f32.mrf.mxu1 }
 0x35b   : > { %v1632_v17 = vmul.f32 %v1576_v40, %v1358_v38  ;;  %v1591_v57 = vpop.f32.mrf.mxu3 }
 0x35e   : > { %1736 = vmatmul.f32.gmra.mxu2 %v1632_v17 }
 0x361   : > { %v1689_v21 = vpop.f32.mrf.mxu2 }
 0x362   : > { %1778 = vst [vmem:[#allocation6 + $0x20] sm:$0xff] %v1689_v21  ;;  %v1361_v26 = vpop.f32.mrf.mxu0  ;;  %v1579_v16 = vpop.f32.mrf.mxu1 }
 0x363   : > { %v1633_v50 = vmul.f32 %v1579_v16, %v1361_v26  ;;  %v1594_v26 = vpop.f32.mrf.mxu3 }
 0x366   : > { %1739 = vmatmul.f32.gmra.mxu2 %v1633_v50  ;;  %v1637_v50 = vmul.f32 %v1591_v57, %v5118_v15 }
 0x369   : > { %v1692_v45 = vpop.f32.mrf.mxu2 }
 0x36a   : > { %1779 = vst [vmem:[#allocation6 + $0x28] sm:$0xff] %v1692_v45  ;;  %v1364_v11 = vpop.f32.mrf.mxu0  ;;  %v1582_v55 = vpop.f32.mrf.mxu1 }
 0x36b   : > { %v1634_v12 = vmul.f32 %v1582_v55, %v1364_v11  ;;  %v1597_v45 = vpop.f32.mrf.mxu3  ;;  %v1638_v55 = vmul.f32 %v1594_v26, %v5120_v30 }
 0x36e   : > { %1742 = vmatmul.f32.gmra.mxu2 %v1634_v12 }
 0x371   : > { %v1695_v63 = vpop.f32.mrf.mxu2 }
 0x372   : > { %1780 = vst [vmem:[#allocation6 + $0x30] sm:$0xff] %v1695_v63  ;;  %v1367_v44 = vpop.f32.mrf.mxu0  ;;  %v1585_v2 = vpop.f32.mrf.mxu1 }
 0x373   : > { %v1635_v47 = vmul.f32 %v1585_v2, %v1367_v44  ;;  %v1600_v63 = vpop.f32.mrf.mxu3  ;;  %v1639_v44 = vmul.f32 %v1597_v45, %v5122_v49 }
 0x375   : > { %1745 = vmatmul.f32.vlgmr.msra.gmra.mxu3 %v1635_v47  ;;  %v1640_v47 = vmul.f32 %v1600_v63, %v1382_v56 }
 0x379   : > { %v1698_v38 = vpop.f32.mrf.mxu2 }
 0x37a   : > { %1781 = vst [vmem:[#allocation6 + $0x38] sm:$0xff] %v1698_v38  ;;  %v1370_v40 = vpop.f32.mrf.mxu0  ;;  %v1588_v17 = vpop.f32.mrf.mxu1 }
 0x37b   : > { %v1636_v21 = vmul.f32 %v1588_v17, %v1370_v40  ;;  %v1603_v38 = vpop.f32.mrf.mxu3 }
 0x37c   : > { %v1641_v15 = vmul.f32 %v1603_v38, %v1385_v8 }
 0x37d   : > { %1748 = vmatmul.f32.gmra.mxu3 %v1636_v21 }
 0x381   : > { %v1701_v16 = vpop.f32.mrf.mxu2 }
 0x382   : > { %1782 = vst [vmem:[#allocation6 + $0x40] sm:$0xff] %v1701_v16 }
 0x383   : > { %v1606_v57 = vpop.f32.mrf.mxu3 }
 0x384   : > { %v1642_v30 = vmul.f32 %v1606_v57, %v1388_v1 }
 0x385   : > { %1751 = vmatmul.f32.gmra.mxu3 %v1637_v50 }
 0x389   : > { %v1704_v11 = vpop.f32.mrf.mxu2 }
 0x38a   : > { %1783 = vst [vmem:[#allocation6 + $0x48] sm:$0xff] %v1704_v11 }
 0x38b   : > { %v1609_v21 = vpop.f32.mrf.mxu3 }
 0x38c   : > { %v1643_v16 = vmul.f32 %v1609_v21, %v1391_v3 }
 0x38d   : > { %1754 = vmatmul.f32.gmra.mxu3 %v1638_v55 }
 0x391   : > { %v1707_v12 = vpop.f32.mrf.mxu2 }
 0x392   : > { %1784 = vst [vmem:[#allocation6 + $0x50] sm:$0xff] %v1707_v12 }
 0x395   : > { %1757 = vmatmul.f32.gmra.mxu3 %v1639_v44 }
 0x399   : > { %v1710_v2 = vpop.f32.mrf.mxu2 }
 0x39a   : > { %1785 = vst [vmem:[#allocation6 + $0x58] sm:$0xff] %v1710_v2 }
 0x39d   : > { %1760 = vmatmul.f32.gmra.mxu3 %v1640_v47 }
 0x3a1   : > { %v1713_v40 = vpop.f32.mrf.mxu2 }
 0x3a2   : > { %1786 = vst [vmem:[#allocation6 + $0x60] sm:$0xff] %v1713_v40 }
 0x3a5   : > { %1763 = vmatmul.f32.gmra.mxu3 %v1641_v15 }
 0x3a9   : > { %v1716_v17 = vpop.f32.mrf.mxu2 }
 0x3aa   : > { %1787 = vst [vmem:[#allocation6 + $0x68] sm:$0xff] %v1716_v17 }
 0x3ad   : > { %1766 = vmatmul.f32.gmra.mxu3 %v1642_v30 }
 0x3b1   : > { %v1719_v26 = vpop.f32.mrf.mxu2 }
 0x3b2   : > { %1788 = vst [vmem:[#allocation6 + $0x70] sm:$0xff] %v1719_v26 }
 0x3b5   : > { %1769 = vmatmul.f32.gmra.mxu3 %v1643_v16 }
 0x3b9   : > { %v1722_v49 = vpop.f32.mrf.mxu2 }
 0x3ba   : > { %1789 = vst [vmem:[#allocation6 + $0x78] sm:$0xff] %v1722_v49 }
 0x3c1   : > { %v1725_v50 = vpop.f32.mrf.mxu2 }
 0x3c2   : > { %1790 = vst [vmem:[#allocation6 + $0x80] sm:$0xff] %v1725_v50 }
 0x3c9   : > { %v1728_v56 = vpop.f32.mrf.mxu2 }
 0x3ca   : > { %1791 = vst [vmem:[#allocation6 + $0x88] sm:$0xff] %v1728_v56 }
 0x3d1   : > { %v1731_v45 = vpop.f32.mrf.mxu2 }
 0x3d2   : > { %1792 = vst [vmem:[#allocation6 + $0x90] sm:$0xff] %v1731_v45 }
 0x3d9   : > { %v1734_v8 = vpop.f32.mrf.mxu2 }
 0x3da   : > { %1793 = vst [vmem:[#allocation6 + $0x98] sm:$0xff] %v1734_v8 }
 0x3e1   : > { %v1737_v11 = vpop.f32.mrf.mxu2 }
 0x3e2   : > { %1794 = vst [vmem:[#allocation6 + $0xa0] sm:$0xff] %v1737_v11 }
 0x3e9   : > { %v1740_v55 = vpop.f32.mrf.mxu2 }
 0x3ea   : > { %1795 = vst [vmem:[#allocation6 + $0xa8] sm:$0xff] %v1740_v55 }
 0x3f1   : > { %v1743_v1 = vpop.f32.mrf.mxu2 }
 0x3f2   : > { %1796 = vst [vmem:[#allocation6 + $0xb0] sm:$0xff] %v1743_v1 }
 0x3f8   : > { %v1746_v12 = vpop.f32.mrf.mxu3 }
 0x3f9   : > { %1797 = vst [vmem:[#allocation6 + $0xb8] sm:$0xff] %v1746_v12 }
 0x400   : > { %v1749_v3 = vpop.f32.mrf.mxu3 }
 0x401   : > { %1798 = vst [vmem:[#allocation6 + $0xc0] sm:$0xff] %v1749_v3 }
 0x408   : > { %v1752_v63 = vpop.f32.mrf.mxu3 }
 0x409   : > { %1799 = vst [vmem:[#allocation6 + $0xc8] sm:$0xff] %v1752_v63 }
 0x410   : > { %v1755_v44 = vpop.f32.mrf.mxu3 }
 0x411   : > { %1800 = vst [vmem:[#allocation6 + $0xd0] sm:$0xff] %v1755_v44 }
 0x418   : > { %v1758_v2 = vpop.f32.mrf.mxu3 }
 0x419   : > { %1801 = vst [vmem:[#allocation6 + $0xd8] sm:$0xff] %v1758_v2 }
 0x420   : > { %v1761_v47 = vpop.f32.mrf.mxu3 }
 0x421   : > { %1802 = vst [vmem:[#allocation6 + $0xe0] sm:$0xff] %v1761_v47 }
 0x428   : > { %v1764_v38 = vpop.f32.mrf.mxu3 }
 0x429   : > { %1803 = vst [vmem:[#allocation6 + $0xe8] sm:$0xff] %v1764_v38 }
 0x430   : > { %v1767_v40 = vpop.f32.mrf.mxu3 }
 0x431   : > { %1804 = vst [vmem:[#allocation6 + $0xf0] sm:$0xff] %v1767_v40 }
 0x438   : > { %v1770_v15 = vpop.f32.mrf.mxu3 }
 0x439   : > { %1805 = vst [vmem:[#allocation6 + $0xf8] sm:$0xff] %v1770_v15 }
 0x43a LB: >> { %s5133_s0 = sshll.u32 %s4150_s20, 3  ;;  %s1811_s20 = sadd.s32 1, %s4150_s20   ;;  %s4150_s20 = sphi %s5127_s20, %s1811_s20  }
 0x43b   : >> { %s1814_s24 = sld [smem:[#allocation8 + %s5133_s0]]  ;;  %s1821_s29 = sadd.s32 1, %s5133_s0 }
 0x43c   : >> { %s5138_s25 = scalar_lea.vmem [#allocation6], %s5133_s0  ;;  %s1822_s30 = sld [smem:[#allocation8 + %s1821_s29]] }
 0x43d   : >> { %s1829_s17 = sadd.s32 2, %s5133_s0  ;;  %s1837_s28 = sadd.s32 3, %s5133_s0 }
 0x43e   : >> { %s1830_s4 = sld [smem:[#allocation8 + %s1829_s17]]  ;;  %s1845_s14 = sadd.s32 4, %s5133_s0 }
 0x43f   : >> { %s1838_s12 = sld [smem:[#allocation8 + %s1837_s28]]  ;;  %s1853_s18 = sadd.s32 5, %s5133_s0 }
 0x440   : >> { %v1818_v57 = vld [vmem:[%s5138_s25] sm:$0x1]  ;;  %v3515_v21 = vld [vmem:[%s5138_s25 + $0x1] sm:$0x1]  ;;  %v3517_v49 = vld [vmem:[%s5138_s25 + $0x2] sm:$0x1] }
 0x441   : >> { %s1815_s16 = scalar_lea.vmem [#allocation3], %s1814_s24  ;;  %v3519_v45 = vld [vmem:[%s5138_s25 + $0x3] sm:$0x1]  ;;  %s1846_s27 = sld [smem:[#allocation8 + %s1845_s14]]  ;;  %v3521_v55 = vld [vmem:[%s5138_s25 + $0x4] sm:$0x1] }
 0x442   : >> { %v1816_v17 = vld [vmem:[%s1815_s16] sm:$0x1]  ;;  %s1823_s26 = scalar_lea.vmem [#allocation3], %s1822_s30  ;;  %s1854_s19 = sld [smem:[#allocation8 + %s1853_s18]]  ;;  %v3523_v3 = vld [vmem:[%s5138_s25 + $0x5] sm:$0x1] }
 0x443   : >> { %v1819_v30 = vmax.f32 %v1816_v17, %v1818_v57  ;;  %s1861_s29 = sadd.s32 6, %s5133_s0  ;;  %s1869_s17 = sadd.s32 7, %s5133_s0  ;;  %v3525_v2 = vld [vmem:[%s5138_s25 + $0x6] sm:$0x1]  ;;  %v3527_v40 = vld [vmem:[%s5138_s25 + $0x7] sm:$0x1] }
 0x444   : >> { %s1831_s13 = scalar_lea.vmem [#allocation3], %s1830_s4  ;;  %s1862_s30 = sld [smem:[#allocation8 + %s1861_s29]] }
 0x445   : >> { %1820 = vst [vmem:[%s1815_s16] sm:$0x1] %v1819_v30  ;;  %s1839_s15 = scalar_lea.vmem [#allocation3], %s1838_s12  ;;  %s1870_s4 = sld [smem:[#allocation8 + %s1869_s17]] }
 0x446   : >> { %p1808_p9 = scmp.ge.s32.totalorder %s1811_s20, 32  }
 0x447   : >> { %s1847_s24 = scalar_lea.vmem [#allocation3], %s1846_s27 }
 0x448   : >> { %s1855_s16 = scalar_lea.vmem [#allocation3], %s1854_s19 }
 0x44b   : >> { %s1871_s28 = scalar_lea.vmem [#allocation3], %s1870_s4 }
 0x44c   : >> { %v1824_v26 = vld [vmem:[%s1823_s26] sm:$0x1] }
 0x44d   : >> { %v1827_v16 = vmax.f32 %v1824_v26, %v3515_v21 }
 0x44f   : >> { %1828 = vst [vmem:[%s1823_s26] sm:$0x1] %v1827_v16  ;;  %s1863_s26 = scalar_lea.vmem [#allocation3], %s1862_s30 }
 0x456   : >> { %v1832_v50 = vld [vmem:[%s1831_s13] sm:$0x1] }
 0x457   : >> { %v1835_v56 = vmax.f32 %v1832_v50, %v3517_v49 }
 0x459   : >> { %1836 = vst [vmem:[%s1831_s13] sm:$0x1] %v1835_v56 }
 0x460   : >> { %v1840_v8 = vld [vmem:[%s1839_s15] sm:$0x1] }
 0x461   : >> { %v1843_v11 = vmax.f32 %v1840_v8, %v3519_v45 }
 0x463   : >> { %1844 = vst [vmem:[%s1839_s15] sm:$0x1] %v1843_v11 }
 0x46a   : >> { %v1848_v1 = vld [vmem:[%s1847_s24] sm:$0x1] }
 0x46b   : >> { %v1851_v12 = vmax.f32 %v1848_v1, %v3521_v55 }
 0x46d   : >> { %1852 = vst [vmem:[%s1847_s24] sm:$0x1] %v1851_v12 }
 0x474   : >> { %v1856_v63 = vld [vmem:[%s1855_s16] sm:$0x1] }
 0x475   : >> { %v1859_v44 = vmax.f32 %v1856_v63, %v3523_v3 }
 0x477   : >> { %1860 = vst [vmem:[%s1855_s16] sm:$0x1] %v1859_v44 }
 0x47e   : >> { %v1864_v47 = vld [vmem:[%s1863_s26] sm:$0x1] }
 0x47f   : >> { %v1867_v38 = vmax.f32 %v1864_v47, %v3525_v2 }
 0x481   : >> { %1868 = vst [vmem:[%s1863_s26] sm:$0x1] %v1867_v38 }
 0x487   : > { %1810 = sbr.rel (!%p1808_p9) target bundleno = 1082 (0x43a), region = 149 }
 0x488   : >> { %v1872_v15 = vld [vmem:[%s1871_s28] sm:$0x1] }
 0x489   : >> { %v1875_v57 = vmax.f32 %v1872_v15, %v3527_v40 }
 0x48b   : >> { %1876 = vst [vmem:[%s1871_s28] sm:$0x1] %v1875_v57 }
 0x48c PF: > { %p3528_p10 = scmp.ne.s32.totalorder %s4138_s21, 1 }
 0x48e   : > { %1880 = sbr.rel (%p3528_p10) target bundleno = 2093 (0x82d), region = 95 }
 0x493   : > { %v2108_v17 = vld [vmem:[#allocation3 + $0x40] sm:$0xff]  ;;  %v2107_v30 = vld [vmem:[#allocation3 + $0x38] sm:$0xff]  ;;  %v2106_v21 = vld [vmem:[#allocation3 + $0x30] sm:$0xff]  ;;  %vm1890_vm1 = vcmask 588800  }
 0x494   : > { %2212 = vmatpush.msra.mxu1 %v2108_v17  ;;  %v2105_v26 = vld [vmem:[#allocation3 + $0x28] sm:$0xff]  ;;  %v2104_v16 = vld [vmem:[#allocation3 + $0x20] sm:$0xff]  ;;  %v2103_v49 = vld [vmem:[#allocation3 + $0x18] sm:$0xff] }
 0x495   : > { %v2102_v50 = vld [vmem:[#allocation3 + $0x10] sm:$0xff]  ;;  %v2101_v56 = vld [vmem:[#allocation3 + $0x8] sm:$0xff]  ;;  %v2100_v45 = vld [vmem:[#allocation3] sm:$0xff] }
 0x496   : > { %2213 = vmatpush.msra.mxu1 %v2107_v30  ;;  %v5191_v8 = vld [vmem:[#allocation15 + $0x28] sm:$0xff]  ;;  %v1888_v11 = vld [vmem:[#allocation2 + $0x98] sm:$0xff]  ;;  %v2449_v3 = vld [vmem:[#allocation15 + $0x10] sm:$0xff] }
 0x497   : > { %v2451_v55 = vld [vmem:[#allocation15 + $0x20] sm:$0xff]  ;;  %v2450_v1 = vld [vmem:[#allocation15 + $0x18] sm:$0xff]  ;;  %v2448_v44 = vld [vmem:[#allocation15 + $0x8] sm:$0xff] }
 0x498   : > { %2214 = vmatpush.msra.mxu1 %v2106_v21  ;;  %v1886_v12 = vld [vmem:[#allocation2 + $0x20] sm:$0xff]  ;;  %v1885_v63 = vld [vmem:[#allocation2 + $0x70] sm:$0xff]  ;;  %v2320_v21 = vld [vmem:[#allocation6 + $0x8] sm:$0xff] }
 0x499   : > { %v1884_v2 = vld [vmem:[#allocation2 + $0x50] sm:$0xff]  ;;  %v2447_v47 = vld [vmem:[#allocation15] sm:$0xff] }
 0x49a   : > { %2215 = vmatpush.msra.mxu1 %v2105_v26  ;;  %v1882_v38 = vld [vmem:[#allocation2 + $0x60] sm:$0xff]  ;;  %v5898_v30 = vld [vmem:[#allocation41_spill] sm:$0xff] }
 0x49b   : > { %v1881_v40 = vld [vmem:[#allocation2] sm:$0xff] }
 0x49c   : > { %2216 = vmatpush.msra.mxu1 %v2104_v16  ;;  %v5896_v15 = vld [vmem:[#allocation39_spill] sm:$0xff] }
 0x49e   : > { %2217 = vmatpush.msra.mxu1 %v2103_v49 }
 0x4a0   : > { %2218 = vmatpush.msra.mxu1 %v2102_v50  ;;  %v5899_v50 = vld [vmem:[#allocation40_spill] sm:$0xff] }
 0x4a2   : > { %2219 = vmatpush.msra.mxu1 %v2101_v56  ;;  %v2321_v56 = vld [vmem:[#allocation6 + $0x10] sm:$0xff] }
 0x4a4   : > { %2220 = vmatpush.msra.mxu1 %v2100_v45 }
 0x4a5   : > { %3561 = vmatmul.msk.f32.vlgmr.msra.gmra.mxu1 %vm1890_vm1, %v4598_v0  ;;  %v2462_v0 = vld [vmem:[#allocation15 + $0x78] sm:$0xff] }
 0x4a6   : > { %2463 = vmatpush.msra.mxu2 %v2462_v0 }
 0x4ad   : > { %3562 = vmatmul.msk.f32.gmra.mxu1 %vm1890_vm1, %v4653_v42  ;;  %v2459_v42 = vld [vmem:[#allocation15 + $0x60] sm:$0xff] }
 0x4b5   : > { %3563 = vmatmul.msk.f32.gmra.mxu1 %vm1890_vm1, %v4649_v39  ;;  %v2460_v39 = vld [vmem:[#allocation15 + $0x68] sm:$0xff] }
 0x4bd   : > { %3564 = vmatmul.msk.f32.gmra.mxu1 %vm1890_vm1, %v4610_v9  ;;  %v2461_v9 = vld [vmem:[#allocation15 + $0x70] sm:$0xff] }
 0x4be   : > { %2464 = vmatpush.msra.mxu2 %v2461_v9 }
 0x4c0   : > { %2465 = vmatpush.msra.mxu2 %v2460_v39 }
 0x4c2   : > { %2466 = vmatpush.msra.mxu2 %v2459_v42 }
 0x4c5   : > { %3565 = vmatmul.msk.f32.gmra.mxu1 %vm1890_vm1, %v4665_v53  ;;  %v2456_v53 = vld [vmem:[#allocation15 + $0x48] sm:$0xff] }
 0x4cd   : > { %3566 = vmatmul.msk.f32.gmra.mxu1 %vm1890_vm1, %v4661_v52  ;;  %v2457_v52 = vld [vmem:[#allocation15 + $0x50] sm:$0xff] }
 0x4d5   : > { %3567 = vmatmul.msk.f32.gmra.mxu1 %vm1890_vm1, %v4622_v18  ;;  %v2458_v18 = vld [vmem:[#allocation15 + $0x58] sm:$0xff] }
 0x4d6   : > { %2467 = vmatpush.msra.mxu2 %v2458_v18 }
 0x4d8   : > { %2468 = vmatpush.msra.mxu2 %v2457_v52 }
 0x4da   : > { %2469 = vmatpush.msra.mxu2 %v2456_v53 }
 0x4dd   : > { %3568 = vmatmul.msk.f32.gmra.mxu1 %vm1890_vm1, %v4677_v7  ;;  %v5187_v7 = vld [vmem:[#allocation15 + $0x30] sm:$0xff] }
 0x4e5   : > { %3569 = vmatmul.msk.f32.gmra.mxu1 %vm1890_vm1, %v4673_v6  ;;  %v5180_v6 = vld [vmem:[#allocation15 + $0x40] sm:$0xff] }
 0x4e6   : > { %2470 = vmatpush.msra.mxu2 %v5180_v6 }
 0x4ed   : > { %3570 = vmatmul.msk.f32.gmra.mxu1 %vm1890_vm1, %v4634_v27  ;;  %v5185_v27 = vld [vmem:[#allocation15 + $0x38] sm:$0xff] }
 0x4ee   : > { %2471 = vmatpush.msra.mxu2 %v5185_v27 }
 0x4f0   : > { %2472 = vmatpush.msra.mxu2 %v5187_v7 }
 0x4f2   : > { %2473 = vmatpush.msra.mxu2 %v5191_v8 }
 0x4f4   : > { %2474 = vmatpush.msra.mxu2 %v2451_v55  ;;  %v5902_v55 = vld [vmem:[#allocation42_spill] sm:$0xff] }
 0x4f5   : > { %3571 = vmatmul.msk.f32.gmra.mxu1 %vm1890_vm1, %v4689_v25  ;;  %v1889_v25 = vld [vmem:[#allocation2 + $0xc0] sm:$0xff] }
 0x4f6   : > { %1994 = vmatpush.msra.mxu0 %v1889_v25  ;;  %2475 = vmatpush.msra.mxu2 %v2450_v1 }
 0x4f8   : > { %1995 = vmatpush.msra.mxu0 %v1888_v11  ;;  %2476 = vmatpush.msra.mxu2 %v2449_v3 }
 0x4fa   : > { %2477 = vmatpush.msra.mxu2 %v2448_v44 }
 0x4fc   : > { %2478 = vmatpush.msra.mxu2 %v2447_v47 }
 0x4fd   : > { %3572 = vmatmul.msk.f32.gmra.mxu1 %vm1890_vm1, %v4685_v24  ;;  %v1887_v24 = vld [vmem:[#allocation2 + $0xc8] sm:$0xff] }
 0x4fe   : > { %1996 = vmatpush.msra.mxu0 %v1887_v24  ;;  %3718 = vmatpush.msrb.mxu2 %v2462_v0 }
 0x500   : > { %1997 = vmatpush.msra.mxu0 %v1886_v12  ;;  %3719 = vmatpush.msrb.mxu2 %v2461_v9 }
 0x502   : > { %1998 = vmatpush.msra.mxu0 %v1885_v63  ;;  %3720 = vmatpush.msrb.mxu2 %v2460_v39  ;;  %v5903_v63 = vld [vmem:[#allocation37_spill] sm:$0xff] }
 0x504   : > { %1999 = vmatpush.msra.mxu0 %v1884_v2  ;;  %3721 = vmatpush.msrb.mxu2 %v2459_v42 }
 0x505   : > { %3573 = vmatmul.msk.f32.gmra.mxu1 %vm1890_vm1, %v4646_v37  ;;  %v1883_v37 = vld [vmem:[#allocation2 + $0x78] sm:$0xff] }
 0x506   : > { %2000 = vmatpush.msra.mxu0 %v1883_v37  ;;  %3722 = vmatpush.msrb.mxu2 %v2458_v18 }
 0x508   : > { %2001 = vmatpush.msra.mxu0 %v1882_v38  ;;  %3723 = vmatpush.msrb.mxu2 %v2457_v52  ;;  %v5904_v38 = vld [vmem:[#allocation45_spill] sm:$0xff] }
 0x50a   : > { %2002 = vmatpush.msra.mxu0 %v1881_v40  ;;  %3724 = vmatpush.msrb.mxu2 %v2456_v53 }
 0x50b   : > { %3529 = vmatmul.msk.f32.vlgmr.msra.gmra.mxu0 %vm1890_vm1, %v4463_v60  ;;  %v2319_v60 = vld [vmem:[#allocation6] sm:$0xff] }
 0x50c   : > { %2942 = vmatpush.msrb.mxu0 %v2462_v0  ;;  %3725 = vmatpush.msrb.mxu2 %v5180_v6 }
 0x50d   : > { %3574 = vmatmul.msk.f32.gmra.mxu1 %vm1890_vm1, %v4701_v48  ;;  %v5897_v48 = vld [vmem:[#allocation35_spill] sm:$0xff] }
 0x50e   : > { %2943 = vmatpush.msrb.mxu0 %v2461_v9  ;;  %3726 = vmatpush.msrb.mxu2 %v5185_v27 }
 0x510   : > { %2944 = vmatpush.msrb.mxu0 %v2460_v39  ;;  %3727 = vmatpush.msrb.mxu2 %v5187_v7 }
 0x512   : > { %2945 = vmatpush.msrb.mxu0 %v2459_v42  ;;  %3728 = vmatpush.msrb.mxu2 %v5191_v8  ;;  %v5900_v42 = vld [vmem:[#allocation36_spill] sm:$0xff] }
 0x513   : > { %3530 = vmatmul.msk.f32.gmra.mxu0 %vm1890_vm1, %v4484_v5 }
 0x514   : > { %2946 = vmatpush.msrb.mxu0 %v2458_v18 }
 0x515   : > { %3575 = vmatmul.msk.f32.gmra.mxu1 %vm1890_vm1, %v5896_v15 }
 0x516   : > { %2947 = vmatpush.msrb.mxu0 %v2457_v52 }
 0x518   : > { %2948 = vmatpush.msrb.mxu0 %v2456_v53 }
 0x51a   : > { %2949 = vmatpush.msrb.mxu0 %v5180_v6 }
 0x51b   : > { %3531 = vmatmul.msk.f32.gmra.mxu0 %vm1890_vm1, %v4459_v59 }
 0x51c   : > { %2950 = vmatpush.msrb.mxu0 %v5185_v27  ;;  %v5901_v27 = vld [vmem:[#allocation43_spill] sm:$0xff] }
 0x51d   : > { %3576 = vmatmul.msk.f32.gmra.mxu1 %vm1890_vm1, %v5897_v48 }
 0x51e   : > { %2951 = vmatpush.msrb.mxu0 %v5187_v7 }
 0x520   : > { %2952 = vmatpush.msrb.mxu0 %v5191_v8 }
 0x522   : > { %v2222_v57 = vpop.f32.mrf.mxu1 }
 0x523   : > { %v2351_v17 = vsub.f32 %v2319_v60, %v2222_v57  ;;  %3532 = vmatmul.msk.f32.gmra.mxu0 %vm1890_vm1, %v4480_v4  ;;  %v2322_v4 = vld [vmem:[#allocation6 + $0x18] sm:$0xff] }
 0x524   : > { %v5905_v57 = vld [vmem:[#allocation44_spill] sm:$0xff] }
 0x525   : > { %v2383_v5 = vmul.f32 1.442695, %v2351_v17  ;;  %3577 = vmatmul.msk.f32.gmra.mxu1 %vm1890_vm1, %v5898_v30 }
 0x527   : > { %3860 = vpow2.f32 %v2383_v5 }
 0x52a   : > { %v2225_v26 = vpop.f32.mrf.mxu1 }
 0x52b   : > { %v2352_v16 = vsub.f32 %v2320_v21, %v2225_v26  ;;  %3533 = vmatmul.msk.f32.gmra.mxu0 %vm1890_vm1, %v4416_v41  ;;  %v2323_v41 = vld [vmem:[#allocation6 + $0x20] sm:$0xff] }
 0x52c   : > { %v5906_v26 = vld [vmem:[#allocation38_spill] sm:$0xff] }
 0x52d   : > { %v5220_v59 = vpop.eup %3860  ;;  %v2385_v49 = vmul.f32 1.442695, %v2352_v16  ;;  %3578 = vmatmul.msk.f32.gmra.mxu1 %vm1890_vm1, %v5899_v50 }
 0x52e   : > { %2479 = vmatmul.f32.vlgmr.msra.gmra.mxu2 %v5220_v59 }
 0x52f   : > { %3862 = vpow2.f32 %v2385_v49 }
 0x532   : > { %v2228_v45 = vpop.f32.mrf.mxu1 }
 0x533   : > { %v2353_v0 = vsub.f32 %v2321_v56, %v2228_v45  ;;  %3534 = vmatmul.msk.f32.gmra.mxu0 %vm1890_vm1, %v4429_v46  ;;  %v2324_v46 = vld [vmem:[#allocation6 + $0x28] sm:$0xff] }
 0x535   : > { %v5227_v9 = vpop.eup %3862  ;;  %v2387_v39 = vmul.f32 1.442695, %v2353_v0  ;;  %3579 = vmatmul.msk.f32.gmra.mxu1 %vm1890_vm1, %v5900_v42 }
 0x536   : > { %2482 = vmatmul.f32.gmra.mxu2 %v5227_v9 }
 0x537   : > { %3864 = vpow2.f32 %v2387_v39 }
 0x53a   : > { %v2231_v18 = vpop.f32.mrf.mxu1 }
 0x53b   : > { %v2354_v52 = vsub.f32 %v2322_v4, %v2231_v18  ;;  %3535 = vmatmul.msk.f32.gmra.mxu0 %vm1890_vm1, %v4505_v14  ;;  %v2325_v14 = vld [vmem:[#allocation6 + $0x30] sm:$0xff] }
 0x53d   : > { %v5234_v53 = vpop.eup %3864  ;;  %v2389_v6 = vmul.f32 1.442695, %v2354_v52  ;;  %3580 = vmatmul.msk.f32.gmra.mxu1 %vm1890_vm1, %v5901_v27  ;;  %v5907_v27 = vld [vmem:[#allocation24_spill] sm:$0xff] }
 0x53e   : > { %2485 = vmatmul.f32.gmra.mxu2 %v5234_v53 }
 0x53f   : > { %3866 = vpow2.f32 %v2389_v6 }
 0x542   : > { %v2234_v7 = vpop.f32.mrf.mxu1 }
 0x543   : > { %v2355_v25 = vsub.f32 %v2323_v41, %v2234_v7  ;;  %3536 = vmatmul.msk.f32.gmra.mxu0 %vm1890_vm1, %v4501_v13  ;;  %v2326_v13 = vld [vmem:[#allocation6 + $0x38] sm:$0xff] }
 0x545   : > { %v5241_v8 = vpop.eup %3866  ;;  %v2391_v11 = vmul.f32 1.442695, %v2355_v25  ;;  %3581 = vmatmul.msk.f32.gmra.mxu1 %vm1890_vm1, %v5902_v55 }
 0x546   : > { %2488 = vmatmul.f32.gmra.mxu2 %v5241_v8 }
 0x547   : > { %3868 = vpow2.f32 %v2391_v11 }
 0x54a   : > { %v2237_v24 = vpop.f32.mrf.mxu1 }
 0x54b   : > { %v2356_v1 = vsub.f32 %v2324_v46, %v2237_v24  ;;  %3537 = vmatmul.msk.f32.gmra.mxu0 %vm1890_vm1, %v4442_v51  ;;  %v2327_v51 = vld [vmem:[#allocation6 + $0x40] sm:$0xff]  ;;  %v2333_v24 = vld [vmem:[#allocation6 + $0x70] sm:$0xff] }
 0x54d   : > { %v5248_v12 = vpop.eup %3868  ;;  %v2393_v3 = vmul.f32 1.442695, %v2356_v1  ;;  %3582 = vmatmul.msk.f32.gmra.mxu1 %vm1890_vm1, %v5903_v63 }
 0x54e   : > { %2491 = vmatmul.f32.gmra.mxu2 %v5248_v12 }
 0x54f   : > { %3870 = vpow2.f32 %v2393_v3 }
 0x552   : > { %v2240_v44 = vpop.f32.mrf.mxu1 }
 0x553   : > { %v2357_v2 = vsub.f32 %v2325_v14, %v2240_v44  ;;  %3538 = vmatmul.msk.f32.gmra.mxu0 %vm1890_vm1, %v4526_v23  ;;  %v2328_v23 = vld [vmem:[#allocation6 + $0x48] sm:$0xff] }
 0x555   : > { %v5255_v47 = vpop.eup %3870  ;;  %v2395_v37 = vmul.f32 1.442695, %v2357_v2  ;;  %3583 = vmatmul.msk.f32.gmra.mxu1 %vm1890_vm1, %v5904_v38  ;;  %v2334_v2 = vld [vmem:[#allocation6 + $0x78] sm:$0xff] }
 0x556   : > { %2494 = vmatmul.f32.gmra.mxu2 %v5255_v47 }
 0x557   : > { %3872 = vpow2.f32 %v2395_v37 }
 0x55a   : > { %v2243_v40 = vpop.f32.mrf.mxu1 }
 0x55b   : > { %v2358_v15 = vsub.f32 %v2326_v13, %v2243_v40  ;;  %3539 = vmatmul.msk.f32.gmra.mxu0 %vm1890_vm1, %v4522_v22  ;;  %v2329_v22 = vld [vmem:[#allocation6 + $0x50] sm:$0xff]  ;;  %v5910_v13 = vld [vmem:[#allocation25_spill] sm:$0xff] }
 0x55d   : > { %v5262_v48 = vpop.eup %3872  ;;  %v2397_v60 = vmul.f32 1.442695, %v2358_v15  ;;  %3584 = vmatmul.msk.f32.gmra.mxu1 %vm1890_vm1, %v5905_v57  ;;  %v2335_v57 = vld [vmem:[#allocation6 + $0x80] sm:$0xff] }
 0x55e   : > { %2497 = vmatmul.f32.gmra.mxu2 %v5262_v48 }
 0x55f   : > { %3874 = vpow2.f32 %v2397_v60  ;;  %v5911_v60 = vld [vmem:[#allocation46_spill] sm:$0xff] }
 0x562   : > { %v2246_v17 = vpop.f32.mrf.mxu1 }
 0x563   : > { %v2359_v5 = vsub.f32 %v2327_v51, %v2246_v17  ;;  %3540 = vmatmul.msk.f32.gmra.mxu0 %vm1890_vm1, %v4456_v58  ;;  %v2330_v58 = vld [vmem:[#allocation6 + $0x58] sm:$0xff] }
 0x565   : > { %v5269_v30 = vpop.eup %3874  ;;  %v2399_v21 = vmul.f32 1.442695, %v2359_v5  ;;  %3585 = vmatmul.msk.f32.gmra.mxu1 %vm1890_vm1, %v5906_v26  ;;  %v5912_v5 = vld [vmem:[#allocation31_spill] sm:$0xff] }
 0x566   : > { %2500 = vmatmul.f32.gmra.mxu2 %v5269_v30 }
 0x567   : > { %3876 = vpow2.f32 %v2399_v21 }
 0x56a   : > { %v2249_v16 = vpop.f32.mrf.mxu1 }
 0x56b   : > { %v2360_v49 = vsub.f32 %v2328_v23, %v2249_v16  ;;  %3541 = vmatmul.msk.f32.gmra.mxu0 %vm1890_vm1, %v4547_v32  ;;  %v2331_v32 = vld [vmem:[#allocation6 + $0x60] sm:$0xff]  ;;  %v2336_v23 = vld [vmem:[#allocation6 + $0x88] sm:$0xff] }
 0x56d   : > { %v5276_v50 = vpop.eup %3876  ;;  %v2401_v56 = vmul.f32 1.442695, %v2360_v49  ;;  %3586 = vmatmul.msk.f32.gmra.mxu1 %vm1890_vm1, %v4741_v61 }
 0x56e   : > { %2503 = vmatmul.f32.gmra.mxu2 %v5276_v50 }
 0x56f   : > { %3878 = vpow2.f32 %v2401_v56 }
 0x572   : > { %v2252_v45 = vpop.f32.mrf.mxu1 }
 0x573   : > { %v2361_v0 = vsub.f32 %v2329_v22, %v2252_v45  ;;  %3542 = vmatmul.msk.f32.gmra.mxu0 %vm1890_vm1, %v4543_v31  ;;  %v2332_v31 = vld [vmem:[#allocation6 + $0x68] sm:$0xff] }
 0x574   : > { %v5913_v22 = vld [vmem:[#allocation30_spill] sm:$0xff] }
 0x575   : > { %v5283_v39 = vpop.eup %3878  ;;  %v2403_v42 = vmul.f32 1.442695, %v2361_v0  ;;  %3587 = vmatmul.msk.f32.gmra.mxu1 %vm1890_vm1, %v4737_v33 }
 0x576   : > { %2506 = vmatmul.f32.gmra.mxu2 %v5283_v39 }
 0x577   : > { %3880 = vpow2.f32 %v2403_v42  ;;  %v2337_v42 = vld [vmem:[#allocation6 + $0x90] sm:$0xff] }
 0x57a   : > { %v2255_v61 = vpop.f32.mrf.mxu1 }
 0x57b   : > { %v2362_v4 = vsub.f32 %v2330_v58, %v2255_v61  ;;  %3543 = vmatmul.msk.f32.gmra.mxu0 %vm1890_vm1, %v5907_v27 }
 0x57d   : > { %v5290_v18 = vpop.eup %3880  ;;  %v2405_v52 = vmul.f32 1.442695, %v2362_v4  ;;  %3588 = vmatmul.msk.f32.gmra.mxu1 %vm1890_vm1, %v4706_v62  ;;  %v5908_v62 = vld [vmem:[#allocation29_spill] sm:$0xff] }
 0x57e   : > { %2509 = vmatmul.f32.gmra.mxu2 %v5290_v18 }
 0x57f   : > { %3882 = vpow2.f32 %v2405_v52 }
 0x582   : > { %v2258_v33 = vpop.f32.mrf.mxu1 }
 0x583   : > { %v2363_v6 = vsub.f32 %v2331_v32, %v2258_v33  ;;  %3544 = vmatmul.msk.f32.gmra.mxu0 %vm1890_vm1, %v5908_v62  ;;  %v5914_v33 = vld [vmem:[#allocation26_spill] sm:$0xff] }
 0x585   : > { %v3883_v41 = vpop.eup %3882  ;;  %v2407_v7 = vmul.f32 1.442695, %v2363_v6  ;;  %3589 = vmatmul.msk.f32.gmra.mxu1 %vm1890_vm1, %v4749_v35  ;;  %v5909_v35 = vld [vmem:[#allocation28_spill] sm:$0xff] }
 0x586   : > { %2512 = vmatmul.f32.gmra.mxu2 %v3883_v41 }
 0x587   : > { %3884 = vpow2.f32 %v2407_v7 }
 0x588   : > { %v2004_v1 = vpop.f32.mrf.mxu0 }
 0x58a   : > { %v2261_v25 = vpop.f32.mrf.mxu1 }
 0x58b   : > { %v2364_v11 = vsub.f32 %v2332_v31, %v2261_v25  ;;  %3545 = vmatmul.msk.f32.gmra.mxu0 %vm1890_vm1, %v5909_v35  ;;  %v5915_v25 = vld [vmem:[#allocation33_spill] sm:$0xff] }
 0x58d   : > { %v3885_v55 = vpop.eup %3884  ;;  %v2409_v46 = vmul.f32 1.442695, %v2364_v11  ;;  %3590 = vmatmul.msk.f32.gmra.mxu1 %vm1890_vm1, %v4745_v36 }
 0x58e   : > { %2515 = vmatmul.f32.gmra.mxu2 %v3885_v55 }
 0x58f   : > { %3886 = vpow2.f32 %v2409_v46 }
 0x590   : > { %v2007_v37 = vpop.f32.mrf.mxu0 }
 0x592   : > { %v2264_v3 = vpop.f32.mrf.mxu1 }
 0x593   : > { %v2365_v63 = vsub.f32 %v2333_v24, %v2264_v3  ;;  %3546 = vmatmul.msk.f32.gmra.mxu0 %vm1890_vm1, %v5910_v13  ;;  %v5916_v24 = vld [vmem:[#allocation32_spill] sm:$0xff] }
 0x595   : > { %v3887_v14 = vpop.eup %3886  ;;  %v2411_v44 = vmul.f32 1.442695, %v2365_v63  ;;  %3591 = vmatmul.msk.f32.gmra.mxu1 %vm1890_vm1, %v4718_v34 }
 0x596   : > { %2518 = vmatmul.f32.gmra.mxu2 %v3887_v14 }
 0x597   : > { %3888 = vpow2.f32 %v2411_v44 }
 0x598   : > { %v2010_v51 = vpop.f32.mrf.mxu0 }
 0x59a   : > { %v2267_v38 = vpop.f32.mrf.mxu1 }
 0x59b   : > { %v2366_v36 = vsub.f32 %v2334_v2, %v2267_v38  ;;  %3547 = vmatmul.msk.f32.gmra.mxu0 %vm1890_vm1, %v5912_v5 }
 0x59d   : > { %v3889_v40 = vpop.eup %3888  ;;  %v2413_v15 = vmul.f32 1.442695, %v2366_v36  ;;  %3592 = vmatmul.msk.f32.gmra.mxu1 %vm1890_vm1, %v5911_v60  ;;  %v5918_v60 = vld [vmem:[#allocation34_spill] sm:$0xff] }
 0x59e   : > { %2521 = vmatmul.f32.gmra.mxu2 %v3889_v40 }
 0x59f   : > { %3890 = vpow2.f32 %v2413_v15 }
 0x5a0   : > { %v2013_v16 = vpop.f32.mrf.mxu0 }
 0x5a2   : > { %v2270_v17 = vpop.f32.mrf.mxu1 }
 0x5a3   : > { %v2367_v34 = vsub.f32 %v2335_v57, %v2270_v17  ;;  %3548 = vmatmul.msk.f32.gmra.mxu0 %vm1890_vm1, %v5913_v22  ;;  %v2342_v17 = vld [vmem:[#allocation6 + $0xb8] sm:$0xff] }
 0x5a5   : > { %v3891_v21 = vpop.eup %3890  ;;  %v2415_v26 = vmul.f32 1.442695, %v2367_v34 }
 0x5a6   : > { %2524 = vmatmul.f32.gmra.mxu2 %v3891_v21  ;;  %2652 = vmatpush.msra.mxu3 %v3891_v21  ;;  %v5368_v21 = vld [vmem:[#allocation9] sm:$0x3] }
 0x5a7   : > { %3892 = vpow2.f32 %v2415_v26 }
 0x5a8   : > { %2653 = vmatpush.msra.mxu3 %v3889_v40  ;;  %v2016_v61 = vpop.f32.mrf.mxu0 }
 0x5aa   : > { %v2273_v49 = vpop.f32.mrf.mxu1  ;;  %2654 = vmatpush.msra.mxu3 %v3887_v14 }
 0x5ab   : > { %v2368_v56 = vsub.f32 %v2336_v23, %v2273_v49  ;;  %3549 = vmatmul.msk.f32.gmra.mxu0 %vm1890_vm1, %v5914_v33 }
 0x5ac   : > { %2655 = vmatpush.msra.mxu3 %v3885_v55 }
 0x5ad   : > { %v5315_v45 = vpop.eup %3892  ;;  %v2417_v0 = vmul.f32 1.442695, %v2368_v56  ;;  %v5376_v56 = vperm.slane %v5368_v21, 0 }
 0x5ae   : > { %2527 = vmatmul.f32.gmra.mxu2 %v5315_v45  ;;  %2656 = vmatpush.msra.mxu3 %v3883_v41 }
 0x5af   : > { %3894 = vpow2.f32 %v2417_v0 }
 0x5b0   : > { %2657 = vmatpush.msra.mxu3 %v5290_v18  ;;  %v2338_v18 = vld [vmem:[#allocation6 + $0x98] sm:$0xff]  ;;  %v2019_v7 = vpop.f32.mrf.mxu0 }
 0x5b1   : > { %v2480_v58 = vpop.f32.mrf.mxu2 }
 0x5b2   : > { %v5319_v4 = vmul.f32 %v2480_v58, %v2004_v1  ;;  %v2276_v52 = vpop.f32.mrf.mxu1  ;;  %2658 = vmatpush.msra.mxu3 %v5283_v39  ;;  %v4163_v58 = vmov 1.0  }
 0x5b3   : > { %v2369_v32 = vsub.f32 %v2337_v42, %v2276_v52  ;;  %3550 = vmatmul.msk.f32.gmra.mxu0 %vm1890_vm1, %v5915_v25 }
 0x5b4   : > { %2659 = vmatpush.msra.mxu3 %v5276_v50 }
 0x5b5   : > { %v5325_v6 = vpop.eup %3894  ;;  %v2419_v27 = vmul.f32 1.442695, %v2369_v32 }
 0x5b6   : > { %2530 = vmatmul.f32.gmra.mxu2 %v5325_v6  ;;  %2660 = vmatpush.msra.mxu3 %v5269_v30 }
 0x5b7   : > { %3896 = vpow2.f32 %v2419_v27 }
 0x5b8   : > { %2661 = vmatpush.msra.mxu3 %v5262_v48  ;;  %v2339_v48 = vld [vmem:[#allocation6 + $0xa0] sm:$0xff]  ;;  %v2022_v55 = vpop.f32.mrf.mxu0 }
 0x5b9   : > { %v2483_v41 = vpop.f32.mrf.mxu2 }
 0x5ba   : > { %v5330_v39 = vmul.f32 %v2483_v41, %v2007_v37  ;;  %v2279_v31 = vpop.f32.mrf.mxu1  ;;  %2662 = vmatpush.msra.mxu3 %v5255_v47  ;;  %v2341_v37 = vld [vmem:[#allocation6 + $0xb0] sm:$0xff] }
 0x5bb   : > { %v2370_v50 = vsub.f32 %v2338_v18, %v2279_v31  ;;  %3551 = vmatmul.msk.f32.gmra.mxu0 %vm1890_vm1, %v5916_v24  ;;  %v2344_v31 = vld [vmem:[#allocation6 + $0xc8] sm:$0xff] }
 0x5bc   : > { %2663 = vmatpush.msra.mxu3 %v5248_v12 }
 0x5bd   : > { %v5336_v11 = vpop.eup %3896  ;;  %v2421_v30 = vmul.f32 1.442695, %v2370_v50 }
 0x5be   : > { %2533 = vmatmul.f32.gmra.mxu2 %v5336_v11  ;;  %2664 = vmatpush.msra.mxu3 %v5241_v8 }
 0x5bf   : > { %3898 = vpow2.f32 %v2421_v30 }
 0x5c0   : > { %2665 = vmatpush.msra.mxu3 %v5234_v53  ;;  %v2340_v53 = vld [vmem:[#allocation6 + $0xa8] sm:$0xff]  ;;  %v2025_v63 = vpop.f32.mrf.mxu0 }
 0x5c1   : > { %v2486_v62 = vpop.f32.mrf.mxu2 }
 0x5c2   : > { %v5341_v47 = vmul.f32 %v2486_v62, %v2010_v51  ;;  %v2282_v46 = vpop.f32.mrf.mxu1  ;;  %2666 = vmatpush.msra.mxu3 %v5227_v9  ;;  %v5917_v9 = vld [vmem:[#allocation27_spill] sm:$0xff] }
 0x5c3   : > { %v2371_v12 = vsub.f32 %v2339_v48, %v2282_v46  ;;  %3552 = vmatmul.msk.f32.gmra.mxu0 %vm1890_vm1, %v5917_v9 }
 0x5c4   : > { %2667 = vmatpush.msra.mxu3 %v5220_v59 }
 0x5c5   : > { %v5347_v1 = vpop.eup %3898  ;;  %v2423_v8 = vmul.f32 1.442695, %v2371_v12  ;;  %v2345_v12 = vld [vmem:[#allocation6 + $0xd0] sm:$0xff] }
 0x5c6   : > { %2536 = vmatmul.f32.gmra.mxu2 %v5347_v1 }
 0x5c7   : > { %3900 = vpow2.f32 %v2423_v8 }
 0x5c8   : > { %v5357_v36 = vpop.f32.mrf.mxu0 }
 0x5c9   : > { %v2489_v3 = vpop.f32.mrf.mxu2 }
 0x5ca   : > { %v5350_v35 = vmul.f32 %v2489_v3, %v2013_v16  ;;  %v2285_v14 = vpop.f32.mrf.mxu1  ;;  %v5919_v16 = vlaneseq }
 0x5cb   : > { %v2372_v44 = vsub.f32 %v2340_v53, %v2285_v14  ;;  %3553 = vmatmul.msk.f32.gmra.mxu0 %vm1890_vm1, %v5918_v60  ;;  %v2347_v60 = vld [vmem:[#allocation6 + $0xe0] sm:$0xff] }
 0x5cc   : > { %v5373_v49 = vshrl.u32 %v5919_v16, 7 }
 0x5cd   : > { %v5354_v59 = vpop.eup %3900  ;;  %v2425_v2 = vmul.f32 1.442695, %v2372_v44  ;;  %v2346_v44 = vld [vmem:[#allocation6 + $0xd8] sm:$0xff] }
 0x5ce   : > { %2539 = vmatmul.f32.gmra.mxu2 %v5354_v59  ;;  %vm2589_vm2 = vcmp.eq.s32.totalorder %v5373_v49, %v5376_v56  ;;  %v5394_v27 = vadd.s32 8, %v5373_v49  ;;  %v5412_v48 = vadd.s32 16, %v5373_v49  ;;  %v5430_v53 = vadd.s32 24, %v5373_v49 }
 0x5cf   : > { %3902 = vpow2.f32 %v2425_v2  ;;  %3611 = vmatmul.msk.f32.vlgmr.msra.gmra.mxu3 %vm2589_vm2, %v4163_v58 }
 0x5d0   : > { %v5366_v5 = vpop.f32.mrf.mxu0  ;;  %vm2591_vm3 = vcmp.eq.s32.totalorder %v5394_v27, %v5376_v56  ;;  %vm2593_vm4 = vcmp.eq.s32.totalorder %v5412_v48, %v5376_v56  ;;  %vm2595_vm5 = vcmp.eq.s32.totalorder %v5430_v53, %v5376_v56 }
 0x5d1   : > { %v2492_v38 = vpop.f32.mrf.mxu2 }
 0x5d2   : > { %v5359_v13 = vmul.f32 %v2492_v38, %v2016_v61  ;;  %v2288_v40 = vpop.f32.mrf.mxu1  ;;  %v2343_v61 = vld [vmem:[#allocation6 + $0xc0] sm:$0xff] }
 0x5d3   : > { %v2373_v15 = vsub.f32 %v2341_v37, %v2288_v40  ;;  %3554 = vmatmul.msk.f32.gmra.mxu0 %vm1890_vm1, %v4613_v10  ;;  %v5448_v37 = vadd.s32 32, %v5373_v49 }
 0x5d5   : > { %v5363_v57 = vpop.eup %3902  ;;  %v2427_v51 = vmul.f32 1.442695, %v2373_v15  ;;  %vm2597_vm6 = vcmp.eq.s32.totalorder %v5448_v37, %v5376_v56 }
 0x5d6   : > { %2542 = vmatmul.f32.gmra.mxu2 %v5363_v57 }
 0x5d7   : > { %3904 = vpow2.f32 %v2427_v51  ;;  %3612 = vmatmul.msk.f32.gmra.mxu3 %vm2591_vm3, %v4163_v58 }
 0x5d8   : > { %v5389_v32 = vpop.f32.mrf.mxu0 }
 0x5d9   : > { %v2495_v34 = vpop.f32.mrf.mxu2 }
 0x5da   : > { %v5370_v26 = vmul.f32 %v2495_v34, %v2019_v7  ;;  %v2291_v23 = vpop.f32.mrf.mxu1  ;;  %v5466_v34 = vadd.s32 40, %v5373_v49 }
 0x5db   : > { %v2374_v22 = vsub.f32 %v2342_v17, %v2291_v23  ;;  %3555 = vmatmul.msk.f32.gmra.mxu0 %vm1890_vm1, %v4561_v43 }
 0x5dc   : > { %vm2599_vm7 = vcmp.eq.s32.totalorder %v5466_v34, %v5376_v56 }
 0x5dd   : > { %v5382_v0 = vpop.eup %3904  ;;  %v2429_v42 = vmul.f32 1.442695, %v2374_v22 }
 0x5de   : > { %2545 = vmatmul.f32.gmra.mxu2 %v5382_v0 }
 0x5df   : > { %3906 = vpow2.f32 %v2429_v42  ;;  %3613 = vmatmul.msk.f32.gmra.mxu3 %vm2593_vm4, %v4163_v58  ;;  %v2348_v42 = vld [vmem:[#allocation6 + $0xe8] sm:$0xff] }
 0x5e0   : > { %v5407_v25 = vpop.f32.mrf.mxu0 }
 0x5e1   : > { %v2498_v52 = vpop.f32.mrf.mxu2 }
 0x5e2   : > { %v5391_v10 = vmul.f32 %v2498_v52, %v2022_v55  ;;  %v2294_v33 = vpop.f32.mrf.mxu1 }
 0x5e3   : > { %v2375_v18 = vsub.f32 %v2343_v61, %v2294_v33  ;;  %3556 = vmatmul.msk.f32.gmra.mxu0 %vm1890_vm1, %v4629_v20 }
 0x5e5   : > { %v5400_v41 = vpop.eup %3906  ;;  %v2431_v7 = vmul.f32 1.442695, %v2375_v18 }
 0x5e6   : > { %2548 = vmatmul.f32.gmra.mxu2 %v5400_v41 }
 0x5e7   : > { %3908 = vpow2.f32 %v2431_v7  ;;  %3614 = vmatmul.msk.f32.gmra.mxu3 %vm2595_vm5, %v4163_v58 }
 0x5e8   : > { %v5427_v8 = vpop.f32.mrf.mxu0 }
 0x5e9   : > { %v2501_v50 = vpop.f32.mrf.mxu2 }
 0x5ea   : > { %v5409_v30 = vmul.f32 %v2501_v50, %v2025_v63  ;;  %v2297_v43 = vpop.f32.mrf.mxu1  ;;  %v2349_v50 = vld [vmem:[#allocation6 + $0xf0] sm:$0xff] }
 0x5eb   : > { %v2376_v62 = vsub.f32 %v2344_v31, %v2297_v43  ;;  %3557 = vmatmul.msk.f32.gmra.mxu0 %vm1890_vm1, %v4625_v19 }
 0x5ed   : > { %v5418_v55 = vpop.eup %3908  ;;  %v2433_v46 = vmul.f32 1.442695, %v2376_v62 }
 0x5ee   : > { %2551 = vmatmul.f32.gmra.mxu2 %v5418_v55 }
 0x5ef   : > { %3910 = vpow2.f32 %v2433_v46  ;;  %3615 = vmatmul.msk.f32.gmra.mxu3 %vm2597_vm6, %v4163_v58 }
 0x5f0   : > { %v5445_v2 = vpop.f32.mrf.mxu0 }
 0x5f1   : > { %v5425_v24 = vpop.f32.mrf.mxu2 }
 0x5f2   : > { %v2300_v20 = vpop.f32.mrf.mxu1 }
 0x5f3   : > { %v2377_v3 = vsub.f32 %v2345_v12, %v2300_v20  ;;  %3558 = vmatmul.msk.f32.gmra.mxu0 %vm1890_vm1, %v4583_v54  ;;  %v5492_v12 = vadd.s32 56, %v5373_v49 }
 0x5f5   : > { %v5436_v63 = vpop.eup %3910  ;;  %v2435_v14 = vmul.f32 1.442695, %v2377_v3  ;;  %vm2603_vm9 = vcmp.eq.s32.totalorder %v5492_v12, %v5376_v56 }
 0x5f6   : > { %2554 = vmatmul.f32.gmra.mxu2 %v5436_v63 }
 0x5f7   : > { %3912 = vpow2.f32 %v2435_v14  ;;  %3616 = vmatmul.msk.f32.gmra.mxu3 %vm2599_vm7, %v4163_v58  ;;  %v2350_v14 = vld [vmem:[#allocation6 + $0xf8] sm:$0xff] }
 0x5f8   : > { %v5463_v17 = vpop.f32.mrf.mxu0 }
 0x5f9   : > { %v5443_v9 = vpop.f32.mrf.mxu2 }
 0x5fa   : > { %v2303_v19 = vpop.f32.mrf.mxu1 }
 0x5fb   : > { %v2378_v38 = vsub.f32 %v2346_v44, %v2303_v19  ;;  %3559 = vmatmul.msk.f32.gmra.mxu0 %vm1890_vm1, %v4641_v29  ;;  %v5481_v29 = vadd.s32 48, %v5373_v49 }
 0x5fd   : > { %v5454_v40 = vpop.eup %3912  ;;  %v2437_v15 = vmul.f32 1.442695, %v2378_v38  ;;  %vm2601_vm8 = vcmp.eq.s32.totalorder %v5481_v29, %v5376_v56  ;;  %v5501_v38 = vadd.s32 64, %v5373_v49 }
 0x5fe   : > { %2557 = vmatmul.f32.gmra.mxu2 %v5454_v40 }
 0x5ff   : > { %3914 = vpow2.f32 %v2437_v15  ;;  %3617 = vmatmul.msk.f32.gmra.mxu3 %vm2601_vm8, %v4163_v58  ;;  %vm2605_vm10 = vcmp.eq.s32.totalorder %v5501_v38, %v5376_v56  ;;  %v2645_v56 = vld [vmem:[#allocation4 + $0x18] sm:$0xff] }
 0x600   : > { %v5478_v52 = vpop.f32.mrf.mxu0 }
 0x601   : > { %v5461_v51 = vpop.f32.mrf.mxu2 }
 0x602   : > { %v2306_v54 = vpop.f32.mrf.mxu1 }
 0x603   : > { %v2379_v23 = vsub.f32 %v2347_v60, %v2306_v54  ;;  %3560 = vmatmul.msk.f32.gmra.mxu0 %vm1890_vm1, %v4637_v28 }
 0x605   : > { %v3915_v16 = vpop.eup %3914  ;;  %v2439_v22 = vmul.f32 1.442695, %v2379_v23 }
 0x606   : > { %2560 = vmatmul.f32.gmra.mxu2 %v3915_v16 }
 0x607   : > { %3916 = vpow2.f32 %v2439_v22  ;;  %3618 = vmatmul.msk.f32.gmra.mxu3 %vm2603_vm9, %v4163_v58 }
 0x608   : > { %v2052_v62 = vpop.f32.mrf.mxu0 }
 0x609   : > { %v5476_v61 = vpop.f32.mrf.mxu2 }
 0x60a   : > { %v2309_v33 = vpop.f32.mrf.mxu1 }
 0x60b   : > { %v2380_v18 = vsub.f32 %v2348_v42, %v2309_v33 }
 0x60d   : > { %v3917_v7 = vpop.eup %3916  ;;  %v2441_v31 = vmul.f32 1.442695, %v2380_v18 }
 0x60e   : > { %2563 = vmatmul.f32.gmra.mxu2 %v3917_v7 }
 0x60f   : > { %3918 = vpow2.f32 %v2441_v31  ;;  %3619 = vmatmul.msk.f32.gmra.mxu3 %vm2605_vm10, %v4163_v58 }
 0x610   : > { %v2055_v60 = vpop.f32.mrf.mxu0 }
 0x611   : > { %v2516_v43 = vpop.f32.mrf.mxu2 }
 0x612   : > { %v2312_v46 = vpop.f32.mrf.mxu1 }
 0x613   : > { %v2381_v28 = vsub.f32 %v2349_v50, %v2312_v46 }
 0x615   : > { %v3919_v20 = vpop.eup %3918  ;;  %v2443_v3 = vmul.f32 1.442695, %v2381_v28 }
 0x616   : > { %2566 = vmatmul.f32.gmra.mxu2 %v3919_v20 }
 0x617   : > { %3920 = vpow2.f32 %v2443_v3 }
 0x618   : > { %v2058_v33 = vpop.f32.mrf.mxu0 }
 0x619   : > { %v2519_v44 = vpop.f32.mrf.mxu2 }
 0x61a   : > { %v2315_v19 = vpop.f32.mrf.mxu1 }
 0x61b   : > { %v2382_v15 = vsub.f32 %v2350_v14, %v2315_v19  ;;  %v5634_v19 = vld [vmem:[%s5835_s7 + $0x78] sm:$0xff] }
 0x61c   : > { %3141 = vmatpush.msrb.mxu1 %v5634_v19 }
 0x61d   : > { %v3921_v54 = vpop.eup %3920  ;;  %v2445_v23 = vmul.f32 1.442695, %v2382_v15 }
 0x61e   : > { %2569 = vmatmul.f32.gmra.mxu2 %v3921_v54 }
 0x61f   : > { %3922 = vpow2.f32 %v2445_v23 }
 0x620   : > { %v2061_v31 = vpop.f32.mrf.mxu0 }
 0x621   : > { %v2522_v22 = vpop.f32.mrf.mxu2 }
 0x625   : > { %v3923_v42 = vpop.eup %3922 }
 0x626   : > { %2572 = vmatmul.f32.gmra.mxu2 %v3923_v42  ;;  %2696 = vmatpush.msrb.mxu3 %v3923_v42  ;;  %v5650_v42 = vld [vmem:[%s5835_s7 + $0x70] sm:$0xff] }
 0x627   : > { %3142 = vmatpush.msrb.mxu1 %v5650_v42 }
 0x628   : > { %2697 = vmatpush.msrb.mxu3 %v3921_v54  ;;  %v2064_v3 = vpop.f32.mrf.mxu0 }
 0x629   : > { %v2525_v18 = vpop.f32.mrf.mxu2 }
 0x62a   : > { %2698 = vmatpush.msrb.mxu3 %v3919_v20 }
 0x62c   : > { %2699 = vmatpush.msrb.mxu3 %v3917_v7 }
 0x62e   : > { %2700 = vmatpush.msrb.mxu3 %v3915_v16  ;;  %v2775_v16 = vmul.f32 %v5425_v24, %v5357_v36 }
 0x630   : > { %2701 = vmatpush.msrb.mxu3 %v5454_v40  ;;  %v5522_v40 = vperm.slane %v5368_v21, 1 }
 0x631   : > { %v2528_v50 = vpop.f32.mrf.mxu2 }
 0x632   : > { %v5510_v46 = vmul.f32 %v2528_v50, %v2052_v62  ;;  %2702 = vmatpush.msrb.mxu3 %v5436_v63  ;;  %vm2590_vm11 = vcmp.eq.s32.totalorder %v5373_v49, %v5522_v40  ;;  %vm2592_vm12 = vcmp.eq.s32.totalorder %v5394_v27, %v5522_v40  ;;  %vm2594_vm13 = vcmp.eq.s32.totalorder %v5412_v48, %v5522_v40  ;;  %v2920_v50 = vld [vmem:[#allocation15 + $0x18] sm:$0xff]  ;;  %v2646_v49 = vld [vmem:[#allocation4 + $0x20] sm:$0xff]  ;;  %v2648_v48 = vld [vmem:[#allocation4 + $0x28] sm:$0xff] }
 0x633   : > { %vm2596_vm14 = vcmp.eq.s32.totalorder %v5430_v53, %v5522_v40  ;;  %vm5843_vm15 = vcmp.eq.s32.totalorder %v5448_v37, %v5522_v40  ;;  %vm5842_vm0 = vcmp.eq.s32.totalorder %v5466_v34, %v5522_v40  ;;  %vm2602_vm1 = vcmp.eq.s32.totalorder %v5481_v29, %v5522_v40  ;;  %v2647_v27 = vld [vmem:[#allocation4 + $0x38] sm:$0xff]  ;;  %v2649_v53 = vld [vmem:[#allocation4 + $0x8] sm:$0xff] }
 0x634   : > { %2703 = vmatpush.msrb.mxu3 %v5418_v55 }
 0x636   : > { %2704 = vmatpush.msrb.mxu3 %v5400_v41 }
 0x638   : > { %2705 = vmatpush.msrb.mxu3 %v5382_v0  ;;  %v2067_v0 = vpop.f32.mrf.mxu0 }
 0x639   : > { %v2531_v28 = vpop.f32.mrf.mxu2 }
 0x63a   : > { %v5516_v14 = vmul.f32 %v2531_v28, %v2055_v60  ;;  %2706 = vmatpush.msrb.mxu3 %v5363_v57  ;;  %v2782_v57 = vmul.f32 %v2525_v18, %v5478_v52 }
 0x63c   : > { %2707 = vmatpush.msrb.mxu3 %v5354_v59  ;;  %v2779_v59 = vmul.f32 %v2516_v43, %v5427_v8  ;;  %v2776_v8 = vmul.f32 %v5443_v9, %v5366_v5 }
 0x63e   : > { %2708 = vmatpush.msrb.mxu3 %v5347_v1  ;;  %v2780_v1 = vmul.f32 %v2519_v44, %v5445_v2  ;;  %v2777_v2 = vmul.f32 %v5461_v51, %v5389_v32 }
 0x640   : > { %2709 = vmatpush.msrb.mxu3 %v5336_v11  ;;  %v2781_v11 = vmul.f32 %v2522_v22, %v5463_v17  ;;  %v2070_v41 = vpop.f32.mrf.mxu0 }
 0x641   : > { %v2534_v55 = vpop.f32.mrf.mxu2 }
 0x642   : > { %v5525_v63 = vmul.f32 %v2534_v55, %v2058_v33  ;;  %2710 = vmatpush.msrb.mxu3 %v5325_v6 }
 0x644   : > { %2711 = vmatpush.msrb.mxu3 %v5315_v45  ;;  %v2778_v45 = vmul.f32 %v5476_v61, %v5407_v25 }
 0x645   : > { %3620 = vmatmul.msk.f32.vlgmr.msrb.gmra.mxu3 %vm2590_vm11, %v4163_v58 }
 0x646   : > { %2799 = vmatpush.msra.mxu3 %v2782_v57 }
 0x648   : > { %2800 = vmatpush.msra.mxu3 %v2781_v11  ;;  %v2073_v5 = vpop.f32.mrf.mxu0  ;;  %v2918_v11 = vld [vmem:[#allocation15 + $0x8] sm:$0xff] }
 0x649   : > { %v2537_v6 = vpop.f32.mrf.mxu2 }
 0x64a   : > { %v5539_v21 = vmul.f32 %v2537_v6, %v2061_v31  ;;  %2801 = vmatpush.msra.mxu3 %v2780_v1  ;;  %v2921_v31 = vld [vmem:[#allocation15 + $0x20] sm:$0xff] }
 0x64b   : > { %2953 = vmatpush.msrb.mxu0 %v2921_v31  ;;  %3729 = vmatpush.msrb.mxu2 %v2921_v31  ;;  %v2917_v6 = vld [vmem:[#allocation15] sm:$0xff] }
 0x64c   : > { %2802 = vmatpush.msra.mxu3 %v2779_v59  ;;  %v3134_v59 = vld [vmem:[%s5835_s7 + $0x68] sm:$0xff] }
 0x64d   : > { %3621 = vmatmul.msk.f32.gmra.mxu3 %vm2592_vm12, %v4163_v58  ;;  %2954 = vmatpush.msrb.mxu0 %v2920_v50 }
 0x64e   : > { %2803 = vmatpush.msra.mxu3 %v2778_v45  ;;  %3730 = vmatpush.msrb.mxu2 %v2920_v50 }
 0x64f   : > { %3143 = vmatpush.msrb.mxu1 %v3134_v59 }
 0x650   : > { %2804 = vmatpush.msra.mxu3 %v2777_v2 }
 0x651   : > { %v2540_v17 = vpop.f32.mrf.mxu2 }
 0x652   : > { %v5555_v25 = vmul.f32 %v2540_v17, %v2064_v3  ;;  %2805 = vmatpush.msra.mxu3 %v2776_v8  ;;  %v2919_v3 = vld [vmem:[#allocation15 + $0x10] sm:$0xff] }
 0x653   : > { %2955 = vmatpush.msrb.mxu0 %v2919_v3  ;;  %3731 = vmatpush.msrb.mxu2 %v2919_v3 }
 0x654   : > { %2806 = vmatpush.msra.mxu3 %v2775_v16 }
 0x655   : > { %3622 = vmatmul.msk.f32.gmra.mxu3 %vm2594_vm13, %v4163_v58  ;;  %2956 = vmatpush.msrb.mxu0 %v2918_v11 }
 0x656   : > { %2807 = vmatpush.msra.mxu3 %v5409_v30  ;;  %3732 = vmatpush.msrb.mxu2 %v2918_v11  ;;  %v3122_v11 = vld [vmem:[%s5835_s7 + $0x8] sm:$0xff] }
 0x657   : > { %2957 = vmatpush.msrb.mxu0 %v2917_v6 }
 0x658   : > { %2808 = vmatpush.msra.mxu3 %v5391_v10  ;;  %v2076_v10 = vpop.f32.mrf.mxu0  ;;  %3733 = vmatpush.msrb.mxu2 %v2917_v6 }
 0x659   : > { %v2543_v32 = vpop.f32.mrf.mxu2 }
 0x65a   : > { %v5565_v9 = vmul.f32 %v2543_v32, %v2067_v0  ;;  %2809 = vmatpush.msra.mxu3 %v5370_v26  ;;  %3734 = vmatpush.msra.mxu2 %v5634_v19 }
 0x65c   : > { %2810 = vmatpush.msra.mxu3 %v5359_v13  ;;  %3736 = vmatpush.msra.mxu2 %v5650_v42 }
 0x65d   : > { %3623 = vmatmul.msk.f32.gmra.mxu3 %vm2596_vm14, %v4163_v58 }
 0x65e   : > { %2811 = vmatpush.msra.mxu3 %v5350_v35  ;;  %3738 = vmatpush.msra.mxu2 %v3134_v59 }
 0x660   : > { %2812 = vmatpush.msra.mxu3 %v5341_v47  ;;  %v5591_v47 = vpop.f32.mrf.mxu0 }
 0x661   : > { %v2546_v36 = vpop.f32.mrf.mxu2 }
 0x662   : > { %v5577_v30 = vmul.f32 %v2546_v36, %v2070_v41  ;;  %2813 = vmatpush.msra.mxu3 %v5330_v39  ;;  %v5597_v39 = vpop.f32.mrf.mxu3  ;;  %v2643_v36 = vld [vmem:[#allocation4] sm:$0xff] }
 0x664   : > { %2814 = vmatpush.msra.mxu3 %v5319_v4 }
 0x665   : > { %3624 = vmatmul.msk.f32.gmra.mxu3 %vm5843_vm15, %v4163_v58  ;;  %vm2606_vm15 = vcmp.eq.s32.totalorder %v5501_v38, %v5522_v40  ;;  %v3125_v38 = vld [vmem:[%s5835_s7 + $0x20] sm:$0xff] }
 0x668   : > { %v2082_v24 = vpop.f32.mrf.mxu0 }
 0x669   : > { %v2549_v13 = vpop.f32.mrf.mxu2 }
 0x66a   : > { %v5587_v35 = vmul.f32 %v2549_v13, %v2073_v5  ;;  %v5607_v51 = vpop.f32.mrf.mxu3  ;;  %v3133_v5 = vld [vmem:[%s5835_s7 + $0x60] sm:$0xff] }
 0x66b   : > { %3144 = vmatpush.msrb.mxu1 %v3133_v5  ;;  %3740 = vmatpush.msra.mxu2 %v3133_v5 }
 0x66d   : > { %3625 = vmatmul.msk.f32.gmra.mxu3 %vm5842_vm0, %v4163_v58  ;;  %vm2604_vm0 = vcmp.eq.s32.totalorder %v5492_v12, %v5522_v40 }
 0x670   : > { %v2085_v52 = vpop.f32.mrf.mxu0 }
 0x671   : > { %v2552_v4 = vpop.f32.mrf.mxu2 }
 0x672   : > { %v5599_v26 = vmul.f32 %v2552_v4, %v2076_v10  ;;  %v5619_v43 = vpop.f32.mrf.mxu3 }
 0x675   : > { %3626 = vmatmul.msk.f32.gmra.mxu3 %vm2602_vm1, %v4163_v58 }
 0x678   : > { %v2088_v20 = vpop.f32.mrf.mxu0 }
 0x679   : > { %v5609_v61 = vpop.f32.mrf.mxu2 }
 0x67a   : > { %v5625_v44 = vpop.f32.mrf.mxu3  ;;  %v2792_v16 = vmul.f32 %v5609_v61, %v5591_v47 }
 0x67d   : > { %3627 = vmatmul.msk.f32.gmra.mxu3 %vm2604_vm0, %v4163_v58 }
 0x680   : > { %v2091_v60 = vpop.f32.mrf.mxu0 }
 0x681   : > { %v2558_v7 = vpop.f32.mrf.mxu2 }
 0x682   : > { %v5641_v54 = vpop.f32.mrf.mxu3  ;;  %v2793_v8 = vmul.f32 %v2558_v7, %v2082_v24  ;;  %v3130_v7 = vld [vmem:[%s5835_s7 + $0x48] sm:$0xff] }
 0x685   : > { %3628 = vmatmul.msk.f32.gmra.mxu3 %vm2606_vm15, %v4163_v58 }
 0x688   : > { %v2094_v22 = vpop.f32.mrf.mxu0 }
 0x689   : > { %v2561_v62 = vpop.f32.mrf.mxu2 }
 0x68a   : > { %v5653_v33 = vpop.f32.mrf.mxu3  ;;  %v2794_v2 = vmul.f32 %v2561_v62, %v2085_v52 }
 0x68d   : > { %3629 = vmatmul.msk.f32.vlgmr.msra.gmra.mxu3 %vm2589_vm2, %v4163_v58  ;;  %vm5920_vm2 = vcmp.eq.s32.totalorder %v5448_v37, %v5522_v40  ;;  %v2650_v37 = vld [vmem:[#allocation4 + $0x30] sm:$0xff] }
 0x690   : > { %v2097_v28 = vpop.f32.mrf.mxu0 }
 0x691   : > { %v2564_v15 = vpop.f32.mrf.mxu2 }
 0x692   : > { %v5659_v57 = vpop.f32.mrf.mxu3  ;;  %v2795_v41 = vmul.f32 %v2564_v15, %v2088_v20 }
 0x695   : > { %3630 = vmatmul.msk.f32.gmra.mxu3 %vm2591_vm3, %v4163_v58  ;;  %vm5921_vm3 = vcmp.eq.s32.totalorder %v5466_v34, %v5522_v40  ;;  %v3128_v34 = vld [vmem:[%s5835_s7 + $0x38] sm:$0xff] }
 0x699   : > { %v2567_v23 = vpop.f32.mrf.mxu2 }
 0x69a   : > { %v2796_v45 = vmul.f32 %v2567_v23, %v2091_v60  ;;  %v5670_v17 = vpop.f32.mrf.mxu3 }
 0x69d   : > { %3631 = vmatmul.msk.f32.gmra.mxu3 %vm2593_vm4, %v4163_v58 }
 0x6a1   : > { %v2570_v18 = vpop.f32.mrf.mxu2 }
 0x6a2   : > { %v2797_v1 = vmul.f32 %v2570_v18, %v2094_v22  ;;  %v5688_v32 = vpop.f32.mrf.mxu3 }
 0x6a5   : > { %3632 = vmatmul.msk.f32.gmra.mxu3 %vm2595_vm5, %v4163_v58 }
 0x6a9   : > { %v2573_v55 = vpop.f32.mrf.mxu2 }
 0x6aa   : > { %v2798_v0 = vmul.f32 %v2573_v55, %v2097_v28  ;;  %v3127_v28 = vld [vmem:[%s5835_s7 + $0x30] sm:$0xff]  ;;  %v3126_v55 = vld [vmem:[%s5835_s7 + $0x28] sm:$0xff] }
 0x6ac   : > { %2843 = vmatpush.msrb.mxu3 %v2798_v0  ;;  %v3124_v0 = vld [vmem:[%s5835_s7 + $0x18] sm:$0xff] }
 0x6ad   : > { %3633 = vmatmul.msk.f32.gmra.mxu3 %vm2597_vm6, %v4163_v58 }
 0x6ae   : > { %2844 = vmatpush.msrb.mxu3 %v2797_v1  ;;  %v3121_v1 = vld [vmem:[%s5835_s7] sm:$0xff] }
 0x6b0   : > { %2845 = vmatpush.msrb.mxu3 %v2796_v45 }
 0x6b2   : > { %2846 = vmatpush.msrb.mxu3 %v2795_v41 }
 0x6b4   : > { %2847 = vmatpush.msrb.mxu3 %v2794_v2 }
 0x6b5   : > { %3634 = vmatmul.msk.f32.gmra.mxu3 %vm2599_vm7, %v4163_v58 }
 0x6b6   : > { %2848 = vmatpush.msrb.mxu3 %v2793_v8 }
 0x6b8   : > { %2849 = vmatpush.msrb.mxu3 %v2792_v16 }
 0x6ba   : > { %2850 = vmatpush.msrb.mxu3 %v5599_v26 }
 0x6bc   : > { %2851 = vmatpush.msrb.mxu3 %v5587_v35 }
 0x6bd   : > { %3635 = vmatmul.msk.f32.gmra.mxu3 %vm2601_vm8, %v4163_v58 }
 0x6be   : > { %2852 = vmatpush.msrb.mxu3 %v5577_v30 }
 0x6c0   : > { %2853 = vmatpush.msrb.mxu3 %v5565_v9 }
 0x6c2   : > { %2854 = vmatpush.msrb.mxu3 %v5555_v25 }
 0x6c4   : > { %2855 = vmatpush.msrb.mxu3 %v5539_v21 }
 0x6c5   : > { %3636 = vmatmul.msk.f32.gmra.mxu3 %vm2603_vm9, %v4163_v58 }
 0x6c6   : > { %2856 = vmatpush.msrb.mxu3 %v5525_v63  ;;  %v3132_v63 = vld [vmem:[%s5835_s7 + $0x58] sm:$0xff] }
 0x6c7   : > { %3145 = vmatpush.msrb.mxu1 %v3132_v63  ;;  %3742 = vmatpush.msra.mxu2 %v3132_v63 }
 0x6c8   : > { %v2713_v10 = vpop.f32.mrf.mxu3  ;;  %2857 = vmatpush.msrb.mxu3 %v5516_v14  ;;  %v2644_v14 = vld [vmem:[#allocation4 + $0x40] sm:$0xff] }
 0x6c9   : > { %v2714_v30 = vadd.f32 %v2713_v10, %v5597_v39  ;;  %v3131_v39 = vld [vmem:[%s5835_s7 + $0x50] sm:$0xff] }
 0x6ca   : > { %2858 = vmatpush.msrb.mxu3 %v5510_v46  ;;  %3146 = vmatpush.msrb.mxu1 %v3131_v39 }
 0x6cb   : > { %v2740_v9 = vadd.f32 %v2714_v30, %v2643_v36  ;;  %3744 = vmatpush.msra.mxu2 %v3131_v39  ;;  %v2758_v30 = vld [vmem:[#allocation5] sm:$0xff] }
 0x6cc   : > { %3735 = vmatpush.msra.mxu3 %v5634_v19  ;;  %3147 = vmatpush.msrb.mxu1 %v3130_v7  ;;  %v3129_v19 = vld [vmem:[%s5835_s7 + $0x40] sm:$0xff] }
 0x6cd   : > { %2749 = vst [vmem:[#allocation4] sm:$0xff] %v2740_v9  ;;  %3637 = vmatmul.msk.f32.gmra.mxu3 %vm2605_vm10, %v4163_v58  ;;  %2958 = vmatmul.f32.vlgmr.msrb.gmra.mxu0 %v2740_v9 }
 0x6ce   : > { %3737 = vmatpush.msra.mxu3 %v5650_v42  ;;  %3746 = vmatpush.msra.mxu2 %v3130_v7  ;;  %v2651_v42 = vld [vmem:[#allocation4 + $0x10] sm:$0xff] }
 0x6cf   : > { %3148 = vmatpush.msrb.mxu1 %v3129_v19 }
 0x6d0   : > { %v2716_v46 = vpop.f32.mrf.mxu3  ;;  %3739 = vmatpush.msra.mxu3 %v3134_v59  ;;  %3748 = vmatpush.msra.mxu2 %v3129_v19 }
 0x6d1   : > { %v2717_v21 = vadd.f32 %v2716_v46, %v5607_v51  ;;  %3149 = vmatpush.msrb.mxu1 %v3128_v34 }
 0x6d2   : > { %3741 = vmatpush.msra.mxu3 %v3133_v5  ;;  %3750 = vmatpush.msra.mxu2 %v3128_v34 }
 0x6d3   : > { %v2741_v25 = vadd.f32 %v2717_v21, %v2644_v14  ;;  %3150 = vmatpush.msrb.mxu1 %v3127_v28 }
 0x6d4   : > { %3743 = vmatpush.msra.mxu3 %v3132_v63  ;;  %3752 = vmatpush.msra.mxu2 %v3127_v28 }
 0x6d5   : > { %2750 = vst [vmem:[#allocation4 + $0x40] sm:$0xff] %v2741_v25  ;;  %3638 = vmatmul.msk.f32.vlgmr.msrb.gmra.mxu3 %vm2590_vm11, %v4163_v58  ;;  %2961 = vmatmul.f32.gmra.mxu0 %v2741_v25 }
 0x6d6   : > { %3745 = vmatpush.msra.mxu3 %v3131_v39  ;;  %3151 = vmatpush.msrb.mxu1 %v3126_v55 }
 0x6d7   : > { %3754 = vmatpush.msra.mxu2 %v3126_v55 }
 0x6d8   : > { %v2719_v13 = vpop.f32.mrf.mxu3  ;;  %3747 = vmatpush.msra.mxu3 %v3130_v7  ;;  %3152 = vmatpush.msrb.mxu1 %v3125_v38 }
 0x6d9   : > { %v2720_v35 = vadd.f32 %v2719_v13, %v5619_v43  ;;  %3756 = vmatpush.msra.mxu2 %v3125_v38 }
 0x6da   : > { %3749 = vmatpush.msra.mxu3 %v3129_v19  ;;  %3153 = vmatpush.msrb.mxu1 %v3124_v0 }
 0x6db   : > { %v2742_v47 = vadd.f32 %v2720_v35, %v2645_v56  ;;  %3758 = vmatpush.msra.mxu2 %v3124_v0 }
 0x6dc   : > { %3751 = vmatpush.msra.mxu3 %v3128_v34 }
 0x6dd   : > { %2751 = vst [vmem:[#allocation4 + $0x18] sm:$0xff] %v2742_v47  ;;  %3639 = vmatmul.msk.f32.gmra.mxu3 %vm2592_vm12, %v4163_v58  ;;  %2964 = vmatmul.f32.gmra.mxu0 %v2742_v47 }
 0x6de   : > { %3753 = vmatpush.msra.mxu3 %v3127_v28 }
 0x6e0   : > { %v2722_v4 = vpop.f32.mrf.mxu3  ;;  %3755 = vmatpush.msra.mxu3 %v3126_v55 }
 0x6e1   : > { %v2723_v26 = vadd.f32 %v2722_v4, %v5625_v44 }
 0x6e2   : > { %3757 = vmatpush.msra.mxu3 %v3125_v38 }
 0x6e3   : > { %v2743_v24 = vadd.f32 %v2723_v26, %v2646_v49 }
 0x6e4   : > { %3759 = vmatpush.msra.mxu3 %v3124_v0 }
 0x6e5   : > { %2752 = vst [vmem:[#allocation4 + $0x20] sm:$0xff] %v2743_v24  ;;  %3640 = vmatmul.msk.f32.gmra.mxu3 %vm2594_vm13, %v4163_v58  ;;  %2967 = vmatmul.f32.gmra.mxu0 %v2743_v24 }
 0x6e8   : > { %v2725_v51 = vpop.f32.mrf.mxu3 }
 0x6e9   : > { %v2726_v61 = vadd.f32 %v2725_v51, %v5641_v54 }
 0x6eb   : > { %v2744_v52 = vadd.f32 %v2726_v61, %v2647_v27  ;;  %v2759_v27 = vld [vmem:[#allocation5 + $0x8] sm:$0xff] }
 0x6ed   : > { %2753 = vst [vmem:[#allocation4 + $0x38] sm:$0xff] %v2744_v52  ;;  %3641 = vmatmul.msk.f32.gmra.mxu3 %vm2596_vm14, %v4163_v58  ;;  %2970 = vmatmul.f32.gmra.mxu0 %v2744_v52 }
 0x6f0   : > { %v2728_v43 = vpop.f32.mrf.mxu3 }
 0x6f1   : > { %v2729_v62 = vadd.f32 %v2728_v43, %v5653_v33 }
 0x6f3   : > { %v2745_v20 = vadd.f32 %v2729_v62, %v2648_v48 }
 0x6f5   : > { %2754 = vst [vmem:[#allocation4 + $0x28] sm:$0xff] %v2745_v20  ;;  %3642 = vmatmul.msk.f32.gmra.mxu3 %vm5920_vm2, %v4163_v58  ;;  %2973 = vmatmul.f32.gmra.mxu0 %v2745_v20 }
 0x6f8   : > { %v2731_v44 = vpop.f32.mrf.mxu3 }
 0x6f9   : > { %v2732_v15 = vadd.f32 %v2731_v44, %v5659_v57  ;;  %v3123_v57 = vld [vmem:[%s5835_s7 + $0x10] sm:$0xff] }
 0x6fa   : > { %3154 = vmatpush.msrb.mxu1 %v3123_v57  ;;  %3760 = vmatpush.msra.mxu2 %v3123_v57 }
 0x6fb   : > { %v2746_v60 = vadd.f32 %v2732_v15, %v2649_v53  ;;  %3761 = vmatpush.msra.mxu3 %v3123_v57 }
 0x6fc   : > { %3155 = vmatpush.msrb.mxu1 %v3122_v11  ;;  %3762 = vmatpush.msra.mxu2 %v3122_v11 }
 0x6fd   : > { %2755 = vst [vmem:[#allocation4 + $0x8] sm:$0xff] %v2746_v60  ;;  %3643 = vmatmul.msk.f32.gmra.mxu3 %vm5921_vm3, %v4163_v58  ;;  %2976 = vmatmul.f32.gmra.mxu0 %v2746_v60 }
 0x6fe   : > { %3763 = vmatpush.msra.mxu3 %v3122_v11  ;;  %3156 = vmatpush.msrb.mxu1 %v3121_v1 }
 0x6ff   : > { %3764 = vmatpush.msra.mxu2 %v3121_v1 }
 0x700   : > { %v2734_v54 = vpop.f32.mrf.mxu3  ;;  %3765 = vmatpush.msra.mxu3 %v3121_v1 }
 0x701   : > { %v2735_v23 = vadd.f32 %v2734_v54, %v5670_v17 }
 0x703   : > { %v2747_v22 = vadd.f32 %v2735_v23, %v2650_v37 }
 0x705   : > { %2756 = vst [vmem:[#allocation4 + $0x30] sm:$0xff] %v2747_v22  ;;  %3644 = vmatmul.msk.f32.gmra.mxu3 %vm2602_vm1, %v4163_v58  ;;  %2979 = vmatmul.f32.vlgmr.msrb.gmra.mxu2 %v2747_v22  ;;  %v2760_v22 = vld [vmem:[#allocation5 + $0x28] sm:$0xff] }
 0x708   : > { %v2737_v33 = vpop.f32.mrf.mxu3 }
 0x709   : > { %v2738_v18 = vadd.f32 %v2737_v33, %v5688_v32 }
 0x70b   : > { %v2748_v31 = vadd.f32 %v2738_v18, %v2651_v42 }
 0x70d   : > { %2757 = vst [vmem:[#allocation4 + $0x10] sm:$0xff] %v2748_v31  ;;  %3645 = vmatmul.msk.f32.gmra.mxu3 %vm2604_vm0, %v4163_v58  ;;  %2982 = vmatmul.f32.gmra.mxu2 %v2748_v31 }
 0x710   : > { %v2816_v29 = vpop.f32.mrf.mxu3 }
 0x715   : > { %3646 = vmatmul.msk.f32.gmra.mxu3 %vm2606_vm15, %v4163_v58 }
 0x718   : > { %v5766_v50 = vpop.f32.mrf.mxu3 }
 0x720   : > { %v5771_v3 = vpop.f32.mrf.mxu3 }
 0x728   : > { %v5773_v12 = vpop.f32.mrf.mxu3 }
 0x730   : > { %v5778_v58 = vpop.f32.mrf.mxu3 }
 0x738   : > { %v5783_v40 = vpop.f32.mrf.mxu3 }
 0x740   : > { %v5797_v6 = vpop.f32.mrf.mxu3 }
 0x748   : > { %v5799_v59 = vpop.f32.mrf.mxu3 }
 0x74a   : > { %v2959_v45 = vpop.f32.mrf.mxu0 }
 0x74b   : > { %v2960_v41 = vadd.f32 1e-16, %v2959_v45 }
 0x74d   : > { %3924 = vrcp.f32 %v2960_v41  ;;  %v2997_v36 = vand.u32 2147483648, %v2960_v41  ;;  %v2995_v63 = vand.u32 2147483647, %v2960_v41  ;;  %vm2991_vm5 = vweird.f32 %v2960_v41 }
 0x74f   : > { %v2998_v35 = vor.u32 1.1754944e-38, %v2997_v36  ;;  %vm2996_vm7 = vcmp.eq.f32.partialorder %v2995_v63, 8.507059e+37 }
 0x750   : > { %v5801_v2 = vpop.f32.mrf.mxu3 }
 0x752   : > { %v2962_v8 = vpop.f32.mrf.mxu0 }
 0x753   : > { %v3925_v17 = vpop.eup %3924  ;;  %v2963_v16 = vadd.f32 1e-16, %v2962_v8  ;;  %v2761_v8 = vld [vmem:[#allocation5 + $0x38] sm:$0xff] }
 0x754   : > { %v2987_v5 = vmul.f32 %v3925_v17, %v2960_v41  ;;  %vm2992_vm4 = vweird.f32 %v3925_v17 }
 0x755   : > { %3926 = vrcp.f32 %v2963_v16  ;;  %vm2993_vm6 = vmor %vm2991_vm5, %vm2992_vm4  ;;  %v3011_v24 = vand.u32 2147483648, %v2963_v16  ;;  %v3009_v52 = vand.u32 2147483647, %v2963_v16  ;;  %vm3005_vm9 = vweird.f32 %v2963_v16 }
 0x756   : > { %v2988_v32 = vsub.f32 1.0, %v2987_v5 }
 0x757   : > { %v3012_v44 = vor.u32 1.1754944e-38, %v3011_v24  ;;  %vm3010_vm11 = vcmp.eq.f32.partialorder %v3009_v52, 8.507059e+37 }
 0x758   : > { %v2989_v10 = vmul.f32 %v3925_v17, %v2988_v32  ;;  %v2860_v9 = vpop.f32.mrf.mxu3 }
 0x759   : > { %v2861_v14 = vadd.f32 %v2860_v9, %v2816_v29 }
 0x75a   : > { %v2965_v46 = vpop.f32.mrf.mxu0  ;;  %v2990_v21 = vadd.f32 %v3925_v17, %v2989_v10 }
 0x75b   : > { %v3927_v25 = vpop.eup %3926  ;;  %v2887_v56 = vadd.f32 %v2861_v14, %v2758_v30  ;;  %v2966_v13 = vadd.f32 1e-16, %v2965_v46 }
 0x75c   : > { %v3001_v47 = vmul.f32 %v3927_v25, %v2963_v16  ;;  %v2994_v39 = vsel %vm2993_vm6, %v3925_v17, %v2990_v21  ;;  %vm3006_vm8 = vweird.f32 %v3927_v25 }
 0x75d   : > { %2896 = vst [vmem:[#allocation5] sm:$0xff] %v2887_v56  ;;  %3928 = vrcp.f32 %v2966_v13  ;;  %v2999_v49 = vsel %vm2996_vm7, %v2998_v35, %v2994_v39  ;;  %vm3007_vm10 = vmor %vm3005_vm9, %vm3006_vm8  ;;  %v3025_v23 = vand.u32 2147483648, %v2966_v13  ;;  %v3023_v34 = vand.u32 2147483647, %v2966_v13  ;;  %v2762_v35 = vld [vmem:[#allocation5 + $0x30] sm:$0xff] }
 0x75e   : > { %v3002_v4 = vsub.f32 1.0, %v3001_v47  ;;  %v3112_v26 = vmul.f32 %v2999_v49, %v2887_v56  ;;  %vm3019_vm13 = vweird.f32 %v2966_v13 }
 0x75f   : > { %v3026_v38 = vor.u32 1.1754944e-38, %v3025_v23  ;;  %vm3024_vm15 = vcmp.eq.f32.partialorder %v3023_v34, 8.507059e+37 }
 0x760   : > { %v2863_v51 = vpop.f32.mrf.mxu3  ;;  %3157 = vmatmul.f32.vlgmr.msrb.gmra.mxu1 %v3112_v26  ;;  %v3003_v61 = vmul.f32 %v3927_v25, %v3002_v4 }
 0x761   : > { %v2864_v7 = vadd.f32 %v2863_v51, %v5766_v50 }
 0x762   : > { %v2968_v48 = vpop.f32.mrf.mxu0  ;;  %v3004_v43 = vadd.f32 %v3927_v25, %v3003_v61 }
 0x763   : > { %v3929_v62 = vpop.eup %3928  ;;  %v2888_v20 = vadd.f32 %v2864_v7, %v2759_v27  ;;  %v2969_v53 = vadd.f32 1e-16, %v2968_v48 }
 0x764   : > { %v3015_v19 = vmul.f32 %v3929_v62, %v2966_v13  ;;  %v3008_v15 = vsel %vm3007_vm10, %v3927_v25, %v3004_v43  ;;  %vm3020_vm12 = vweird.f32 %v3929_v62 }
 0x765   : > { %2897 = vst [vmem:[#allocation5 + $0x8] sm:$0xff] %v2888_v20  ;;  %3930 = vrcp.f32 %v2969_v53  ;;  %v3013_v60 = vsel %vm3010_vm11, %v3012_v44, %v3008_v15  ;;  %vm3021_vm14 = vmor %vm3019_vm13, %vm3020_vm12  ;;  %v3039_v41 = vand.u32 2147483648, %v2969_v53  ;;  %v3037_v16 = vand.u32 2147483647, %v2969_v53 }
 0x766   : > { %v3016_v37 = vsub.f32 1.0, %v3015_v19  ;;  %v3113_v54 = vmul.f32 %v3013_v60, %v2888_v20  ;;  %vm3033_vm1 = vweird.f32 %v2969_v53 }
 0x767   : > { %v3040_v63 = vor.u32 1.1754944e-38, %v3039_v41  ;;  %vm3038_vm3 = vcmp.eq.f32.partialorder %v3037_v16, 8.507059e+37 }
 0x768   : > { %v2866_v42 = vpop.f32.mrf.mxu3  ;;  %3160 = vmatmul.f32.gmra.mxu1 %v3113_v54  ;;  %v3017_v33 = vmul.f32 %v3929_v62, %v3016_v37 }
 0x769   : > { %v2867_v18 = vadd.f32 %v2866_v42, %v5771_v3 }
 0x76a   : > { %v2971_v31 = vpop.f32.mrf.mxu0  ;;  %v3018_v29 = vadd.f32 %v3929_v62, %v3017_v33 }
 0x76b   : > { %v3931_v50 = vpop.eup %3930  ;;  %v2889_v28 = vadd.f32 %v2867_v18, %v2760_v22  ;;  %v2972_v55 = vadd.f32 1e-16, %v2971_v31 }
 0x76c   : > { %v3029_v0 = vmul.f32 %v3931_v50, %v2969_v53  ;;  %v3022_v57 = vsel %vm3021_vm14, %v3929_v62, %v3018_v29  ;;  %vm3034_vm0 = vweird.f32 %v3931_v50  ;;  %v2763_v53 = vld [vmem:[#allocation5 + $0x20] sm:$0xff]  ;;  %v2764_v29 = vld [vmem:[#allocation5 + $0x10] sm:$0xff] }
 0x76d   : > { %2898 = vst [vmem:[#allocation5 + $0x28] sm:$0xff] %v2889_v28  ;;  %3932 = vrcp.f32 %v2972_v55  ;;  %v3027_v11 = vsel %vm3024_vm15, %v3026_v38, %v3022_v57  ;;  %vm3035_vm2 = vmor %vm3033_vm1, %vm3034_vm0  ;;  %v3053_v13 = vand.u32 2147483648, %v2972_v55  ;;  %v3051_v39 = vand.u32 2147483647, %v2972_v55 }
 0x76e   : > { %v3030_v1 = vsub.f32 1.0, %v3029_v0  ;;  %v3114_v45 = vmul.f32 %v3027_v11, %v2889_v28  ;;  %vm3047_vm5 = vweird.f32 %v2972_v55 }
 0x76f   : > { %v3054_v61 = vor.u32 1.1754944e-38, %v3053_v13  ;;  %vm3052_vm7 = vcmp.eq.f32.partialorder %v3051_v39, 8.507059e+37 }
 0x770   : > { %v2869_v17 = vpop.f32.mrf.mxu3  ;;  %3163 = vmatmul.f32.gmra.mxu1 %v3114_v45  ;;  %v3031_v3 = vmul.f32 %v3931_v50, %v3030_v1 }
 0x771   : > { %v2870_v5 = vadd.f32 %v2869_v17, %v5773_v12  ;;  %v2765_v17 = vld [vmem:[#allocation5 + $0x18] sm:$0xff] }
 0x772   : > { %v2974_v32 = vpop.f32.mrf.mxu0  ;;  %v3032_v36 = vadd.f32 %v3931_v50, %v3031_v3 }
 0x773   : > { %v3933_v10 = vpop.eup %3932  ;;  %v2890_v30 = vadd.f32 %v2870_v5, %v2761_v8  ;;  %v2975_v9 = vadd.f32 1e-16, %v2974_v32 }
 0x774   : > { %v3043_v14 = vmul.f32 %v3933_v10, %v2972_v55  ;;  %v3036_v46 = vsel %vm3035_vm2, %v3931_v50, %v3032_v36  ;;  %vm3048_vm4 = vweird.f32 %v3933_v10 }
 0x775   : > { %2899 = vst [vmem:[#allocation5 + $0x38] sm:$0xff] %v2890_v30  ;;  %3934 = vrcp.f32 %v2975_v9  ;;  %v3041_v21 = vsel %vm3038_vm3, %v3040_v63, %v3036_v46  ;;  %vm3049_vm6 = vmor %vm3047_vm5, %vm3048_vm4  ;;  %v3067_v20 = vand.u32 2147483648, %v2975_v9  ;;  %v3065_v19 = vand.u32 2147483647, %v2975_v9 }
 0x776   : > { %v3044_v25 = vsub.f32 1.0, %v3043_v14  ;;  %v3115_v56 = vmul.f32 %v3041_v21, %v2890_v30  ;;  %vm3061_vm9 = vweird.f32 %v2975_v9  ;;  %v2766_v21 = vld [vmem:[#allocation5 + $0x40] sm:$0xff] }
 0x777   : > { %v3068_v23 = vor.u32 1.1754944e-38, %v3067_v20  ;;  %vm3066_vm11 = vcmp.eq.f32.partialorder %v3065_v19, 8.507059e+37 }
 0x778   : > { %v2872_v47 = vpop.f32.mrf.mxu3  ;;  %3166 = vmatmul.f32.gmra.mxu1 %v3115_v56  ;;  %v3045_v12 = vmul.f32 %v3933_v10, %v3044_v25 }
 0x779   : > { %v2873_v49 = vadd.f32 %v2872_v47, %v5778_v58 }
 0x77a   : > { %v2977_v4 = vpop.f32.mrf.mxu0  ;;  %v3046_v26 = vadd.f32 %v3933_v10, %v3045_v12 }
 0x77b   : > { %v3935_v24 = vpop.eup %3934  ;;  %v2891_v27 = vadd.f32 %v2873_v49, %v2762_v35  ;;  %v2978_v51 = vadd.f32 1e-16, %v2977_v4 }
 0x77c   : > { %v3057_v52 = vmul.f32 %v3935_v24, %v2975_v9  ;;  %v3050_v7 = vsel %vm3049_vm6, %v3933_v10, %v3046_v26  ;;  %vm3062_vm8 = vweird.f32 %v3935_v24 }
 0x77d   : > { %2900 = vst [vmem:[#allocation5 + $0x30] sm:$0xff] %v2891_v27  ;;  %3936 = vrcp.f32 %v2978_v51  ;;  %v3055_v48 = vsel %vm3052_vm7, %v3054_v61, %v3050_v7  ;;  %vm3063_vm10 = vmor %vm3061_vm9, %vm3062_vm8  ;;  %v3081_v31 = vand.u32 2147483648, %v2978_v51  ;;  %vm3075_vm13 = vweird.f32 %v2978_v51 }
 0x77e   : > { %v3058_v43 = vsub.f32 1.0, %v3057_v52  ;;  %v3116_v62 = vmul.f32 %v3055_v48, %v2891_v27  ;;  %v3859_v48 = vld [vmem:[%s5836_s8] ss:$0 sm:$0xff] }
 0x77f   : > { %v3082_v1 = vor.u32 1.1754944e-38, %v3081_v31 }
 0x780   : > { %v2875_v44 = vpop.f32.mrf.mxu3  ;;  %3169 = vmatmul.f32.gmra.mxu1 %v3116_v62  ;;  %v3059_v58 = vmul.f32 %v3935_v24, %v3058_v43 }
 0x781   : > { %v2876_v15 = vadd.f32 %v2875_v44, %v5783_v40  ;;  %v3079_v40 = vand.u32 2147483647, %v2978_v51 }
 0x782   : > { %v3060_v60 = vadd.f32 %v3935_v24, %v3059_v58 }
 0x783   : > { %v3937_v37 = vpop.eup %3936  ;;  %v2892_v54 = vadd.f32 %v2876_v15, %v2763_v53  ;;  %vm3080_vm15 = vcmp.eq.f32.partialorder %v3079_v40, 8.507059e+37 }
 0x784   : > { %v3071_v22 = vmul.f32 %v3937_v37, %v2978_v51  ;;  %v3064_v42 = vsel %vm3063_vm10, %v3935_v24, %v3060_v60  ;;  %vm3076_vm12 = vweird.f32 %v3937_v37 }
 0x785   : > { %2901 = vst [vmem:[#allocation5 + $0x20] sm:$0xff] %v2892_v54  ;;  %v3069_v33 = vsel %vm3066_vm11, %v3068_v23, %v3064_v42  ;;  %vm3077_vm14 = vmor %vm3075_vm13, %vm3076_vm12 }
 0x786   : > { %v3072_v34 = vsub.f32 1.0, %v3071_v22  ;;  %v3117_v18 = vmul.f32 %v3069_v33, %v2892_v54 }
 0x788   : > { %v2878_v50 = vpop.f32.mrf.mxu3  ;;  %v2980_v28 = vpop.f32.mrf.mxu2  ;;  %3172 = vmatmul.f32.gmra.mxu1 %v3117_v18  ;;  %v3073_v55 = vmul.f32 %v3937_v37, %v3072_v34 }
 0x789   : > { %v2879_v38 = vadd.f32 %v2878_v50, %v5797_v6  ;;  %v2981_v0 = vadd.f32 1e-16, %v2980_v28 }
 0x78a   : > { %v3074_v57 = vadd.f32 %v3937_v37, %v3073_v55 }
 0x78b   : > { %v2893_v11 = vadd.f32 %v2879_v38, %v2764_v29  ;;  %3938 = vrcp.f32 %v2981_v0  ;;  %v3095_v9 = vand.u32 2147483648, %v2981_v0  ;;  %v3093_v14 = vand.u32 2147483647, %v2981_v0 }
 0x78c   : > { %v3078_v45 = vsel %vm3077_vm14, %v3937_v37, %v3074_v57  ;;  %vm3089_vm1 = vweird.f32 %v2981_v0 }
 0x78d   : > { %2902 = vst [vmem:[#allocation5 + $0x10] sm:$0xff] %v2893_v11  ;;  %v3083_v41 = vsel %vm3080_vm15, %v3082_v1, %v3078_v45  ;;  %v3096_v13 = vor.u32 1.1754944e-38, %v3095_v9  ;;  %vm3094_vm3 = vcmp.eq.f32.partialorder %v3093_v14, 8.507059e+37 }
 0x78e   : > { %v3118_v8 = vmul.f32 %v3083_v41, %v2893_v11 }
 0x790   : > { %v2881_v3 = vpop.f32.mrf.mxu3  ;;  %v2983_v16 = vpop.f32.mrf.mxu2  ;;  %3175 = vmatmul.f32.gmra.mxu1 %v3118_v8 }
 0x791   : > { %v3939_v5 = vpop.eup %3938  ;;  %v2882_v32 = vadd.f32 %v2881_v3, %v5799_v59  ;;  %v2984_v6 = vadd.f32 1e-16, %v2983_v16 }
 0x792   : > { %v3085_v36 = vmul.f32 %v3939_v5, %v2981_v0  ;;  %vm3090_vm0 = vweird.f32 %v3939_v5 }
 0x793   : > { %v2894_v10 = vadd.f32 %v2882_v32, %v2765_v17  ;;  %3940 = vrcp.f32 %v2984_v6  ;;  %vm3091_vm2 = vmor %vm3089_vm1, %vm3090_vm0  ;;  %v3109_v26 = vand.u32 2147483648, %v2984_v6  ;;  %v3107_v27 = vand.u32 2147483647, %v2984_v6 }
 0x794   : > { %v3086_v30 = vsub.f32 1.0, %v3085_v36  ;;  %vm3103_vm5 = vweird.f32 %v2984_v6 }
 0x795   : > { %2903 = vst [vmem:[#allocation5 + $0x18] sm:$0xff] %v2894_v10  ;;  %v3110_v61 = vor.u32 1.1754944e-38, %v3109_v26  ;;  %vm3108_vm7 = vcmp.eq.f32.partialorder %v3107_v27, 8.507059e+37 }
 0x796   : > { %v3087_v63 = vmul.f32 %v3939_v5, %v3086_v30 }
 0x798   : > { %v3088_v46 = vadd.f32 %v3939_v5, %v3087_v63  ;;  %v2884_v25 = vpop.f32.mrf.mxu3 }
 0x799   : > { %v3941_v56 = vpop.eup %3940  ;;  %v2885_v35 = vadd.f32 %v2884_v25, %v5801_v2 }
 0x79a   : > { %v3099_v59 = vmul.f32 %v3941_v56, %v2984_v6  ;;  %v3092_v47 = vsel %vm3091_vm2, %v3939_v5, %v3088_v46  ;;  %vm3104_vm4 = vweird.f32 %v3941_v56 }
 0x79b   : > { %v2895_v12 = vadd.f32 %v2885_v35, %v2766_v21  ;;  %v3097_v39 = vsel %vm3094_vm3, %v3096_v13, %v3092_v47  ;;  %vm3105_vm6 = vmor %vm3103_vm5, %vm3104_vm4 }
 0x79c   : > { %v3100_v49 = vsub.f32 1.0, %v3099_v59  ;;  %v3119_v4 = vmul.f32 %v3097_v39, %v2894_v10 }
 0x79d   : > { %2904 = vst [vmem:[#allocation5 + $0x40] sm:$0xff] %v2895_v12 }
 0x79e   : > { %v3101_v24 = vmul.f32 %v3941_v56, %v3100_v49  ;;  %3178 = vmatmul.f32.vlgmr.msra.gmra.mxu2 %v3119_v4 }
 0x7a0   : > { %v3102_v51 = vadd.f32 %v3941_v56, %v3101_v24 }
 0x7a2   : > { %v3106_v52 = vsel %vm3105_vm6, %v3941_v56, %v3102_v51 }
 0x7a3   : > { %v3111_v2 = vsel %vm3108_vm7, %v3110_v61, %v3106_v52 }
 0x7a4   : > { %v3120_v7 = vmul.f32 %v3111_v2, %v2895_v12 }
 0x7a6   : > { %3181 = vmatmul.f32.vlgmr.msra.gmra.mxu3 %v3120_v7 }
 0x7dd   : > { %v3158_v43 = vpop.f32.mrf.mxu1 }
 0x7de   : > { %v3159_v62 = vadd.f32 %v3859_v48, %v3158_v43 }
 0x7e0   : > { %3185 = vst [vmem:[#allocation17] sm:$0xff] %v3159_v62 }
 0x7e5   : > { %v3161_v20 = vpop.f32.mrf.mxu1 }
 0x7e6   : > { %v3162_v53 = vadd.f32 %v3859_v48, %v3161_v20 }
 0x7e8   : > { %3186 = vst [vmem:[#allocation17 + $0x8] sm:$0xff] %v3162_v53 }
 0x7ed   : > { %v3164_v44 = vpop.f32.mrf.mxu1 }
 0x7ee   : > { %v3165_v58 = vadd.f32 %v3859_v48, %v3164_v44 }
 0x7f0   : > { %3187 = vst [vmem:[#allocation17 + $0x10] sm:$0xff] %v3165_v58 }
 0x7f5   : > { %v3167_v19 = vpop.f32.mrf.mxu1 }
 0x7f6   : > { %v3168_v15 = vadd.f32 %v3859_v48, %v3167_v19 }
 0x7f8   : > { %3188 = vst [vmem:[#allocation17 + $0x18] sm:$0xff] %v3168_v15 }
 0x7fd   : > { %v3170_v60 = vpop.f32.mrf.mxu1 }
 0x7fe   : > { %v3171_v37 = vadd.f32 %v3859_v48, %v3170_v60 }
 0x800   : > { %3189 = vst [vmem:[#allocation17 + $0x20] sm:$0xff] %v3171_v37 }
 0x805   : > { %v3173_v54 = vpop.f32.mrf.mxu1 }
 0x806   : > { %v3174_v23 = vadd.f32 %v3859_v48, %v3173_v54 }
 0x808   : > { %3190 = vst [vmem:[#allocation17 + $0x28] sm:$0xff] %v3174_v23 }
 0x80d   : > { %v3176_v22 = vpop.f32.mrf.mxu1 }
 0x80e   : > { %v3177_v42 = vadd.f32 %v3859_v48, %v3176_v22 }
 0x810   : > { %3191 = vst [vmem:[#allocation17 + $0x30] sm:$0xff] %v3177_v42 }
 0x821   : > { %v3179_v33 = vpop.f32.mrf.mxu2 }
 0x822   : > { %v3180_v34 = vadd.f32 %v3859_v48, %v3179_v33 }
 0x824   : > { %3192 = vst [vmem:[#allocation17 + $0x38] sm:$0xff] %v3180_v34 }
 0x829   : > { %v3182_v18 = vpop.f32.mrf.mxu3 }
 0x82a   : > { %v3183_v31 = vadd.f32 %v3859_v48, %v3182_v18 }
 0x82c   : > { %3193 = vst [vmem:[#allocation17 + $0x40] sm:$0xff] %v3183_v31 }
 0x82d PF: > { %s5922_s17 = sadd.s32 4294967295, %s4146_s23   ;;  %s3201_s28 = sshll.u32 %s5839_s11, 4  ;;  %s3202_s28 = int_to_ptr.hbm [resolvable:$true] %s3201_s28 }
 0x82e   : > { %p3807_p11 = scmp.eq.s32.totalorder %s5922_s17, 1  ;;  %s4164_s21 = smov [#allocation17]  }
 0x82f   : > { %s3199_s20 = sshll.u32 %s4164_s21, 4  ;;  %s4165_s0 = smov 128   ;;  %s3200_s20 = int_to_ptr.vmem [resolvable:$true] %s3199_s20 }
 0x830   : > { %s4166_s25 = smov 8  }
 0x831   : > { %3783 = dma.vmem_to_hbm [thread:$0]  (%p3807_p11), %s3200_s20, 1152, %s3202_s28, [#allocation11], %s4165_s0, %s4165_s0, %s4166_s25  }
 0x832   : > { %4133 = dma.done.wait (%p3807_p11), [#allocation11], 1152  }
 0x833   : > { %4135 = vsyncadd (%p3807_p11), [#allocation11], 4294966144 }
 0x834 PF: > { %s33_s23 = sadd.s32 1, %s4146_s23   ;;  %s5923_s12 = sld [smem:[#allocation23_spill]] }
 0x835   : > { %p30_p12 = scmp.ge.s32.totalorder %s33_s23, 4   ;;  %s5924_s21 = smov %s4142_s22 }
 0x837   :  { %32 = sbr.rel (!%p30_p12) target bundleno = 11 (0xb), region = 160 }
 0x83a   : > { %s5925_s22 = smov %s5923_s12 }
 0x83c   :  { %3218 = vsyncpa [#allocation10], 1 }
 0x83d   :  { %3220 = vsyncpa [#allocation10 + $0x1], 1 }
 0x83e   :  { %3221 = vsyncpa [#allocation13], 1 }
 0x83f   :  { %3222 = vsyncpa [#allocation16], 1 }
 0x840   :  { %3223 = vsyncpa [#allocation11], 1 }
 0x841   :  { %3225 = vsyncpa [#allocation11 + $0x1], 1 }

</bundles_post_ra>
